<compile_context>
chip_gen: v7x
topology: tpu7x:2x2x1
jax: 0.10.0
libtpu: 0.0.40
codegen_flags: <defaults>
</compile_context>

<pallas_src>
import math

import numpy as np
import jax
import jax.numpy as jnp
from jax.experimental import pallas as pl
from jax.experimental.pallas import tpu as pltpu


# ----------------------------------------------------------------------------
# Host-side geometry (pure NumPy, data-independent of x)
# ----------------------------------------------------------------------------
def multiply_quaternions_np(q1, q2):
    """q layout [x, y, z, w]; matches multiply_quaternions_xp in the reference."""
    if q1.ndim == 1:
        q1 = q1[None, :]
    w1, x1, y1, z1 = q1[:, 3], q1[:, 0], q1[:, 1], q1[:, 2]
    w2, x2, y2, z2 = q2[:, 3], q2[:, 0], q2[:, 1], q2[:, 2]
    w = w1 * w2 - x1 * x2 - y1 * y2 - z1 * z2
    x = w1 * x2 + x1 * w2 + y1 * z2 - z1 * y2
    y = w1 * y2 - x1 * z2 + y1 * w2 + z1 * x2
    z = w1 * z2 + x1 * y2 - y1 * x2 + z1 * w2
    return np.stack([x, y, z, w], axis=-1)


def normalize_quats(q):
    return q / np.linalg.norm(q, axis=1, keepdims=True)


def build_gather_table(input_orients, output_orients, kernel_rel, angular_threshold_rad):
    """idx[i, k] = nearest input node within threshold (strict '<', like the
    module's query_within_angle), else -1."""
    n_out = output_orients.shape[0]
    n_ker = kernel_rel.shape[0]
    idx = np.full((n_out, n_ker), -1, dtype=np.int32)
    for i in range(n_out):
        abs_quats = multiply_quaternions_np(output_orients[i], kernel_rel)      # (K, 4)
        dots = np.clip(np.abs(abs_quats @ input_orients.T), -1.0, 1.0)          # (K, N_in)
        angles = 2.0 * np.arccos(dots)
        best = np.argmin(angles, axis=1)
        mins = angles[np.arange(n_ker), best]
        idx[i] = np.where(mins < angular_threshold_rad, best.astype(np.int32), -1)
    return idx


def _round_up(a, b):
    return (a + b - 1) // b * b


# ----------------------------------------------------------------------------
# Pallas kernel
# ----------------------------------------------------------------------------
def spherical_conv_pallas(x, idx, weight, bias, *, nodes_per_tile=None):
    """x: (B, N_in, C_in); idx: (N_out, K) int32 (-1 = no match);
    weight: (C_out, C_in, K); bias: (C_out, N_out).  Returns (B, N_out, C_out)."""
    B, N_in, C_in = x.shape
    N_out, K = idx.shape
    C_out = weight.shape[0]

    KC = K * C_in
    KC_pad = _round_up(max(KC, 1), 8)            # contraction dim, sublane-aligned
    LANE_PAD = KC_pad - KC
    C_out_pad = _round_up(C_out, 128)            # lane-dense output (128 lanes)

    # Output-node tile: amortize per-grid-step overhead, give the matmul a
    # decent M = TO*B, keep TO*B a multiple of 8 (sublanes), bound the unroll.
    if nodes_per_tile is None:
        nodes_per_tile = min(N_out, max(1, 128 // max(B, 1)), 32)
    step = 8 // math.gcd(B, 8)
    TO = _round_up(max(1, int(nodes_per_tile)), step)
    N_out_pad = _round_up(N_out, TO)
    n_tiles = N_out_pad // TO
    MB = TO * B                                  # rows per output block

    # ---- glue: host-side re-layouts only -----------------------------------
    # x -> node-major with an extra zero row (index N_in) for unmatched points.
    x_pad = jnp.concatenate(
        [jnp.transpose(x, (1, 0, 2)),
         jnp.zeros((1, B, C_in), dtype=x.dtype)], axis=0)            # (N_in+1, B, C_in)

    idx_safe = jnp.where(idx >= 0, idx, N_in).astype(jnp.int32)      # unmatched -> zero row
    if N_out_pad > N_out:
        pad_rows = jnp.full((N_out_pad - N_out, K), N_in, dtype=jnp.int32)
        idx_safe = jnp.concatenate([idx_safe, pad_rows], axis=0)
    idx_flat = idx_safe.reshape(N_out_pad * K)                       # 1-D for SMEM

    # weight (C_out, C_in, K) -> (K*C_in, C_out), zero-padded to (KC_pad, C_out_pad).
    w_flat = jnp.transpose(weight, (2, 1, 0)).reshape(KC, C_out).astype(jnp.float32)
    w_flat = jnp.pad(w_flat, ((0, LANE_PAD), (0, C_out_pad - C_out)))

    # bias (C_out, N_out) -> row-per-(node, batch): (N_out_pad*B, C_out_pad).
    bias_t = jnp.transpose(bias, (1, 0)).astype(jnp.float32)         # (N_out, C_out)
    bias_t = jnp.pad(bias_t, ((0, N_out_pad - N_out), (0, C_out_pad - C_out)))
    bias_bt = jnp.repeat(bias_t, B, axis=0)                          # (N_out_pad*B, C_out_pad)

    def kernel(idx_ref, x_ref, w_ref, b_ref, o_ref, g_ref):
        # idx_ref : SMEM (N_out_pad*K,) int32  (scalar-prefetched, 1-D)
        # x_ref   : VMEM (N_in+1, B, C_in)
        # w_ref   : VMEM (KC_pad, C_out_pad)
        # b_ref   : VMEM (MB, C_out_pad)       bias block for this tile
        # o_ref   : VMEM (MB, C_out_pad)       output block for this tile
        # g_ref   : VMEM (MB, KC_pad)          gathered-activation scratch
        i = pl.program_id(0)
        base = i * (TO * K)

        if LANE_PAD > 0:
            g_ref[:, KC:] = jnp.zeros((MB, LANE_PAD), dtype=jnp.float32)

        # Assemble G: row (t*B + b) = [x[b, idx[node,0], :], ..., x[b, idx[node,K-1], :]]
        # for node = i*TO + t.  Scalar gather indices come from SMEM.
        for t in range(TO):                      # static unrolled loops
            for k in range(K):
                j = idx_ref[base + t * K + k]
                g_ref[t * B:(t + 1) * B, k * C_in:(k + 1) * C_in] = (
                    x_ref[j].astype(jnp.float32))        # (B, C_in) dynamic row gather

        # One fused MXU matmul per tile + bias, lane-dense (128-wide) store.
        acc = jnp.dot(g_ref[...], w_ref[...], preferred_element_type=jnp.float32)
        o_ref[...] = (acc + b_ref[...]).astype(o_ref.dtype)

    grid_spec = pltpu.PrefetchScalarGridSpec(
        num_scalar_prefetch=1,                   # flat idx table -> SMEM
        grid=(n_tiles,),
        in_specs=[
            # TODO(synk): at large N_in/B switch x to memory_space=pl.ANY and DMA
            # only the gathered rows per tile (fits v7x's 64 MiB VMEM at scale).
            pl.BlockSpec((N_in + 1, B, C_in), lambda i, s: (0, 0, 0)),   # full x resident
            pl.BlockSpec((KC_pad, C_out_pad), lambda i, s: (0, 0)),      # full weights
            pl.BlockSpec((MB, C_out_pad), lambda i, s: (i, 0)),          # bias tile
        ],
        out_specs=pl.BlockSpec((MB, C_out_pad), lambda i, s: (i, 0)),
        scratch_shapes=[pltpu.VMEM((MB, KC_pad), jnp.float32)],
    )

    out_flat = pl.pallas_call(
        kernel,
        out_shape=jax.ShapeDtypeStruct((N_out_pad * B, C_out_pad), x.dtype),
        grid_spec=grid_spec,
        compiler_params=pltpu.CompilerParams(
            dimension_semantics=("parallel",)),   # tiles independent -> megacore/v7x
    )(idx_flat, x_pad, w_flat, bias_bt)

    out = out_flat.reshape(N_out_pad, B, C_out_pad)[:N_out, :, :C_out]
    return jnp.transpose(out, (1, 0, 2))          # (B, N_out, C_out)


# ----------------------------------------------------------------------------
# NumPy reference (mirrors the PyTorch forward)
# ----------------------------------------------------------------------------
def reference_forward(x, idx, weight, bias):
    B, N_in, C_in = x.shape
    N_out, K = idx.shape
    C_out = weight.shape[0]
    out = np.zeros((B, N_out, C_out), dtype=np.float32)
    for i in range(N_out):
        gathered = np.zeros((B, C_in, K), dtype=np.float32)
        for k in range(K):
            j = idx[i, k]
            if j >= 0:
                gathered[:, :, k] = x[:, j, :]
        conv = np.einsum('bck,ock->bo', gathered, weight)
        out[:, i, :] = conv + bias[:, i][None, :]
    return out


# ----------------------------------------------------------------------------
if __name__ == "__main__":
    # Small shapes consistent with the module.
    B, C_in, C_out = 2, 8, 8
    N_in, N_out, K = 32, 16, 9          # input nodes, output nodes, kernel points
    angular_threshold_rad = 0.8

    # Deterministic orientation sets (normalized quaternions), built on host.
    rng = np.random.RandomState(0)
    input_orients = normalize_quats(rng.randn(N_in, 4).astype(np.float64))
    output_orients = normalize_quats(rng.randn(N_out, 4).astype(np.float64))
    kernel_rel = normalize_quats(rng.randn(K, 4).astype(np.float64))

    # Precomputed gather table (geometry, data-independent of x).
    idx_np = build_gather_table(input_orients, output_orients, kernel_rel,
                                angular_threshold_rad)

    # Deterministic parameters and input.
    key = jax.random.PRNGKey(0)
    kw, kb, kx = jax.random.split(key, 3)
    weight = jax.random.normal(kw, (C_out, C_in, K), dtype=jnp.float32)
    bias = jax.random.normal(kb, (C_out, N_out), dtype=jnp.float32)
    x = jax.random.normal(kx, (B, N_in, C_in), dtype=jnp.float32)

    idx = jnp.asarray(idx_np, dtype=jnp.int32)

    out = spherical_conv_pallas(x, idx, weight, bias)
    out = jax.block_until_ready(out)

    ref = reference_forward(np.asarray(x), idx_np, np.asarray(weight), np.asarray(bias))
    assert out.shape == (B, N_out, C_out)
    assert np.allclose(np.asarray(out), ref, rtol=1e-3, atol=1e-3), "mismatch vs reference"

    print("KERNEL_OK")
</pallas_src>

<mosaic_0001>
module attributes {stable_mosaic.version = 11 : i64} {
  func.func @kernel(%arg0: i32, %arg1: memref<144xi32, #tpu.memory_space<smem>>, %arg2: memref<33x2x8xf32, #tpu.memory_space<vmem>>, %arg3: memref<72x128xf32, #tpu.memory_space<vmem>>, %arg4: memref<32x128xf32, #tpu.memory_space<vmem>>, %arg5: memref<32x128xf32, #tpu.memory_space<vmem>>, %arg6: memref<32x72xf32, #tpu.memory_space<vmem>>) attributes {dimension_semantics = [#tpu.dimension_semantics<parallel>], iteration_bounds = array<i64: 1>, scalar_prefetch = 1 : i64, scratch_operands = 1 : i64, tpu.core_type = #tpu.core_type<tc>, window_params = [{pipeline_mode = #tpu.pipeline_mode<synchronous>, transform_indices = @transform_0, window_bounds = array<i64: 33, 2, 8>}, {pipeline_mode = #tpu.pipeline_mode<synchronous>, transform_indices = @transform_1, window_bounds = array<i64: 72, 128>}, {transform_indices = @transform_2, window_bounds = array<i64: 32, 128>}, {transform_indices = @transform_3, window_bounds = array<i64: 32, 128>}]} {
    %c144_i32 = arith.constant 144 : i32
    %0 = arith.muli %arg0, %c144_i32 : i32
    %c0_i32 = arith.constant 0 : i32
    %1 = arith.addi %0, %c0_i32 : i32
    %c0_i32_0 = arith.constant 0 : i32
    %2 = arith.addi %1, %c0_i32_0 : i32
    %3 = arith.index_cast %2 : i32 to index
    %4 = memref.load %arg1[%3] : memref<144xi32, #tpu.memory_space<smem>>
    %5 = arith.index_cast %4 : i32 to index
    %c0 = arith.constant 0 : index
    %c0_1 = arith.constant 0 : index
    %6 = vector.load %arg2[%5, %c0, %c0_1] : memref<33x2x8xf32, #tpu.memory_space<vmem>>, vector<1x2x8xf32>
    %7 = vector.shape_cast %6 : vector<1x2x8xf32> to vector<2x8xf32>
    %c0_2 = arith.constant 0 : index
    %c0_3 = arith.constant 0 : index
    %8 = vector.load %arg6[%c0_2, %c0_3] : memref<32x72xf32, #tpu.memory_space<vmem>>, vector<2x8xf32>
    tpu.vector_store %arg6[%c0_2, %c0_3], %7 {strides = array<i32>} : memref<32x72xf32, #tpu.memory_space<vmem>>, vector<2x8xf32>,
    %c0_i32_4 = arith.constant 0 : i32
    %9 = arith.addi %0, %c0_i32_4 : i32
    %c1_i32 = arith.constant 1 : i32
    %10 = arith.addi %9, %c1_i32 : i32
    %11 = arith.index_cast %10 : i32 to index
    %12 = memref.load %arg1[%11] : memref<144xi32, #tpu.memory_space<smem>>
    %13 = arith.index_cast %12 : i32 to index
    %c0_5 = arith.constant 0 : index
    %c0_6 = arith.constant 0 : index
    %14 = vector.load %arg2[%13, %c0_5, %c0_6] : memref<33x2x8xf32, #tpu.memory_space<vmem>>, vector<1x2x8xf32>
    %15 = vector.shape_cast %14 : vector<1x2x8xf32> to vector<2x8xf32>
    %c0_7 = arith.constant 0 : index
    %c8 = arith.constant 8 : index
    %16 = vector.load %arg6[%c0_7, %c8] : memref<32x72xf32, #tpu.memory_space<vmem>>, vector<2x8xf32>
    tpu.vector_store %arg6[%c0_7, %c8], %15 {strides = array<i32>} : memref<32x72xf32, #tpu.memory_space<vmem>>, vector<2x8xf32>,
    %c0_i32_8 = arith.constant 0 : i32
    %17 = arith.addi %0, %c0_i32_8 : i32
    %c2_i32 = arith.constant 2 : i32
    %18 = arith.addi %17, %c2_i32 : i32
    %19 = arith.index_cast %18 : i32 to index
    %20 = memref.load %arg1[%19] : memref<144xi32, #tpu.memory_space<smem>>
    %21 = arith.index_cast %20 : i32 to index
    %c0_9 = arith.constant 0 : index
    %c0_10 = arith.constant 0 : index
    %22 = vector.load %arg2[%21, %c0_9, %c0_10] : memref<33x2x8xf32, #tpu.memory_space<vmem>>, vector<1x2x8xf32>
    %23 = vector.shape_cast %22 : vector<1x2x8xf32> to vector<2x8xf32>
    %c0_11 = arith.constant 0 : index
    %c16 = arith.constant 16 : index
    %24 = vector.load %arg6[%c0_11, %c16] : memref<32x72xf32, #tpu.memory_space<vmem>>, vector<2x8xf32>
    tpu.vector_store %arg6[%c0_11, %c16], %23 {strides = array<i32>} : memref<32x72xf32, #tpu.memory_space<vmem>>, vector<2x8xf32>,
    %c0_i32_12 = arith.constant 0 : i32
    %25 = arith.addi %0, %c0_i32_12 : i32
    %c3_i32 = arith.constant 3 : i32
    %26 = arith.addi %25, %c3_i32 : i32
    %27 = arith.index_cast %26 : i32 to index
    %28 = memref.load %arg1[%27] : memref<144xi32, #tpu.memory_space<smem>>
    %29 = arith.index_cast %28 : i32 to index
    %c0_13 = arith.constant 0 : index
    %c0_14 = arith.constant 0 : index
    %30 = vector.load %arg2[%29, %c0_13, %c0_14] : memref<33x2x8xf32, #tpu.memory_space<vmem>>, vector<1x2x8xf32>
    %31 = vector.shape_cast %30 : vector<1x2x8xf32> to vector<2x8xf32>
    %c0_15 = arith.constant 0 : index
    %c24 = arith.constant 24 : index
    %32 = vector.load %arg6[%c0_15, %c24] : memref<32x72xf32, #tpu.memory_space<vmem>>, vector<2x8xf32>
    tpu.vector_store %arg6[%c0_15, %c24], %31 {strides = array<i32>} : memref<32x72xf32, #tpu.memory_space<vmem>>, vector<2x8xf32>,
    %c0_i32_16 = arith.constant 0 : i32
    %33 = arith.addi %0, %c0_i32_16 : i32
    %c4_i32 = arith.constant 4 : i32
    %34 = arith.addi %33, %c4_i32 : i32
    %35 = arith.index_cast %34 : i32 to index
    %36 = memref.load %arg1[%35] : memref<144xi32, #tpu.memory_space<smem>>
    %37 = arith.index_cast %36 : i32 to index
    %c0_17 = arith.constant 0 : index
    %c0_18 = arith.constant 0 : index
    %38 = vector.load %arg2[%37, %c0_17, %c0_18] : memref<33x2x8xf32, #tpu.memory_space<vmem>>, vector<1x2x8xf32>
    %39 = vector.shape_cast %38 : vector<1x2x8xf32> to vector<2x8xf32>
    %c0_19 = arith.constant 0 : index
    %c32 = arith.constant 32 : index
    %40 = vector.load %arg6[%c0_19, %c32] : memref<32x72xf32, #tpu.memory_space<vmem>>, vector<2x8xf32>
    tpu.vector_store %arg6[%c0_19, %c32], %39 {strides = array<i32>} : memref<32x72xf32, #tpu.memory_space<vmem>>, vector<2x8xf32>,
    %c0_i32_20 = arith.constant 0 : i32
    %41 = arith.addi %0, %c0_i32_20 : i32
    %c5_i32 = arith.constant 5 : i32
    %42 = arith.addi %41, %c5_i32 : i32
    %43 = arith.index_cast %42 : i32 to index
    %44 = memref.load %arg1[%43] : memref<144xi32, #tpu.memory_space<smem>>
    %45 = arith.index_cast %44 : i32 to index
    %c0_21 = arith.constant 0 : index
    %c0_22 = arith.constant 0 : index
    %46 = vector.load %arg2[%45, %c0_21, %c0_22] : memref<33x2x8xf32, #tpu.memory_space<vmem>>, vector<1x2x8xf32>
    %47 = vector.shape_cast %46 : vector<1x2x8xf32> to vector<2x8xf32>
    %c0_23 = arith.constant 0 : index
    %c40 = arith.constant 40 : index
    %48 = vector.load %arg6[%c0_23, %c40] : memref<32x72xf32, #tpu.memory_space<vmem>>, vector<2x8xf32>
    tpu.vector_store %arg6[%c0_23, %c40], %47 {strides = array<i32>} : memref<32x72xf32, #tpu.memory_space<vmem>>, vector<2x8xf32>,
    %c0_i32_24 = arith.constant 0 : i32
    %49 = arith.addi %0, %c0_i32_24 : i32
    %c6_i32 = arith.constant 6 : i32
    %50 = arith.addi %49, %c6_i32 : i32
    %51 = arith.index_cast %50 : i32 to index
    %52 = memref.load %arg1[%51] : memref<144xi32, #tpu.memory_space<smem>>
    %53 = arith.index_cast %52 : i32 to index
    %c0_25 = arith.constant 0 : index
    %c0_26 = arith.constant 0 : index
    %54 = vector.load %arg2[%53, %c0_25, %c0_26] : memref<33x2x8xf32, #tpu.memory_space<vmem>>, vector<1x2x8xf32>
    %55 = vector.shape_cast %54 : vector<1x2x8xf32> to vector<2x8xf32>
    %c0_27 = arith.constant 0 : index
    %c48 = arith.constant 48 : index
    %56 = vector.load %arg6[%c0_27, %c48] : memref<32x72xf32, #tpu.memory_space<vmem>>, vector<2x8xf32>
    tpu.vector_store %arg6[%c0_27, %c48], %55 {strides = array<i32>} : memref<32x72xf32, #tpu.memory_space<vmem>>, vector<2x8xf32>,
    %c0_i32_28 = arith.constant 0 : i32
    %57 = arith.addi %0, %c0_i32_28 : i32
    %c7_i32 = arith.constant 7 : i32
    %58 = arith.addi %57, %c7_i32 : i32
    %59 = arith.index_cast %58 : i32 to index
    %60 = memref.load %arg1[%59] : memref<144xi32, #tpu.memory_space<smem>>
    %61 = arith.index_cast %60 : i32 to index
    %c0_29 = arith.constant 0 : index
    %c0_30 = arith.constant 0 : index
    %62 = vector.load %arg2[%61, %c0_29, %c0_30] : memref<33x2x8xf32, #tpu.memory_space<vmem>>, vector<1x2x8xf32>
    %63 = vector.shape_cast %62 : vector<1x2x8xf32> to vector<2x8xf32>
    %c0_31 = arith.constant 0 : index
    %c56 = arith.constant 56 : index
    %64 = vector.load %arg6[%c0_31, %c56] : memref<32x72xf32, #tpu.memory_space<vmem>>, vector<2x8xf32>
    tpu.vector_store %arg6[%c0_31, %c56], %63 {strides = array<i32>} : memref<32x72xf32, #tpu.memory_space<vmem>>, vector<2x8xf32>,
    %c0_i32_32 = arith.constant 0 : i32
    %65 = arith.addi %0, %c0_i32_32 : i32
    %c8_i32 = arith.constant 8 : i32
    %66 = arith.addi %65, %c8_i32 : i32
    %67 = arith.index_cast %66 : i32 to index
    %68 = memref.load %arg1[%67] : memref<144xi32, #tpu.memory_space<smem>>
    %69 = arith.index_cast %68 : i32 to index
    %c0_33 = arith.constant 0 : index
    %c0_34 = arith.constant 0 : index
    %70 = vector.load %arg2[%69, %c0_33, %c0_34] : memref<33x2x8xf32, #tpu.memory_space<vmem>>, vector<1x2x8xf32>
    %71 = vector.shape_cast %70 : vector<1x2x8xf32> to vector<2x8xf32>
    %c0_35 = arith.constant 0 : index
    %c64 = arith.constant 64 : index
    %72 = vector.load %arg6[%c0_35, %c64] : memref<32x72xf32, #tpu.memory_space<vmem>>, vector<2x8xf32>
    tpu.vector_store %arg6[%c0_35, %c64], %71 {strides = array<i32>} : memref<32x72xf32, #tpu.memory_space<vmem>>, vector<2x8xf32>,
    %c9_i32 = arith.constant 9 : i32
    %73 = arith.addi %0, %c9_i32 : i32
    %c0_i32_36 = arith.constant 0 : i32
    %74 = arith.addi %73, %c0_i32_36 : i32
    %75 = arith.index_cast %74 : i32 to index
    %76 = memref.load %arg1[%75] : memref<144xi32, #tpu.memory_space<smem>>
    %77 = arith.index_cast %76 : i32 to index
    %c0_37 = arith.constant 0 : index
    %c0_38 = arith.constant 0 : index
    %78 = vector.load %arg2[%77, %c0_37, %c0_38] : memref<33x2x8xf32, #tpu.memory_space<vmem>>, vector<1x2x8xf32>
    %79 = vector.shape_cast %78 : vector<1x2x8xf32> to vector<2x8xf32>
    %c2 = arith.constant 2 : index
    %c0_39 = arith.constant 0 : index
    %80 = vector.load %arg6[%c2, %c0_39] : memref<32x72xf32, #tpu.memory_space<vmem>>, vector<2x8xf32>
    tpu.vector_store %arg6[%c2, %c0_39], %79 {strides = array<i32>} : memref<32x72xf32, #tpu.memory_space<vmem>>, vector<2x8xf32>,
    %c9_i32_40 = arith.constant 9 : i32
    %81 = arith.addi %0, %c9_i32_40 : i32
    %c1_i32_41 = arith.constant 1 : i32
    %82 = arith.addi %81, %c1_i32_41 : i32
    %83 = arith.index_cast %82 : i32 to index
    %84 = memref.load %arg1[%83] : memref<144xi32, #tpu.memory_space<smem>>
    %85 = arith.index_cast %84 : i32 to index
    %c0_42 = arith.constant 0 : index
    %c0_43 = arith.constant 0 : index
    %86 = vector.load %arg2[%85, %c0_42, %c0_43] : memref<33x2x8xf32, #tpu.memory_space<vmem>>, vector<1x2x8xf32>
    %87 = vector.shape_cast %86 : vector<1x2x8xf32> to vector<2x8xf32>
    %c2_44 = arith.constant 2 : index
    %c8_45 = arith.constant 8 : index
    %88 = vector.load %arg6[%c2_44, %c8_45] : memref<32x72xf32, #tpu.memory_space<vmem>>, vector<2x8xf32>
    tpu.vector_store %arg6[%c2_44, %c8_45], %87 {strides = array<i32>} : memref<32x72xf32, #tpu.memory_space<vmem>>, vector<2x8xf32>,
    %c9_i32_46 = arith.constant 9 : i32
    %89 = arith.addi %0, %c9_i32_46 : i32
    %c2_i32_47 = arith.constant 2 : i32
    %90 = arith.addi %89, %c2_i32_47 : i32
    %91 = arith.index_cast %90 : i32 to index
    %92 = memref.load %arg1[%91] : memref<144xi32, #tpu.memory_space<smem>>
    %93 = arith.index_cast %92 : i32 to index
    %c0_48 = arith.constant 0 : index
    %c0_49 = arith.constant 0 : index
    %94 = vector.load %arg2[%93, %c0_48, %c0_49] : memref<33x2x8xf32, #tpu.memory_space<vmem>>, vector<1x2x8xf32>
    %95 = vector.shape_cast %94 : vector<1x2x8xf32> to vector<2x8xf32>
    %c2_50 = arith.constant 2 : index
    %c16_51 = arith.constant 16 : index
    %96 = vector.load %arg6[%c2_50, %c16_51] : memref<32x72xf32, #tpu.memory_space<vmem>>, vector<2x8xf32>
    tpu.vector_store %arg6[%c2_50, %c16_51], %95 {strides = array<i32>} : memref<32x72xf32, #tpu.memory_space<vmem>>, vector<2x8xf32>,
    %c9_i32_52 = arith.constant 9 : i32
    %97 = arith.addi %0, %c9_i32_52 : i32
    %c3_i32_53 = arith.constant 3 : i32
    %98 = arith.addi %97, %c3_i32_53 : i32
    %99 = arith.index_cast %98 : i32 to index
    %100 = memref.load %arg1[%99] : memref<144xi32, #tpu.memory_space<smem>>
    %101 = arith.index_cast %100 : i32 to index
    %c0_54 = arith.constant 0 : index
    %c0_55 = arith.constant 0 : index
    %102 = vector.load %arg2[%101, %c0_54, %c0_55] : memref<33x2x8xf32, #tpu.memory_space<vmem>>, vector<1x2x8xf32>
    %103 = vector.shape_cast %102 : vector<1x2x8xf32> to vector<2x8xf32>
    %c2_56 = arith.constant 2 : index
    %c24_57 = arith.constant 24 : index
    %104 = vector.load %arg6[%c2_56, %c24_57] : memref<32x72xf32, #tpu.memory_space<vmem>>, vector<2x8xf32>
    tpu.vector_store %arg6[%c2_56, %c24_57], %103 {strides = array<i32>} : memref<32x72xf32, #tpu.memory_space<vmem>>, vector<2x8xf32>,
    %c9_i32_58 = arith.constant 9 : i32
    %105 = arith.addi %0, %c9_i32_58 : i32
    %c4_i32_59 = arith.constant 4 : i32
    %106 = arith.addi %105, %c4_i32_59 : i32
    %107 = arith.index_cast %106 : i32 to index
    %108 = memref.load %arg1[%107] : memref<144xi32, #tpu.memory_space<smem>>
    %109 = arith.index_cast %108 : i32 to index
    %c0_60 = arith.constant 0 : index
    %c0_61 = arith.constant 0 : index
    %110 = vector.load %arg2[%109, %c0_60, %c0_61] : memref<33x2x8xf32, #tpu.memory_space<vmem>>, vector<1x2x8xf32>
    %111 = vector.shape_cast %110 : vector<1x2x8xf32> to vector<2x8xf32>
    %c2_62 = arith.constant 2 : index
    %c32_63 = arith.constant 32 : index
    %112 = vector.load %arg6[%c2_62, %c32_63] : memref<32x72xf32, #tpu.memory_space<vmem>>, vector<2x8xf32>
    tpu.vector_store %arg6[%c2_62, %c32_63], %111 {strides = array<i32>} : memref<32x72xf32, #tpu.memory_space<vmem>>, vector<2x8xf32>,
    %c9_i32_64 = arith.constant 9 : i32
    %113 = arith.addi %0, %c9_i32_64 : i32
    %c5_i32_65 = arith.constant 5 : i32
    %114 = arith.addi %113, %c5_i32_65 : i32
    %115 = arith.index_cast %114 : i32 to index
    %116 = memref.load %arg1[%115] : memref<144xi32, #tpu.memory_space<smem>>
    %117 = arith.index_cast %116 : i32 to index
    %c0_66 = arith.constant 0 : index
    %c0_67 = arith.constant 0 : index
    %118 = vector.load %arg2[%117, %c0_66, %c0_67] : memref<33x2x8xf32, #tpu.memory_space<vmem>>, vector<1x2x8xf32>
    %119 = vector.shape_cast %118 : vector<1x2x8xf32> to vector<2x8xf32>
    %c2_68 = arith.constant 2 : index
    %c40_69 = arith.constant 40 : index
    %120 = vector.load %arg6[%c2_68, %c40_69] : memref<32x72xf32, #tpu.memory_space<vmem>>, vector<2x8xf32>
    tpu.vector_store %arg6[%c2_68, %c40_69], %119 {strides = array<i32>} : memref<32x72xf32, #tpu.memory_space<vmem>>, vector<2x8xf32>,
    %c9_i32_70 = arith.constant 9 : i32
    %121 = arith.addi %0, %c9_i32_70 : i32
    %c6_i32_71 = arith.constant 6 : i32
    %122 = arith.addi %121, %c6_i32_71 : i32
    %123 = arith.index_cast %122 : i32 to index
    %124 = memref.load %arg1[%123] : memref<144xi32, #tpu.memory_space<smem>>
    %125 = arith.index_cast %124 : i32 to index
    %c0_72 = arith.constant 0 : index
    %c0_73 = arith.constant 0 : index
    %126 = vector.load %arg2[%125, %c0_72, %c0_73] : memref<33x2x8xf32, #tpu.memory_space<vmem>>, vector<1x2x8xf32>
    %127 = vector.shape_cast %126 : vector<1x2x8xf32> to vector<2x8xf32>
    %c2_74 = arith.constant 2 : index
    %c48_75 = arith.constant 48 : index
    %128 = vector.load %arg6[%c2_74, %c48_75] : memref<32x72xf32, #tpu.memory_space<vmem>>, vector<2x8xf32>
    tpu.vector_store %arg6[%c2_74, %c48_75], %127 {strides = array<i32>} : memref<32x72xf32, #tpu.memory_space<vmem>>, vector<2x8xf32>,
    %c9_i32_76 = arith.constant 9 : i32
    %129 = arith.addi %0, %c9_i32_76 : i32
    %c7_i32_77 = arith.constant 7 : i32
    %130 = arith.addi %129, %c7_i32_77 : i32
    %131 = arith.index_cast %130 : i32 to index
    %132 = memref.load %arg1[%131] : memref<144xi32, #tpu.memory_space<smem>>
    %133 = arith.index_cast %132 : i32 to index
    %c0_78 = arith.constant 0 : index
    %c0_79 = arith.constant 0 : index
    %134 = vector.load %arg2[%133, %c0_78, %c0_79] : memref<33x2x8xf32, #tpu.memory_space<vmem>>, vector<1x2x8xf32>
    %135 = vector.shape_cast %134 : vector<1x2x8xf32> to vector<2x8xf32>
    %c2_80 = arith.constant 2 : index
    %c56_81 = arith.constant 56 : index
    %136 = vector.load %arg6[%c2_80, %c56_81] : memref<32x72xf32, #tpu.memory_space<vmem>>, vector<2x8xf32>
    tpu.vector_store %arg6[%c2_80, %c56_81], %135 {strides = array<i32>} : memref<32x72xf32, #tpu.memory_space<vmem>>, vector<2x8xf32>,
    %c9_i32_82 = arith.constant 9 : i32
    %137 = arith.addi %0, %c9_i32_82 : i32
    %c8_i32_83 = arith.constant 8 : i32
    %138 = arith.addi %137, %c8_i32_83 : i32
    %139 = arith.index_cast %138 : i32 to index
    %140 = memref.load %arg1[%139] : memref<144xi32, #tpu.memory_space<smem>>
    %141 = arith.index_cast %140 : i32 to index
    %c0_84 = arith.constant 0 : index
    %c0_85 = arith.constant 0 : index
    %142 = vector.load %arg2[%141, %c0_84, %c0_85] : memref<33x2x8xf32, #tpu.memory_space<vmem>>, vector<1x2x8xf32>
    %143 = vector.shape_cast %142 : vector<1x2x8xf32> to vector<2x8xf32>
    %c2_86 = arith.constant 2 : index
    %c64_87 = arith.constant 64 : index
    %144 = vector.load %arg6[%c2_86, %c64_87] : memref<32x72xf32, #tpu.memory_space<vmem>>, vector<2x8xf32>
    tpu.vector_store %arg6[%c2_86, %c64_87], %143 {strides = array<i32>} : memref<32x72xf32, #tpu.memory_space<vmem>>, vector<2x8xf32>,
    %c18_i32 = arith.constant 18 : i32
    %145 = arith.addi %0, %c18_i32 : i32
    %c0_i32_88 = arith.constant 0 : i32
    %146 = arith.addi %145, %c0_i32_88 : i32
    %147 = arith.index_cast %146 : i32 to index
    %148 = memref.load %arg1[%147] : memref<144xi32, #tpu.memory_space<smem>>
    %149 = arith.index_cast %148 : i32 to index
    %c0_89 = arith.constant 0 : index
    %c0_90 = arith.constant 0 : index
    %150 = vector.load %arg2[%149, %c0_89, %c0_90] : memref<33x2x8xf32, #tpu.memory_space<vmem>>, vector<1x2x8xf32>
    %151 = vector.shape_cast %150 : vector<1x2x8xf32> to vector<2x8xf32>
    %c4 = arith.constant 4 : index
    %c0_91 = arith.constant 0 : index
    %152 = vector.load %arg6[%c4, %c0_91] : memref<32x72xf32, #tpu.memory_space<vmem>>, vector<2x8xf32>
    tpu.vector_store %arg6[%c4, %c0_91], %151 {strides = array<i32>} : memref<32x72xf32, #tpu.memory_space<vmem>>, vector<2x8xf32>,
    %c18_i32_92 = arith.constant 18 : i32
    %153 = arith.addi %0, %c18_i32_92 : i32
    %c1_i32_93 = arith.constant 1 : i32
    %154 = arith.addi %153, %c1_i32_93 : i32
    %155 = arith.index_cast %154 : i32 to index
    %156 = memref.load %arg1[%155] : memref<144xi32, #tpu.memory_space<smem>>
    %157 = arith.index_cast %156 : i32 to index
    %c0_94 = arith.constant 0 : index
    %c0_95 = arith.constant 0 : index
    %158 = vector.load %arg2[%157, %c0_94, %c0_95] : memref<33x2x8xf32, #tpu.memory_space<vmem>>, vector<1x2x8xf32>
    %159 = vector.shape_cast %158 : vector<1x2x8xf32> to vector<2x8xf32>
    %c4_96 = arith.constant 4 : index
    %c8_97 = arith.constant 8 : index
    %160 = vector.load %arg6[%c4_96, %c8_97] : memref<32x72xf32, #tpu.memory_space<vmem>>, vector<2x8xf32>
    tpu.vector_store %arg6[%c4_96, %c8_97], %159 {strides = array<i32>} : memref<32x72xf32, #tpu.memory_space<vmem>>, vector<2x8xf32>,
    %c18_i32_98 = arith.constant 18 : i32
    %161 = arith.addi %0, %c18_i32_98 : i32
    %c2_i32_99 = arith.constant 2 : i32
    %162 = arith.addi %161, %c2_i32_99 : i32
    %163 = arith.index_cast %162 : i32 to index
    %164 = memref.load %arg1[%163] : memref<144xi32, #tpu.memory_space<smem>>
    %165 = arith.index_cast %164 : i32 to index
    %c0_100 = arith.constant 0 : index
    %c0_101 = arith.constant 0 : index
    %166 = vector.load %arg2[%165, %c0_100, %c0_101] : memref<33x2x8xf32, #tpu.memory_space<vmem>>, vector<1x2x8xf32>
    %167 = vector.shape_cast %166 : vector<1x2x8xf32> to vector<2x8xf32>
    %c4_102 = arith.constant 4 : index
    %c16_103 = arith.constant 16 : index
    %168 = vector.load %arg6[%c4_102, %c16_103] : memref<32x72xf32, #tpu.memory_space<vmem>>, vector<2x8xf32>
    tpu.vector_store %arg6[%c4_102, %c16_103], %167 {strides = array<i32>} : memref<32x72xf32, #tpu.memory_space<vmem>>, vector<2x8xf32>,
    %c18_i32_104 = arith.constant 18 : i32
    %169 = arith.addi %0, %c18_i32_104 : i32
    %c3_i32_105 = arith.constant 3 : i32
    %170 = arith.addi %169, %c3_i32_105 : i32
    %171 = arith.index_cast %170 : i32 to index
    %172 = memref.load %arg1[%171] : memref<144xi32, #tpu.memory_space<smem>>
    %173 = arith.index_cast %172 : i32 to index
    %c0_106 = arith.constant 0 : index
    %c0_107 = arith.constant 0 : index
    %174 = vector.load %arg2[%173, %c0_106, %c0_107] : memref<33x2x8xf32, #tpu.memory_space<vmem>>, vector<1x2x8xf32>
    %175 = vector.shape_cast %174 : vector<1x2x8xf32> to vector<2x8xf32>
    %c4_108 = arith.constant 4 : index
    %c24_109 = arith.constant 24 : index
    %176 = vector.load %arg6[%c4_108, %c24_109] : memref<32x72xf32, #tpu.memory_space<vmem>>, vector<2x8xf32>
    tpu.vector_store %arg6[%c4_108, %c24_109], %175 {strides = array<i32>} : memref<32x72xf32, #tpu.memory_space<vmem>>, vector<2x8xf32>,
    %c18_i32_110 = arith.constant 18 : i32
    %177 = arith.addi %0, %c18_i32_110 : i32
    %c4_i32_111 = arith.constant 4 : i32
    %178 = arith.addi %177, %c4_i32_111 : i32
    %179 = arith.index_cast %178 : i32 to index
    %180 = memref.load %arg1[%179] : memref<144xi32, #tpu.memory_space<smem>>
    %181 = arith.index_cast %180 : i32 to index
    %c0_112 = arith.constant 0 : index
    %c0_113 = arith.constant 0 : index
    %182 = vector.load %arg2[%181, %c0_112, %c0_113] : memref<33x2x8xf32, #tpu.memory_space<vmem>>, vector<1x2x8xf32>
    %183 = vector.shape_cast %182 : vector<1x2x8xf32> to vector<2x8xf32>
    %c4_114 = arith.constant 4 : index
    %c32_115 = arith.constant 32 : index
    %184 = vector.load %arg6[%c4_114, %c32_115] : memref<32x72xf32, #tpu.memory_space<vmem>>, vector<2x8xf32>
    tpu.vector_store %arg6[%c4_114, %c32_115], %183 {strides = array<i32>} : memref<32x72xf32, #tpu.memory_space<vmem>>, vector<2x8xf32>,
    %c18_i32_116 = arith.constant 18 : i32
    %185 = arith.addi %0, %c18_i32_116 : i32
    %c5_i32_117 = arith.constant 5 : i32
    %186 = arith.addi %185, %c5_i32_117 : i32
    %187 = arith.index_cast %186 : i32 to index
    %188 = memref.load %arg1[%187] : memref<144xi32, #tpu.memory_space<smem>>
    %189 = arith.index_cast %188 : i32 to index
    %c0_118 = arith.constant 0 : index
    %c0_119 = arith.constant 0 : index
    %190 = vector.load %arg2[%189, %c0_118, %c0_119] : memref<33x2x8xf32, #tpu.memory_space<vmem>>, vector<1x2x8xf32>
    %191 = vector.shape_cast %190 : vector<1x2x8xf32> to vector<2x8xf32>
    %c4_120 = arith.constant 4 : index
    %c40_121 = arith.constant 40 : index
    %192 = vector.load %arg6[%c4_120, %c40_121] : memref<32x72xf32, #tpu.memory_space<vmem>>, vector<2x8xf32>
    tpu.vector_store %arg6[%c4_120, %c40_121], %191 {strides = array<i32>} : memref<32x72xf32, #tpu.memory_space<vmem>>, vector<2x8xf32>,
    %c18_i32_122 = arith.constant 18 : i32
    %193 = arith.addi %0, %c18_i32_122 : i32
    %c6_i32_123 = arith.constant 6 : i32
    %194 = arith.addi %193, %c6_i32_123 : i32
    %195 = arith.index_cast %194 : i32 to index
    %196 = memref.load %arg1[%195] : memref<144xi32, #tpu.memory_space<smem>>
    %197 = arith.index_cast %196 : i32 to index
    %c0_124 = arith.constant 0 : index
    %c0_125 = arith.constant 0 : index
    %198 = vector.load %arg2[%197, %c0_124, %c0_125] : memref<33x2x8xf32, #tpu.memory_space<vmem>>, vector<1x2x8xf32>
    %199 = vector.shape_cast %198 : vector<1x2x8xf32> to vector<2x8xf32>
    %c4_126 = arith.constant 4 : index
    %c48_127 = arith.constant 48 : index
    %200 = vector.load %arg6[%c4_126, %c48_127] : memref<32x72xf32, #tpu.memory_space<vmem>>, vector<2x8xf32>
    tpu.vector_store %arg6[%c4_126, %c48_127], %199 {strides = array<i32>} : memref<32x72xf32, #tpu.memory_space<vmem>>, vector<2x8xf32>,
    %c18_i32_128 = arith.constant 18 : i32
    %201 = arith.addi %0, %c18_i32_128 : i32
    %c7_i32_129 = arith.constant 7 : i32
    %202 = arith.addi %201, %c7_i32_129 : i32
    %203 = arith.index_cast %202 : i32 to index
    %204 = memref.load %arg1[%203] : memref<144xi32, #tpu.memory_space<smem>>
    %205 = arith.index_cast %204 : i32 to index
    %c0_130 = arith.constant 0 : index
    %c0_131 = arith.constant 0 : index
    %206 = vector.load %arg2[%205, %c0_130, %c0_131] : memref<33x2x8xf32, #tpu.memory_space<vmem>>, vector<1x2x8xf32>
    %207 = vector.shape_cast %206 : vector<1x2x8xf32> to vector<2x8xf32>
    %c4_132 = arith.constant 4 : index
    %c56_133 = arith.constant 56 : index
    %208 = vector.load %arg6[%c4_132, %c56_133] : memref<32x72xf32, #tpu.memory_space<vmem>>, vector<2x8xf32>
    tpu.vector_store %arg6[%c4_132, %c56_133], %207 {strides = array<i32>} : memref<32x72xf32, #tpu.memory_space<vmem>>, vector<2x8xf32>,
    %c18_i32_134 = arith.constant 18 : i32
    %209 = arith.addi %0, %c18_i32_134 : i32
    %c8_i32_135 = arith.constant 8 : i32
    %210 = arith.addi %209, %c8_i32_135 : i32
    %211 = arith.index_cast %210 : i32 to index
    %212 = memref.load %arg1[%211] : memref<144xi32, #tpu.memory_space<smem>>
    %213 = arith.index_cast %212 : i32 to index
    %c0_136 = arith.constant 0 : index
    %c0_137 = arith.constant 0 : index
    %214 = vector.load %arg2[%213, %c0_136, %c0_137] : memref<33x2x8xf32, #tpu.memory_space<vmem>>, vector<1x2x8xf32>
    %215 = vector.shape_cast %214 : vector<1x2x8xf32> to vector<2x8xf32>
    %c4_138 = arith.constant 4 : index
    %c64_139 = arith.constant 64 : index
    %216 = vector.load %arg6[%c4_138, %c64_139] : memref<32x72xf32, #tpu.memory_space<vmem>>, vector<2x8xf32>
    tpu.vector_store %arg6[%c4_138, %c64_139], %215 {strides = array<i32>} : memref<32x72xf32, #tpu.memory_space<vmem>>, vector<2x8xf32>,
    %c27_i32 = arith.constant 27 : i32
    %217 = arith.addi %0, %c27_i32 : i32
    %c0_i32_140 = arith.constant 0 : i32
    %218 = arith.addi %217, %c0_i32_140 : i32
    %219 = arith.index_cast %218 : i32 to index
    %220 = memref.load %arg1[%219] : memref<144xi32, #tpu.memory_space<smem>>
    %221 = arith.index_cast %220 : i32 to index
    %c0_141 = arith.constant 0 : index
    %c0_142 = arith.constant 0 : index
    %222 = vector.load %arg2[%221, %c0_141, %c0_142] : memref<33x2x8xf32, #tpu.memory_space<vmem>>, vector<1x2x8xf32>
    %223 = vector.shape_cast %222 : vector<1x2x8xf32> to vector<2x8xf32>
    %c6 = arith.constant 6 : index
    %c0_143 = arith.constant 0 : index
    %224 = vector.load %arg6[%c6, %c0_143] : memref<32x72xf32, #tpu.memory_space<vmem>>, vector<2x8xf32>
    tpu.vector_store %arg6[%c6, %c0_143], %223 {strides = array<i32>} : memref<32x72xf32, #tpu.memory_space<vmem>>, vector<2x8xf32>,
    %c27_i32_144 = arith.constant 27 : i32
    %225 = arith.addi %0, %c27_i32_144 : i32
    %c1_i32_145 = arith.constant 1 : i32
    %226 = arith.addi %225, %c1_i32_145 : i32
    %227 = arith.index_cast %226 : i32 to index
    %228 = memref.load %arg1[%227] : memref<144xi32, #tpu.memory_space<smem>>
    %229 = arith.index_cast %228 : i32 to index
    %c0_146 = arith.constant 0 : index
    %c0_147 = arith.constant 0 : index
    %230 = vector.load %arg2[%229, %c0_146, %c0_147] : memref<33x2x8xf32, #tpu.memory_space<vmem>>, vector<1x2x8xf32>
    %231 = vector.shape_cast %230 : vector<1x2x8xf32> to vector<2x8xf32>
    %c6_148 = arith.constant 6 : index
    %c8_149 = arith.constant 8 : index
    %232 = vector.load %arg6[%c6_148, %c8_149] : memref<32x72xf32, #tpu.memory_space<vmem>>, vector<2x8xf32>
    tpu.vector_store %arg6[%c6_148, %c8_149], %231 {strides = array<i32>} : memref<32x72xf32, #tpu.memory_space<vmem>>, vector<2x8xf32>,
    %c27_i32_150 = arith.constant 27 : i32
    %233 = arith.addi %0, %c27_i32_150 : i32
    %c2_i32_151 = arith.constant 2 : i32
    %234 = arith.addi %233, %c2_i32_151 : i32
    %235 = arith.index_cast %234 : i32 to index
    %236 = memref.load %arg1[%235] : memref<144xi32, #tpu.memory_space<smem>>
    %237 = arith.index_cast %236 : i32 to index
    %c0_152 = arith.constant 0 : index
    %c0_153 = arith.constant 0 : index
    %238 = vector.load %arg2[%237, %c0_152, %c0_153] : memref<33x2x8xf32, #tpu.memory_space<vmem>>, vector<1x2x8xf32>
    %239 = vector.shape_cast %238 : vector<1x2x8xf32> to vector<2x8xf32>
    %c6_154 = arith.constant 6 : index
    %c16_155 = arith.constant 16 : index
    %240 = vector.load %arg6[%c6_154, %c16_155] : memref<32x72xf32, #tpu.memory_space<vmem>>, vector<2x8xf32>
    tpu.vector_store %arg6[%c6_154, %c16_155], %239 {strides = array<i32>} : memref<32x72xf32, #tpu.memory_space<vmem>>, vector<2x8xf32>,
    %c27_i32_156 = arith.constant 27 : i32
    %241 = arith.addi %0, %c27_i32_156 : i32
    %c3_i32_157 = arith.constant 3 : i32
    %242 = arith.addi %241, %c3_i32_157 : i32
    %243 = arith.index_cast %242 : i32 to index
    %244 = memref.load %arg1[%243] : memref<144xi32, #tpu.memory_space<smem>>
    %245 = arith.index_cast %244 : i32 to index
    %c0_158 = arith.constant 0 : index
    %c0_159 = arith.constant 0 : index
    %246 = vector.load %arg2[%245, %c0_158, %c0_159] : memref<33x2x8xf32, #tpu.memory_space<vmem>>, vector<1x2x8xf32>
    %247 = vector.shape_cast %246 : vector<1x2x8xf32> to vector<2x8xf32>
    %c6_160 = arith.constant 6 : index
    %c24_161 = arith.constant 24 : index
    %248 = vector.load %arg6[%c6_160, %c24_161] : memref<32x72xf32, #tpu.memory_space<vmem>>, vector<2x8xf32>
    tpu.vector_store %arg6[%c6_160, %c24_161], %247 {strides = array<i32>} : memref<32x72xf32, #tpu.memory_space<vmem>>, vector<2x8xf32>,
    %c27_i32_162 = arith.constant 27 : i32
    %249 = arith.addi %0, %c27_i32_162 : i32
    %c4_i32_163 = arith.constant 4 : i32
    %250 = arith.addi %249, %c4_i32_163 : i32
    %251 = arith.index_cast %250 : i32 to index
    %252 = memref.load %arg1[%251] : memref<144xi32, #tpu.memory_space<smem>>
    %253 = arith.index_cast %252 : i32 to index
    %c0_164 = arith.constant 0 : index
    %c0_165 = arith.constant 0 : index
    %254 = vector.load %arg2[%253, %c0_164, %c0_165] : memref<33x2x8xf32, #tpu.memory_space<vmem>>, vector<1x2x8xf32>
    %255 = vector.shape_cast %254 : vector<1x2x8xf32> to vector<2x8xf32>
    %c6_166 = arith.constant 6 : index
    %c32_167 = arith.constant 32 : index
    %256 = vector.load %arg6[%c6_166, %c32_167] : memref<32x72xf32, #tpu.memory_space<vmem>>, vector<2x8xf32>
    tpu.vector_store %arg6[%c6_166, %c32_167], %255 {strides = array<i32>} : memref<32x72xf32, #tpu.memory_space<vmem>>, vector<2x8xf32>,
    %c27_i32_168 = arith.constant 27 : i32
    %257 = arith.addi %0, %c27_i32_168 : i32
    %c5_i32_169 = arith.constant 5 : i32
    %258 = arith.addi %257, %c5_i32_169 : i32
    %259 = arith.index_cast %258 : i32 to index
    %260 = memref.load %arg1[%259] : memref<144xi32, #tpu.memory_space<smem>>
    %261 = arith.index_cast %260 : i32 to index
    %c0_170 = arith.constant 0 : index
    %c0_171 = arith.constant 0 : index
    %262 = vector.load %arg2[%261, %c0_170, %c0_171] : memref<33x2x8xf32, #tpu.memory_space<vmem>>, vector<1x2x8xf32>
    %263 = vector.shape_cast %262 : vector<1x2x8xf32> to vector<2x8xf32>
    %c6_172 = arith.constant 6 : index
    %c40_173 = arith.constant 40 : index
    %264 = vector.load %arg6[%c6_172, %c40_173] : memref<32x72xf32, #tpu.memory_space<vmem>>, vector<2x8xf32>
    tpu.vector_store %arg6[%c6_172, %c40_173], %263 {strides = array<i32>} : memref<32x72xf32, #tpu.memory_space<vmem>>, vector<2x8xf32>,
    %c27_i32_174 = arith.constant 27 : i32
    %265 = arith.addi %0, %c27_i32_174 : i32
    %c6_i32_175 = arith.constant 6 : i32
    %266 = arith.addi %265, %c6_i32_175 : i32
    %267 = arith.index_cast %266 : i32 to index
    %268 = memref.load %arg1[%267] : memref<144xi32, #tpu.memory_space<smem>>
    %269 = arith.index_cast %268 : i32 to index
    %c0_176 = arith.constant 0 : index
    %c0_177 = arith.constant 0 : index
    %270 = vector.load %arg2[%269, %c0_176, %c0_177] : memref<33x2x8xf32, #tpu.memory_space<vmem>>, vector<1x2x8xf32>
    %271 = vector.shape_cast %270 : vector<1x2x8xf32> to vector<2x8xf32>
    %c6_178 = arith.constant 6 : index
    %c48_179 = arith.constant 48 : index
    %272 = vector.load %arg6[%c6_178, %c48_179] : memref<32x72xf32, #tpu.memory_space<vmem>>, vector<2x8xf32>
    tpu.vector_store %arg6[%c6_178, %c48_179], %271 {strides = array<i32>} : memref<32x72xf32, #tpu.memory_space<vmem>>, vector<2x8xf32>,
    %c27_i32_180 = arith.constant 27 : i32
    %273 = arith.addi %0, %c27_i32_180 : i32
    %c7_i32_181 = arith.constant 7 : i32
    %274 = arith.addi %273, %c7_i32_181 : i32
    %275 = arith.index_cast %274 : i32 to index
    %276 = memref.load %arg1[%275] : memref<144xi32, #tpu.memory_space<smem>>
    %277 = arith.index_cast %276 : i32 to index
    %c0_182 = arith.constant 0 : index
    %c0_183 = arith.constant 0 : index
    %278 = vector.load %arg2[%277, %c0_182, %c0_183] : memref<33x2x8xf32, #tpu.memory_space<vmem>>, vector<1x2x8xf32>
    %279 = vector.shape_cast %278 : vector<1x2x8xf32> to vector<2x8xf32>
    %c6_184 = arith.constant 6 : index
    %c56_185 = arith.constant 56 : index
    %280 = vector.load %arg6[%c6_184, %c56_185] : memref<32x72xf32, #tpu.memory_space<vmem>>, vector<2x8xf32>
    tpu.vector_store %arg6[%c6_184, %c56_185], %279 {strides = array<i32>} : memref<32x72xf32, #tpu.memory_space<vmem>>, vector<2x8xf32>,
    %c27_i32_186 = arith.constant 27 : i32
    %281 = arith.addi %0, %c27_i32_186 : i32
    %c8_i32_187 = arith.constant 8 : i32
    %282 = arith.addi %281, %c8_i32_187 : i32
    %283 = arith.index_cast %282 : i32 to index
    %284 = memref.load %arg1[%283] : memref<144xi32, #tpu.memory_space<smem>>
    %285 = arith.index_cast %284 : i32 to index
    %c0_188 = arith.constant 0 : index
    %c0_189 = arith.constant 0 : index
    %286 = vector.load %arg2[%285, %c0_188, %c0_189] : memref<33x2x8xf32, #tpu.memory_space<vmem>>, vector<1x2x8xf32>
    %287 = vector.shape_cast %286 : vector<1x2x8xf32> to vector<2x8xf32>
    %c6_190 = arith.constant 6 : index
    %c64_191 = arith.constant 64 : index
    %288 = vector.load %arg6[%c6_190, %c64_191] : memref<32x72xf32, #tpu.memory_space<vmem>>, vector<2x8xf32>
    tpu.vector_store %arg6[%c6_190, %c64_191], %287 {strides = array<i32>} : memref<32x72xf32, #tpu.memory_space<vmem>>, vector<2x8xf32>,
    %c36_i32 = arith.constant 36 : i32
    %289 = arith.addi %0, %c36_i32 : i32
    %c0_i32_192 = arith.constant 0 : i32
    %290 = arith.addi %289, %c0_i32_192 : i32
    %291 = arith.index_cast %290 : i32 to index
    %292 = memref.load %arg1[%291] : memref<144xi32, #tpu.memory_space<smem>>
    %293 = arith.index_cast %292 : i32 to index
    %c0_193 = arith.constant 0 : index
    %c0_194 = arith.constant 0 : index
    %294 = vector.load %arg2[%293, %c0_193, %c0_194] : memref<33x2x8xf32, #tpu.memory_space<vmem>>, vector<1x2x8xf32>
    %295 = vector.shape_cast %294 : vector<1x2x8xf32> to vector<2x8xf32>
    %c8_195 = arith.constant 8 : index
    %c0_196 = arith.constant 0 : index
    %296 = vector.load %arg6[%c8_195, %c0_196] : memref<32x72xf32, #tpu.memory_space<vmem>>, vector<2x8xf32>
    tpu.vector_store %arg6[%c8_195, %c0_196], %295 {strides = array<i32>} : memref<32x72xf32, #tpu.memory_space<vmem>>, vector<2x8xf32>,
    %c36_i32_197 = arith.constant 36 : i32
    %297 = arith.addi %0, %c36_i32_197 : i32
    %c1_i32_198 = arith.constant 1 : i32
    %298 = arith.addi %297, %c1_i32_198 : i32
    %299 = arith.index_cast %298 : i32 to index
    %300 = memref.load %arg1[%299] : memref<144xi32, #tpu.memory_space<smem>>
    %301 = arith.index_cast %300 : i32 to index
    %c0_199 = arith.constant 0 : index
    %c0_200 = arith.constant 0 : index
    %302 = vector.load %arg2[%301, %c0_199, %c0_200] : memref<33x2x8xf32, #tpu.memory_space<vmem>>, vector<1x2x8xf32>
    %303 = vector.shape_cast %302 : vector<1x2x8xf32> to vector<2x8xf32>
    %c8_201 = arith.constant 8 : index
    %c8_202 = arith.constant 8 : index
    %304 = vector.load %arg6[%c8_201, %c8_202] : memref<32x72xf32, #tpu.memory_space<vmem>>, vector<2x8xf32>
    tpu.vector_store %arg6[%c8_201, %c8_202], %303 {strides = array<i32>} : memref<32x72xf32, #tpu.memory_space<vmem>>, vector<2x8xf32>,
    %c36_i32_203 = arith.constant 36 : i32
    %305 = arith.addi %0, %c36_i32_203 : i32
    %c2_i32_204 = arith.constant 2 : i32
    %306 = arith.addi %305, %c2_i32_204 : i32
    %307 = arith.index_cast %306 : i32 to index
    %308 = memref.load %arg1[%307] : memref<144xi32, #tpu.memory_space<smem>>
    %309 = arith.index_cast %308 : i32 to index
    %c0_205 = arith.constant 0 : index
    %c0_206 = arith.constant 0 : index
    %310 = vector.load %arg2[%309, %c0_205, %c0_206] : memref<33x2x8xf32, #tpu.memory_space<vmem>>, vector<1x2x8xf32>
    %311 = vector.shape_cast %310 : vector<1x2x8xf32> to vector<2x8xf32>
    %c8_207 = arith.constant 8 : index
    %c16_208 = arith.constant 16 : index
    %312 = vector.load %arg6[%c8_207, %c16_208] : memref<32x72xf32, #tpu.memory_space<vmem>>, vector<2x8xf32>
    tpu.vector_store %arg6[%c8_207, %c16_208], %311 {strides = array<i32>} : memref<32x72xf32, #tpu.memory_space<vmem>>, vector<2x8xf32>,
    %c36_i32_209 = arith.constant 36 : i32
    %313 = arith.addi %0, %c36_i32_209 : i32
    %c3_i32_210 = arith.constant 3 : i32
    %314 = arith.addi %313, %c3_i32_210 : i32
    %315 = arith.index_cast %314 : i32 to index
    %316 = memref.load %arg1[%315] : memref<144xi32, #tpu.memory_space<smem>>
    %317 = arith.index_cast %316 : i32 to index
    %c0_211 = arith.constant 0 : index
    %c0_212 = arith.constant 0 : index
    %318 = vector.load %arg2[%317, %c0_211, %c0_212] : memref<33x2x8xf32, #tpu.memory_space<vmem>>, vector<1x2x8xf32>
    %319 = vector.shape_cast %318 : vector<1x2x8xf32> to vector<2x8xf32>
    %c8_213 = arith.constant 8 : index
    %c24_214 = arith.constant 24 : index
    %320 = vector.load %arg6[%c8_213, %c24_214] : memref<32x72xf32, #tpu.memory_space<vmem>>, vector<2x8xf32>
    tpu.vector_store %arg6[%c8_213, %c24_214], %319 {strides = array<i32>} : memref<32x72xf32, #tpu.memory_space<vmem>>, vector<2x8xf32>,
    %c36_i32_215 = arith.constant 36 : i32
    %321 = arith.addi %0, %c36_i32_215 : i32
    %c4_i32_216 = arith.constant 4 : i32
    %322 = arith.addi %321, %c4_i32_216 : i32
    %323 = arith.index_cast %322 : i32 to index
    %324 = memref.load %arg1[%323] : memref<144xi32, #tpu.memory_space<smem>>
    %325 = arith.index_cast %324 : i32 to index
    %c0_217 = arith.constant 0 : index
    %c0_218 = arith.constant 0 : index
    %326 = vector.load %arg2[%325, %c0_217, %c0_218] : memref<33x2x8xf32, #tpu.memory_space<vmem>>, vector<1x2x8xf32>
    %327 = vector.shape_cast %326 : vector<1x2x8xf32> to vector<2x8xf32>
    %c8_219 = arith.constant 8 : index
    %c32_220 = arith.constant 32 : index
    %328 = vector.load %arg6[%c8_219, %c32_220] : memref<32x72xf32, #tpu.memory_space<vmem>>, vector<2x8xf32>
    tpu.vector_store %arg6[%c8_219, %c32_220], %327 {strides = array<i32>} : memref<32x72xf32, #tpu.memory_space<vmem>>, vector<2x8xf32>,
    %c36_i32_221 = arith.constant 36 : i32
    %329 = arith.addi %0, %c36_i32_221 : i32
    %c5_i32_222 = arith.constant 5 : i32
    %330 = arith.addi %329, %c5_i32_222 : i32
    %331 = arith.index_cast %330 : i32 to index
    %332 = memref.load %arg1[%331] : memref<144xi32, #tpu.memory_space<smem>>
    %333 = arith.index_cast %332 : i32 to index
    %c0_223 = arith.constant 0 : index
    %c0_224 = arith.constant 0 : index
    %334 = vector.load %arg2[%333, %c0_223, %c0_224] : memref<33x2x8xf32, #tpu.memory_space<vmem>>, vector<1x2x8xf32>
    %335 = vector.shape_cast %334 : vector<1x2x8xf32> to vector<2x8xf32>
    %c8_225 = arith.constant 8 : index
    %c40_226 = arith.constant 40 : index
    %336 = vector.load %arg6[%c8_225, %c40_226] : memref<32x72xf32, #tpu.memory_space<vmem>>, vector<2x8xf32>
    tpu.vector_store %arg6[%c8_225, %c40_226], %335 {strides = array<i32>} : memref<32x72xf32, #tpu.memory_space<vmem>>, vector<2x8xf32>,
    %c36_i32_227 = arith.constant 36 : i32
    %337 = arith.addi %0, %c36_i32_227 : i32
    %c6_i32_228 = arith.constant 6 : i32
    %338 = arith.addi %337, %c6_i32_228 : i32
    %339 = arith.index_cast %338 : i32 to index
    %340 = memref.load %arg1[%339] : memref<144xi32, #tpu.memory_space<smem>>
    %341 = arith.index_cast %340 : i32 to index
    %c0_229 = arith.constant 0 : index
    %c0_230 = arith.constant 0 : index
    %342 = vector.load %arg2[%341, %c0_229, %c0_230] : memref<33x2x8xf32, #tpu.memory_space<vmem>>, vector<1x2x8xf32>
    %343 = vector.shape_cast %342 : vector<1x2x8xf32> to vector<2x8xf32>
    %c8_231 = arith.constant 8 : index
    %c48_232 = arith.constant 48 : index
    %344 = vector.load %arg6[%c8_231, %c48_232] : memref<32x72xf32, #tpu.memory_space<vmem>>, vector<2x8xf32>
    tpu.vector_store %arg6[%c8_231, %c48_232], %343 {strides = array<i32>} : memref<32x72xf32, #tpu.memory_space<vmem>>, vector<2x8xf32>,
    %c36_i32_233 = arith.constant 36 : i32
    %345 = arith.addi %0, %c36_i32_233 : i32
    %c7_i32_234 = arith.constant 7 : i32
    %346 = arith.addi %345, %c7_i32_234 : i32
    %347 = arith.index_cast %346 : i32 to index
    %348 = memref.load %arg1[%347] : memref<144xi32, #tpu.memory_space<smem>>
    %349 = arith.index_cast %348 : i32 to index
    %c0_235 = arith.constant 0 : index
    %c0_236 = arith.constant 0 : index
    %350 = vector.load %arg2[%349, %c0_235, %c0_236] : memref<33x2x8xf32, #tpu.memory_space<vmem>>, vector<1x2x8xf32>
    %351 = vector.shape_cast %350 : vector<1x2x8xf32> to vector<2x8xf32>
    %c8_237 = arith.constant 8 : index
    %c56_238 = arith.constant 56 : index
    %352 = vector.load %arg6[%c8_237, %c56_238] : memref<32x72xf32, #tpu.memory_space<vmem>>, vector<2x8xf32>
    tpu.vector_store %arg6[%c8_237, %c56_238], %351 {strides = array<i32>} : memref<32x72xf32, #tpu.memory_space<vmem>>, vector<2x8xf32>,
    %c36_i32_239 = arith.constant 36 : i32
    %353 = arith.addi %0, %c36_i32_239 : i32
    %c8_i32_240 = arith.constant 8 : i32
    %354 = arith.addi %353, %c8_i32_240 : i32
    %355 = arith.index_cast %354 : i32 to index
    %356 = memref.load %arg1[%355] : memref<144xi32, #tpu.memory_space<smem>>
    %357 = arith.index_cast %356 : i32 to index
    %c0_241 = arith.constant 0 : index
    %c0_242 = arith.constant 0 : index
    %358 = vector.load %arg2[%357, %c0_241, %c0_242] : memref<33x2x8xf32, #tpu.memory_space<vmem>>, vector<1x2x8xf32>
    %359 = vector.shape_cast %358 : vector<1x2x8xf32> to vector<2x8xf32>
    %c8_243 = arith.constant 8 : index
    %c64_244 = arith.constant 64 : index
    %360 = vector.load %arg6[%c8_243, %c64_244] : memref<32x72xf32, #tpu.memory_space<vmem>>, vector<2x8xf32>
    tpu.vector_store %arg6[%c8_243, %c64_244], %359 {strides = array<i32>} : memref<32x72xf32, #tpu.memory_space<vmem>>, vector<2x8xf32>,
    %c45_i32 = arith.constant 45 : i32
    %361 = arith.addi %0, %c45_i32 : i32
    %c0_i32_245 = arith.constant 0 : i32
    %362 = arith.addi %361, %c0_i32_245 : i32
    %363 = arith.index_cast %362 : i32 to index
    %364 = memref.load %arg1[%363] : memref<144xi32, #tpu.memory_space<smem>>
    %365 = arith.index_cast %364 : i32 to index
    %c0_246 = arith.constant 0 : index
    %c0_247 = arith.constant 0 : index
    %366 = vector.load %arg2[%365, %c0_246, %c0_247] : memref<33x2x8xf32, #tpu.memory_space<vmem>>, vector<1x2x8xf32>
    %367 = vector.shape_cast %366 : vector<1x2x8xf32> to vector<2x8xf32>
    %c10 = arith.constant 10 : index
    %c0_248 = arith.constant 0 : index
    %368 = vector.load %arg6[%c10, %c0_248] : memref<32x72xf32, #tpu.memory_space<vmem>>, vector<2x8xf32>
    tpu.vector_store %arg6[%c10, %c0_248], %367 {strides = array<i32>} : memref<32x72xf32, #tpu.memory_space<vmem>>, vector<2x8xf32>,
    %c45_i32_249 = arith.constant 45 : i32
    %369 = arith.addi %0, %c45_i32_249 : i32
    %c1_i32_250 = arith.constant 1 : i32
    %370 = arith.addi %369, %c1_i32_250 : i32
    %371 = arith.index_cast %370 : i32 to index
    %372 = memref.load %arg1[%371] : memref<144xi32, #tpu.memory_space<smem>>
    %373 = arith.index_cast %372 : i32 to index
    %c0_251 = arith.constant 0 : index
    %c0_252 = arith.constant 0 : index
    %374 = vector.load %arg2[%373, %c0_251, %c0_252] : memref<33x2x8xf32, #tpu.memory_space<vmem>>, vector<1x2x8xf32>
    %375 = vector.shape_cast %374 : vector<1x2x8xf32> to vector<2x8xf32>
    %c10_253 = arith.constant 10 : index
    %c8_254 = arith.constant 8 : index
    %376 = vector.load %arg6[%c10_253, %c8_254] : memref<32x72xf32, #tpu.memory_space<vmem>>, vector<2x8xf32>
    tpu.vector_store %arg6[%c10_253, %c8_254], %375 {strides = array<i32>} : memref<32x72xf32, #tpu.memory_space<vmem>>, vector<2x8xf32>,
    %c45_i32_255 = arith.constant 45 : i32
    %377 = arith.addi %0, %c45_i32_255 : i32
    %c2_i32_256 = arith.constant 2 : i32
    %378 = arith.addi %377, %c2_i32_256 : i32
    %379 = arith.index_cast %378 : i32 to index
    %380 = memref.load %arg1[%379] : memref<144xi32, #tpu.memory_space<smem>>
    %381 = arith.index_cast %380 : i32 to index
    %c0_257 = arith.constant 0 : index
    %c0_258 = arith.constant 0 : index
    %382 = vector.load %arg2[%381, %c0_257, %c0_258] : memref<33x2x8xf32, #tpu.memory_space<vmem>>, vector<1x2x8xf32>
    %383 = vector.shape_cast %382 : vector<1x2x8xf32> to vector<2x8xf32>
    %c10_259 = arith.constant 10 : index
    %c16_260 = arith.constant 16 : index
    %384 = vector.load %arg6[%c10_259, %c16_260] : memref<32x72xf32, #tpu.memory_space<vmem>>, vector<2x8xf32>
    tpu.vector_store %arg6[%c10_259, %c16_260], %383 {strides = array<i32>} : memref<32x72xf32, #tpu.memory_space<vmem>>, vector<2x8xf32>,
    %c45_i32_261 = arith.constant 45 : i32
    %385 = arith.addi %0, %c45_i32_261 : i32
    %c3_i32_262 = arith.constant 3 : i32
    %386 = arith.addi %385, %c3_i32_262 : i32
    %387 = arith.index_cast %386 : i32 to index
    %388 = memref.load %arg1[%387] : memref<144xi32, #tpu.memory_space<smem>>
    %389 = arith.index_cast %388 : i32 to index
    %c0_263 = arith.constant 0 : index
    %c0_264 = arith.constant 0 : index
    %390 = vector.load %arg2[%389, %c0_263, %c0_264] : memref<33x2x8xf32, #tpu.memory_space<vmem>>, vector<1x2x8xf32>
    %391 = vector.shape_cast %390 : vector<1x2x8xf32> to vector<2x8xf32>
    %c10_265 = arith.constant 10 : index
    %c24_266 = arith.constant 24 : index
    %392 = vector.load %arg6[%c10_265, %c24_266] : memref<32x72xf32, #tpu.memory_space<vmem>>, vector<2x8xf32>
    tpu.vector_store %arg6[%c10_265, %c24_266], %391 {strides = array<i32>} : memref<32x72xf32, #tpu.memory_space<vmem>>, vector<2x8xf32>,
    %c45_i32_267 = arith.constant 45 : i32
    %393 = arith.addi %0, %c45_i32_267 : i32
    %c4_i32_268 = arith.constant 4 : i32
    %394 = arith.addi %393, %c4_i32_268 : i32
    %395 = arith.index_cast %394 : i32 to index
    %396 = memref.load %arg1[%395] : memref<144xi32, #tpu.memory_space<smem>>
    %397 = arith.index_cast %396 : i32 to index
    %c0_269 = arith.constant 0 : index
    %c0_270 = arith.constant 0 : index
    %398 = vector.load %arg2[%397, %c0_269, %c0_270] : memref<33x2x8xf32, #tpu.memory_space<vmem>>, vector<1x2x8xf32>
    %399 = vector.shape_cast %398 : vector<1x2x8xf32> to vector<2x8xf32>
    %c10_271 = arith.constant 10 : index
    %c32_272 = arith.constant 32 : index
    %400 = vector.load %arg6[%c10_271, %c32_272] : memref<32x72xf32, #tpu.memory_space<vmem>>, vector<2x8xf32>
    tpu.vector_store %arg6[%c10_271, %c32_272], %399 {strides = array<i32>} : memref<32x72xf32, #tpu.memory_space<vmem>>, vector<2x8xf32>,
    %c45_i32_273 = arith.constant 45 : i32
    %401 = arith.addi %0, %c45_i32_273 : i32
    %c5_i32_274 = arith.constant 5 : i32
    %402 = arith.addi %401, %c5_i32_274 : i32
    %403 = arith.index_cast %402 : i32 to index
    %404 = memref.load %arg1[%403] : memref<144xi32, #tpu.memory_space<smem>>
    %405 = arith.index_cast %404 : i32 to index
    %c0_275 = arith.constant 0 : index
    %c0_276 = arith.constant 0 : index
    %406 = vector.load %arg2[%405, %c0_275, %c0_276] : memref<33x2x8xf32, #tpu.memory_space<vmem>>, vector<1x2x8xf32>
    %407 = vector.shape_cast %406 : vector<1x2x8xf32> to vector<2x8xf32>
    %c10_277 = arith.constant 10 : index
    %c40_278 = arith.constant 40 : index
    %408 = vector.load %arg6[%c10_277, %c40_278] : memref<32x72xf32, #tpu.memory_space<vmem>>, vector<2x8xf32>
    tpu.vector_store %arg6[%c10_277, %c40_278], %407 {strides = array<i32>} : memref<32x72xf32, #tpu.memory_space<vmem>>, vector<2x8xf32>,
    %c45_i32_279 = arith.constant 45 : i32
    %409 = arith.addi %0, %c45_i32_279 : i32
    %c6_i32_280 = arith.constant 6 : i32
    %410 = arith.addi %409, %c6_i32_280 : i32
    %411 = arith.index_cast %410 : i32 to index
    %412 = memref.load %arg1[%411] : memref<144xi32, #tpu.memory_space<smem>>
    %413 = arith.index_cast %412 : i32 to index
    %c0_281 = arith.constant 0 : index
    %c0_282 = arith.constant 0 : index
    %414 = vector.load %arg2[%413, %c0_281, %c0_282] : memref<33x2x8xf32, #tpu.memory_space<vmem>>, vector<1x2x8xf32>
    %415 = vector.shape_cast %414 : vector<1x2x8xf32> to vector<2x8xf32>
    %c10_283 = arith.constant 10 : index
    %c48_284 = arith.constant 48 : index
    %416 = vector.load %arg6[%c10_283, %c48_284] : memref<32x72xf32, #tpu.memory_space<vmem>>, vector<2x8xf32>
    tpu.vector_store %arg6[%c10_283, %c48_284], %415 {strides = array<i32>} : memref<32x72xf32, #tpu.memory_space<vmem>>, vector<2x8xf32>,
    %c45_i32_285 = arith.constant 45 : i32
    %417 = arith.addi %0, %c45_i32_285 : i32
    %c7_i32_286 = arith.constant 7 : i32
    %418 = arith.addi %417, %c7_i32_286 : i32
    %419 = arith.index_cast %418 : i32 to index
    %420 = memref.load %arg1[%419] : memref<144xi32, #tpu.memory_space<smem>>
    %421 = arith.index_cast %420 : i32 to index
    %c0_287 = arith.constant 0 : index
    %c0_288 = arith.constant 0 : index
    %422 = vector.load %arg2[%421, %c0_287, %c0_288] : memref<33x2x8xf32, #tpu.memory_space<vmem>>, vector<1x2x8xf32>
    %423 = vector.shape_cast %422 : vector<1x2x8xf32> to vector<2x8xf32>
    %c10_289 = arith.constant 10 : index
    %c56_290 = arith.constant 56 : index
    %424 = vector.load %arg6[%c10_289, %c56_290] : memref<32x72xf32, #tpu.memory_space<vmem>>, vector<2x8xf32>
    tpu.vector_store %arg6[%c10_289, %c56_290], %423 {strides = array<i32>} : memref<32x72xf32, #tpu.memory_space<vmem>>, vector<2x8xf32>,
    %c45_i32_291 = arith.constant 45 : i32
    %425 = arith.addi %0, %c45_i32_291 : i32
    %c8_i32_292 = arith.constant 8 : i32
    %426 = arith.addi %425, %c8_i32_292 : i32
    %427 = arith.index_cast %426 : i32 to index
    %428 = memref.load %arg1[%427] : memref<144xi32, #tpu.memory_space<smem>>
    %429 = arith.index_cast %428 : i32 to index
    %c0_293 = arith.constant 0 : index
    %c0_294 = arith.constant 0 : index
    %430 = vector.load %arg2[%429, %c0_293, %c0_294] : memref<33x2x8xf32, #tpu.memory_space<vmem>>, vector<1x2x8xf32>
    %431 = vector.shape_cast %430 : vector<1x2x8xf32> to vector<2x8xf32>
    %c10_295 = arith.constant 10 : index
    %c64_296 = arith.constant 64 : index
    %432 = vector.load %arg6[%c10_295, %c64_296] : memref<32x72xf32, #tpu.memory_space<vmem>>, vector<2x8xf32>
    tpu.vector_store %arg6[%c10_295, %c64_296], %431 {strides = array<i32>} : memref<32x72xf32, #tpu.memory_space<vmem>>, vector<2x8xf32>,
    %c54_i32 = arith.constant 54 : i32
    %433 = arith.addi %0, %c54_i32 : i32
    %c0_i32_297 = arith.constant 0 : i32
    %434 = arith.addi %433, %c0_i32_297 : i32
    %435 = arith.index_cast %434 : i32 to index
    %436 = memref.load %arg1[%435] : memref<144xi32, #tpu.memory_space<smem>>
    %437 = arith.index_cast %436 : i32 to index
    %c0_298 = arith.constant 0 : index
    %c0_299 = arith.constant 0 : index
    %438 = vector.load %arg2[%437, %c0_298, %c0_299] : memref<33x2x8xf32, #tpu.memory_space<vmem>>, vector<1x2x8xf32>
    %439 = vector.shape_cast %438 : vector<1x2x8xf32> to vector<2x8xf32>
    %c12 = arith.constant 12 : index
    %c0_300 = arith.constant 0 : index
    %440 = vector.load %arg6[%c12, %c0_300] : memref<32x72xf32, #tpu.memory_space<vmem>>, vector<2x8xf32>
    tpu.vector_store %arg6[%c12, %c0_300], %439 {strides = array<i32>} : memref<32x72xf32, #tpu.memory_space<vmem>>, vector<2x8xf32>,
    %c54_i32_301 = arith.constant 54 : i32
    %441 = arith.addi %0, %c54_i32_301 : i32
    %c1_i32_302 = arith.constant 1 : i32
    %442 = arith.addi %441, %c1_i32_302 : i32
    %443 = arith.index_cast %442 : i32 to index
    %444 = memref.load %arg1[%443] : memref<144xi32, #tpu.memory_space<smem>>
    %445 = arith.index_cast %444 : i32 to index
    %c0_303 = arith.constant 0 : index
    %c0_304 = arith.constant 0 : index
    %446 = vector.load %arg2[%445, %c0_303, %c0_304] : memref<33x2x8xf32, #tpu.memory_space<vmem>>, vector<1x2x8xf32>
    %447 = vector.shape_cast %446 : vector<1x2x8xf32> to vector<2x8xf32>
    %c12_305 = arith.constant 12 : index
    %c8_306 = arith.constant 8 : index
    %448 = vector.load %arg6[%c12_305, %c8_306] : memref<32x72xf32, #tpu.memory_space<vmem>>, vector<2x8xf32>
    tpu.vector_store %arg6[%c12_305, %c8_306], %447 {strides = array<i32>} : memref<32x72xf32, #tpu.memory_space<vmem>>, vector<2x8xf32>,
    %c54_i32_307 = arith.constant 54 : i32
    %449 = arith.addi %0, %c54_i32_307 : i32
    %c2_i32_308 = arith.constant 2 : i32
    %450 = arith.addi %449, %c2_i32_308 : i32
    %451 = arith.index_cast %450 : i32 to index
    %452 = memref.load %arg1[%451] : memref<144xi32, #tpu.memory_space<smem>>
    %453 = arith.index_cast %452 : i32 to index
    %c0_309 = arith.constant 0 : index
    %c0_310 = arith.constant 0 : index
    %454 = vector.load %arg2[%453, %c0_309, %c0_310] : memref<33x2x8xf32, #tpu.memory_space<vmem>>, vector<1x2x8xf32>
    %455 = vector.shape_cast %454 : vector<1x2x8xf32> to vector<2x8xf32>
    %c12_311 = arith.constant 12 : index
    %c16_312 = arith.constant 16 : index
    %456 = vector.load %arg6[%c12_311, %c16_312] : memref<32x72xf32, #tpu.memory_space<vmem>>, vector<2x8xf32>
    tpu.vector_store %arg6[%c12_311, %c16_312], %455 {strides = array<i32>} : memref<32x72xf32, #tpu.memory_space<vmem>>, vector<2x8xf32>,
    %c54_i32_313 = arith.constant 54 : i32
    %457 = arith.addi %0, %c54_i32_313 : i32
    %c3_i32_314 = arith.constant 3 : i32
    %458 = arith.addi %457, %c3_i32_314 : i32
    %459 = arith.index_cast %458 : i32 to index
    %460 = memref.load %arg1[%459] : memref<144xi32, #tpu.memory_space<smem>>
    %461 = arith.index_cast %460 : i32 to index
    %c0_315 = arith.constant 0 : index
    %c0_316 = arith.constant 0 : index
    %462 = vector.load %arg2[%461, %c0_315, %c0_316] : memref<33x2x8xf32, #tpu.memory_space<vmem>>, vector<1x2x8xf32>
    %463 = vector.shape_cast %462 : vector<1x2x8xf32> to vector<2x8xf32>
    %c12_317 = arith.constant 12 : index
    %c24_318 = arith.constant 24 : index
    %464 = vector.load %arg6[%c12_317, %c24_318] : memref<32x72xf32, #tpu.memory_space<vmem>>, vector<2x8xf32>
    tpu.vector_store %arg6[%c12_317, %c24_318], %463 {strides = array<i32>} : memref<32x72xf32, #tpu.memory_space<vmem>>, vector<2x8xf32>,
    %c54_i32_319 = arith.constant 54 : i32
    %465 = arith.addi %0, %c54_i32_319 : i32
    %c4_i32_320 = arith.constant 4 : i32
    %466 = arith.addi %465, %c4_i32_320 : i32
    %467 = arith.index_cast %466 : i32 to index
    %468 = memref.load %arg1[%467] : memref<144xi32, #tpu.memory_space<smem>>
    %469 = arith.index_cast %468 : i32 to index
    %c0_321 = arith.constant 0 : index
    %c0_322 = arith.constant 0 : index
    %470 = vector.load %arg2[%469, %c0_321, %c0_322] : memref<33x2x8xf32, #tpu.memory_space<vmem>>, vector<1x2x8xf32>
    %471 = vector.shape_cast %470 : vector<1x2x8xf32> to vector<2x8xf32>
    %c12_323 = arith.constant 12 : index
    %c32_324 = arith.constant 32 : index
    %472 = vector.load %arg6[%c12_323, %c32_324] : memref<32x72xf32, #tpu.memory_space<vmem>>, vector<2x8xf32>
    tpu.vector_store %arg6[%c12_323, %c32_324], %471 {strides = array<i32>} : memref<32x72xf32, #tpu.memory_space<vmem>>, vector<2x8xf32>,
    %c54_i32_325 = arith.constant 54 : i32
    %473 = arith.addi %0, %c54_i32_325 : i32
    %c5_i32_326 = arith.constant 5 : i32
    %474 = arith.addi %473, %c5_i32_326 : i32
    %475 = arith.index_cast %474 : i32 to index
    %476 = memref.load %arg1[%475] : memref<144xi32, #tpu.memory_space<smem>>
    %477 = arith.index_cast %476 : i32 to index
    %c0_327 = arith.constant 0 : index
    %c0_328 = arith.constant 0 : index
    %478 = vector.load %arg2[%477, %c0_327, %c0_328] : memref<33x2x8xf32, #tpu.memory_space<vmem>>, vector<1x2x8xf32>
    %479 = vector.shape_cast %478 : vector<1x2x8xf32> to vector<2x8xf32>
    %c12_329 = arith.constant 12 : index
    %c40_330 = arith.constant 40 : index
    %480 = vector.load %arg6[%c12_329, %c40_330] : memref<32x72xf32, #tpu.memory_space<vmem>>, vector<2x8xf32>
    tpu.vector_store %arg6[%c12_329, %c40_330], %479 {strides = array<i32>} : memref<32x72xf32, #tpu.memory_space<vmem>>, vector<2x8xf32>,
    %c54_i32_331 = arith.constant 54 : i32
    %481 = arith.addi %0, %c54_i32_331 : i32
    %c6_i32_332 = arith.constant 6 : i32
    %482 = arith.addi %481, %c6_i32_332 : i32
    %483 = arith.index_cast %482 : i32 to index
    %484 = memref.load %arg1[%483] : memref<144xi32, #tpu.memory_space<smem>>
    %485 = arith.index_cast %484 : i32 to index
    %c0_333 = arith.constant 0 : index
    %c0_334 = arith.constant 0 : index
    %486 = vector.load %arg2[%485, %c0_333, %c0_334] : memref<33x2x8xf32, #tpu.memory_space<vmem>>, vector<1x2x8xf32>
    %487 = vector.shape_cast %486 : vector<1x2x8xf32> to vector<2x8xf32>
    %c12_335 = arith.constant 12 : index
    %c48_336 = arith.constant 48 : index
    %488 = vector.load %arg6[%c12_335, %c48_336] : memref<32x72xf32, #tpu.memory_space<vmem>>, vector<2x8xf32>
    tpu.vector_store %arg6[%c12_335, %c48_336], %487 {strides = array<i32>} : memref<32x72xf32, #tpu.memory_space<vmem>>, vector<2x8xf32>,
    %c54_i32_337 = arith.constant 54 : i32
    %489 = arith.addi %0, %c54_i32_337 : i32
    %c7_i32_338 = arith.constant 7 : i32
    %490 = arith.addi %489, %c7_i32_338 : i32
    %491 = arith.index_cast %490 : i32 to index
    %492 = memref.load %arg1[%491] : memref<144xi32, #tpu.memory_space<smem>>
    %493 = arith.index_cast %492 : i32 to index
    %c0_339 = arith.constant 0 : index
    %c0_340 = arith.constant 0 : index
    %494 = vector.load %arg2[%493, %c0_339, %c0_340] : memref<33x2x8xf32, #tpu.memory_space<vmem>>, vector<1x2x8xf32>
    %495 = vector.shape_cast %494 : vector<1x2x8xf32> to vector<2x8xf32>
    %c12_341 = arith.constant 12 : index
    %c56_342 = arith.constant 56 : index
    %496 = vector.load %arg6[%c12_341, %c56_342] : memref<32x72xf32, #tpu.memory_space<vmem>>, vector<2x8xf32>
    tpu.vector_store %arg6[%c12_341, %c56_342], %495 {strides = array<i32>} : memref<32x72xf32, #tpu.memory_space<vmem>>, vector<2x8xf32>,
    %c54_i32_343 = arith.constant 54 : i32
    %497 = arith.addi %0, %c54_i32_343 : i32
    %c8_i32_344 = arith.constant 8 : i32
    %498 = arith.addi %497, %c8_i32_344 : i32
    %499 = arith.index_cast %498 : i32 to index
    %500 = memref.load %arg1[%499] : memref<144xi32, #tpu.memory_space<smem>>
    %501 = arith.index_cast %500 : i32 to index
    %c0_345 = arith.constant 0 : index
    %c0_346 = arith.constant 0 : index
    %502 = vector.load %arg2[%501, %c0_345, %c0_346] : memref<33x2x8xf32, #tpu.memory_space<vmem>>, vector<1x2x8xf32>
    %503 = vector.shape_cast %502 : vector<1x2x8xf32> to vector<2x8xf32>
    %c12_347 = arith.constant 12 : index
    %c64_348 = arith.constant 64 : index
    %504 = vector.load %arg6[%c12_347, %c64_348] : memref<32x72xf32, #tpu.memory_space<vmem>>, vector<2x8xf32>
    tpu.vector_store %arg6[%c12_347, %c64_348], %503 {strides = array<i32>} : memref<32x72xf32, #tpu.memory_space<vmem>>, vector<2x8xf32>,
    %c63_i32 = arith.constant 63 : i32
    %505 = arith.addi %0, %c63_i32 : i32
    %c0_i32_349 = arith.constant 0 : i32
    %506 = arith.addi %505, %c0_i32_349 : i32
    %507 = arith.index_cast %506 : i32 to index
    %508 = memref.load %arg1[%507] : memref<144xi32, #tpu.memory_space<smem>>
    %509 = arith.index_cast %508 : i32 to index
    %c0_350 = arith.constant 0 : index
    %c0_351 = arith.constant 0 : index
    %510 = vector.load %arg2[%509, %c0_350, %c0_351] : memref<33x2x8xf32, #tpu.memory_space<vmem>>, vector<1x2x8xf32>
    %511 = vector.shape_cast %510 : vector<1x2x8xf32> to vector<2x8xf32>
    %c14 = arith.constant 14 : index
    %c0_352 = arith.constant 0 : index
    %512 = vector.load %arg6[%c14, %c0_352] : memref<32x72xf32, #tpu.memory_space<vmem>>, vector<2x8xf32>
    tpu.vector_store %arg6[%c14, %c0_352], %511 {strides = array<i32>} : memref<32x72xf32, #tpu.memory_space<vmem>>, vector<2x8xf32>,
    %c63_i32_353 = arith.constant 63 : i32
    %513 = arith.addi %0, %c63_i32_353 : i32
    %c1_i32_354 = arith.constant 1 : i32
    %514 = arith.addi %513, %c1_i32_354 : i32
    %515 = arith.index_cast %514 : i32 to index
    %516 = memref.load %arg1[%515] : memref<144xi32, #tpu.memory_space<smem>>
    %517 = arith.index_cast %516 : i32 to index
    %c0_355 = arith.constant 0 : index
    %c0_356 = arith.constant 0 : index
    %518 = vector.load %arg2[%517, %c0_355, %c0_356] : memref<33x2x8xf32, #tpu.memory_space<vmem>>, vector<1x2x8xf32>
    %519 = vector.shape_cast %518 : vector<1x2x8xf32> to vector<2x8xf32>
    %c14_357 = arith.constant 14 : index
    %c8_358 = arith.constant 8 : index
    %520 = vector.load %arg6[%c14_357, %c8_358] : memref<32x72xf32, #tpu.memory_space<vmem>>, vector<2x8xf32>
    tpu.vector_store %arg6[%c14_357, %c8_358], %519 {strides = array<i32>} : memref<32x72xf32, #tpu.memory_space<vmem>>, vector<2x8xf32>,
    %c63_i32_359 = arith.constant 63 : i32
    %521 = arith.addi %0, %c63_i32_359 : i32
    %c2_i32_360 = arith.constant 2 : i32
    %522 = arith.addi %521, %c2_i32_360 : i32
    %523 = arith.index_cast %522 : i32 to index
    %524 = memref.load %arg1[%523] : memref<144xi32, #tpu.memory_space<smem>>
    %525 = arith.index_cast %524 : i32 to index
    %c0_361 = arith.constant 0 : index
    %c0_362 = arith.constant 0 : index
    %526 = vector.load %arg2[%525, %c0_361, %c0_362] : memref<33x2x8xf32, #tpu.memory_space<vmem>>, vector<1x2x8xf32>
    %527 = vector.shape_cast %526 : vector<1x2x8xf32> to vector<2x8xf32>
    %c14_363 = arith.constant 14 : index
    %c16_364 = arith.constant 16 : index
    %528 = vector.load %arg6[%c14_363, %c16_364] : memref<32x72xf32, #tpu.memory_space<vmem>>, vector<2x8xf32>
    tpu.vector_store %arg6[%c14_363, %c16_364], %527 {strides = array<i32>} : memref<32x72xf32, #tpu.memory_space<vmem>>, vector<2x8xf32>,
    %c63_i32_365 = arith.constant 63 : i32
    %529 = arith.addi %0, %c63_i32_365 : i32
    %c3_i32_366 = arith.constant 3 : i32
    %530 = arith.addi %529, %c3_i32_366 : i32
    %531 = arith.index_cast %530 : i32 to index
    %532 = memref.load %arg1[%531] : memref<144xi32, #tpu.memory_space<smem>>
    %533 = arith.index_cast %532 : i32 to index
    %c0_367 = arith.constant 0 : index
    %c0_368 = arith.constant 0 : index
    %534 = vector.load %arg2[%533, %c0_367, %c0_368] : memref<33x2x8xf32, #tpu.memory_space<vmem>>, vector<1x2x8xf32>
    %535 = vector.shape_cast %534 : vector<1x2x8xf32> to vector<2x8xf32>
    %c14_369 = arith.constant 14 : index
    %c24_370 = arith.constant 24 : index
    %536 = vector.load %arg6[%c14_369, %c24_370] : memref<32x72xf32, #tpu.memory_space<vmem>>, vector<2x8xf32>
    tpu.vector_store %arg6[%c14_369, %c24_370], %535 {strides = array<i32>} : memref<32x72xf32, #tpu.memory_space<vmem>>, vector<2x8xf32>,
    %c63_i32_371 = arith.constant 63 : i32
    %537 = arith.addi %0, %c63_i32_371 : i32
    %c4_i32_372 = arith.constant 4 : i32
    %538 = arith.addi %537, %c4_i32_372 : i32
    %539 = arith.index_cast %538 : i32 to index
    %540 = memref.load %arg1[%539] : memref<144xi32, #tpu.memory_space<smem>>
    %541 = arith.index_cast %540 : i32 to index
    %c0_373 = arith.constant 0 : index
    %c0_374 = arith.constant 0 : index
    %542 = vector.load %arg2[%541, %c0_373, %c0_374] : memref<33x2x8xf32, #tpu.memory_space<vmem>>, vector<1x2x8xf32>
    %543 = vector.shape_cast %542 : vector<1x2x8xf32> to vector<2x8xf32>
    %c14_375 = arith.constant 14 : index
    %c32_376 = arith.constant 32 : index
    %544 = vector.load %arg6[%c14_375, %c32_376] : memref<32x72xf32, #tpu.memory_space<vmem>>, vector<2x8xf32>
    tpu.vector_store %arg6[%c14_375, %c32_376], %543 {strides = array<i32>} : memref<32x72xf32, #tpu.memory_space<vmem>>, vector<2x8xf32>,
    %c63_i32_377 = arith.constant 63 : i32
    %545 = arith.addi %0, %c63_i32_377 : i32
    %c5_i32_378 = arith.constant 5 : i32
    %546 = arith.addi %545, %c5_i32_378 : i32
    %547 = arith.index_cast %546 : i32 to index
    %548 = memref.load %arg1[%547] : memref<144xi32, #tpu.memory_space<smem>>
    %549 = arith.index_cast %548 : i32 to index
    %c0_379 = arith.constant 0 : index
    %c0_380 = arith.constant 0 : index
    %550 = vector.load %arg2[%549, %c0_379, %c0_380] : memref<33x2x8xf32, #tpu.memory_space<vmem>>, vector<1x2x8xf32>
    %551 = vector.shape_cast %550 : vector<1x2x8xf32> to vector<2x8xf32>
    %c14_381 = arith.constant 14 : index
    %c40_382 = arith.constant 40 : index
    %552 = vector.load %arg6[%c14_381, %c40_382] : memref<32x72xf32, #tpu.memory_space<vmem>>, vector<2x8xf32>
    tpu.vector_store %arg6[%c14_381, %c40_382], %551 {strides = array<i32>} : memref<32x72xf32, #tpu.memory_space<vmem>>, vector<2x8xf32>,
    %c63_i32_383 = arith.constant 63 : i32
    %553 = arith.addi %0, %c63_i32_383 : i32
    %c6_i32_384 = arith.constant 6 : i32
    %554 = arith.addi %553, %c6_i32_384 : i32
    %555 = arith.index_cast %554 : i32 to index
    %556 = memref.load %arg1[%555] : memref<144xi32, #tpu.memory_space<smem>>
    %557 = arith.index_cast %556 : i32 to index
    %c0_385 = arith.constant 0 : index
    %c0_386 = arith.constant 0 : index
    %558 = vector.load %arg2[%557, %c0_385, %c0_386] : memref<33x2x8xf32, #tpu.memory_space<vmem>>, vector<1x2x8xf32>
    %559 = vector.shape_cast %558 : vector<1x2x8xf32> to vector<2x8xf32>
    %c14_387 = arith.constant 14 : index
    %c48_388 = arith.constant 48 : index
    %560 = vector.load %arg6[%c14_387, %c48_388] : memref<32x72xf32, #tpu.memory_space<vmem>>, vector<2x8xf32>
    tpu.vector_store %arg6[%c14_387, %c48_388], %559 {strides = array<i32>} : memref<32x72xf32, #tpu.memory_space<vmem>>, vector<2x8xf32>,
    %c63_i32_389 = arith.constant 63 : i32
    %561 = arith.addi %0, %c63_i32_389 : i32
    %c7_i32_390 = arith.constant 7 : i32
    %562 = arith.addi %561, %c7_i32_390 : i32
    %563 = arith.index_cast %562 : i32 to index
    %564 = memref.load %arg1[%563] : memref<144xi32, #tpu.memory_space<smem>>
    %565 = arith.index_cast %564 : i32 to index
    %c0_391 = arith.constant 0 : index
    %c0_392 = arith.constant 0 : index
    %566 = vector.load %arg2[%565, %c0_391, %c0_392] : memref<33x2x8xf32, #tpu.memory_space<vmem>>, vector<1x2x8xf32>
    %567 = vector.shape_cast %566 : vector<1x2x8xf32> to vector<2x8xf32>
    %c14_393 = arith.constant 14 : index
    %c56_394 = arith.constant 56 : index
    %568 = vector.load %arg6[%c14_393, %c56_394] : memref<32x72xf32, #tpu.memory_space<vmem>>, vector<2x8xf32>
    tpu.vector_store %arg6[%c14_393, %c56_394], %567 {strides = array<i32>} : memref<32x72xf32, #tpu.memory_space<vmem>>, vector<2x8xf32>,
    %c63_i32_395 = arith.constant 63 : i32
    %569 = arith.addi %0, %c63_i32_395 : i32
    %c8_i32_396 = arith.constant 8 : i32
    %570 = arith.addi %569, %c8_i32_396 : i32
    %571 = arith.index_cast %570 : i32 to index
    %572 = memref.load %arg1[%571] : memref<144xi32, #tpu.memory_space<smem>>
    %573 = arith.index_cast %572 : i32 to index
    %c0_397 = arith.constant 0 : index
    %c0_398 = arith.constant 0 : index
    %574 = vector.load %arg2[%573, %c0_397, %c0_398] : memref<33x2x8xf32, #tpu.memory_space<vmem>>, vector<1x2x8xf32>
    %575 = vector.shape_cast %574 : vector<1x2x8xf32> to vector<2x8xf32>
    %c14_399 = arith.constant 14 : index
    %c64_400 = arith.constant 64 : index
    %576 = vector.load %arg6[%c14_399, %c64_400] : memref<32x72xf32, #tpu.memory_space<vmem>>, vector<2x8xf32>
    tpu.vector_store %arg6[%c14_399, %c64_400], %575 {strides = array<i32>} : memref<32x72xf32, #tpu.memory_space<vmem>>, vector<2x8xf32>,
    %c72_i32 = arith.constant 72 : i32
    %577 = arith.addi %0, %c72_i32 : i32
    %c0_i32_401 = arith.constant 0 : i32
    %578 = arith.addi %577, %c0_i32_401 : i32
    %579 = arith.index_cast %578 : i32 to index
    %580 = memref.load %arg1[%579] : memref<144xi32, #tpu.memory_space<smem>>
    %581 = arith.index_cast %580 : i32 to index
    %c0_402 = arith.constant 0 : index
    %c0_403 = arith.constant 0 : index
    %582 = vector.load %arg2[%581, %c0_402, %c0_403] : memref<33x2x8xf32, #tpu.memory_space<vmem>>, vector<1x2x8xf32>
    %583 = vector.shape_cast %582 : vector<1x2x8xf32> to vector<2x8xf32>
    %c16_404 = arith.constant 16 : index
    %c0_405 = arith.constant 0 : index
    %584 = vector.load %arg6[%c16_404, %c0_405] : memref<32x72xf32, #tpu.memory_space<vmem>>, vector<2x8xf32>
    tpu.vector_store %arg6[%c16_404, %c0_405], %583 {strides = array<i32>} : memref<32x72xf32, #tpu.memory_space<vmem>>, vector<2x8xf32>,
    %c72_i32_406 = arith.constant 72 : i32
    %585 = arith.addi %0, %c72_i32_406 : i32
    %c1_i32_407 = arith.constant 1 : i32
    %586 = arith.addi %585, %c1_i32_407 : i32
    %587 = arith.index_cast %586 : i32 to index
    %588 = memref.load %arg1[%587] : memref<144xi32, #tpu.memory_space<smem>>
    %589 = arith.index_cast %588 : i32 to index
    %c0_408 = arith.constant 0 : index
    %c0_409 = arith.constant 0 : index
    %590 = vector.load %arg2[%589, %c0_408, %c0_409] : memref<33x2x8xf32, #tpu.memory_space<vmem>>, vector<1x2x8xf32>
    %591 = vector.shape_cast %590 : vector<1x2x8xf32> to vector<2x8xf32>
    %c16_410 = arith.constant 16 : index
    %c8_411 = arith.constant 8 : index
    %592 = vector.load %arg6[%c16_410, %c8_411] : memref<32x72xf32, #tpu.memory_space<vmem>>, vector<2x8xf32>
    tpu.vector_store %arg6[%c16_410, %c8_411], %591 {strides = array<i32>} : memref<32x72xf32, #tpu.memory_space<vmem>>, vector<2x8xf32>,
    %c72_i32_412 = arith.constant 72 : i32
    %593 = arith.addi %0, %c72_i32_412 : i32
    %c2_i32_413 = arith.constant 2 : i32
    %594 = arith.addi %593, %c2_i32_413 : i32
    %595 = arith.index_cast %594 : i32 to index
    %596 = memref.load %arg1[%595] : memref<144xi32, #tpu.memory_space<smem>>
    %597 = arith.index_cast %596 : i32 to index
    %c0_414 = arith.constant 0 : index
    %c0_415 = arith.constant 0 : index
    %598 = vector.load %arg2[%597, %c0_414, %c0_415] : memref<33x2x8xf32, #tpu.memory_space<vmem>>, vector<1x2x8xf32>
    %599 = vector.shape_cast %598 : vector<1x2x8xf32> to vector<2x8xf32>
    %c16_416 = arith.constant 16 : index
    %c16_417 = arith.constant 16 : index
    %600 = vector.load %arg6[%c16_416, %c16_417] : memref<32x72xf32, #tpu.memory_space<vmem>>, vector<2x8xf32>
    tpu.vector_store %arg6[%c16_416, %c16_417], %599 {strides = array<i32>} : memref<32x72xf32, #tpu.memory_space<vmem>>, vector<2x8xf32>,
    %c72_i32_418 = arith.constant 72 : i32
    %601 = arith.addi %0, %c72_i32_418 : i32
    %c3_i32_419 = arith.constant 3 : i32
    %602 = arith.addi %601, %c3_i32_419 : i32
    %603 = arith.index_cast %602 : i32 to index
    %604 = memref.load %arg1[%603] : memref<144xi32, #tpu.memory_space<smem>>
    %605 = arith.index_cast %604 : i32 to index
    %c0_420 = arith.constant 0 : index
    %c0_421 = arith.constant 0 : index
    %606 = vector.load %arg2[%605, %c0_420, %c0_421] : memref<33x2x8xf32, #tpu.memory_space<vmem>>, vector<1x2x8xf32>
    %607 = vector.shape_cast %606 : vector<1x2x8xf32> to vector<2x8xf32>
    %c16_422 = arith.constant 16 : index
    %c24_423 = arith.constant 24 : index
    %608 = vector.load %arg6[%c16_422, %c24_423] : memref<32x72xf32, #tpu.memory_space<vmem>>, vector<2x8xf32>
    tpu.vector_store %arg6[%c16_422, %c24_423], %607 {strides = array<i32>} : memref<32x72xf32, #tpu.memory_space<vmem>>, vector<2x8xf32>,
    %c72_i32_424 = arith.constant 72 : i32
    %609 = arith.addi %0, %c72_i32_424 : i32
    %c4_i32_425 = arith.constant 4 : i32
    %610 = arith.addi %609, %c4_i32_425 : i32
    %611 = arith.index_cast %610 : i32 to index
    %612 = memref.load %arg1[%611] : memref<144xi32, #tpu.memory_space<smem>>
    %613 = arith.index_cast %612 : i32 to index
    %c0_426 = arith.constant 0 : index
    %c0_427 = arith.constant 0 : index
    %614 = vector.load %arg2[%613, %c0_426, %c0_427] : memref<33x2x8xf32, #tpu.memory_space<vmem>>, vector<1x2x8xf32>
    %615 = vector.shape_cast %614 : vector<1x2x8xf32> to vector<2x8xf32>
    %c16_428 = arith.constant 16 : index
    %c32_429 = arith.constant 32 : index
    %616 = vector.load %arg6[%c16_428, %c32_429] : memref<32x72xf32, #tpu.memory_space<vmem>>, vector<2x8xf32>
    tpu.vector_store %arg6[%c16_428, %c32_429], %615 {strides = array<i32>} : memref<32x72xf32, #tpu.memory_space<vmem>>, vector<2x8xf32>,
    %c72_i32_430 = arith.constant 72 : i32
    %617 = arith.addi %0, %c72_i32_430 : i32
    %c5_i32_431 = arith.constant 5 : i32
    %618 = arith.addi %617, %c5_i32_431 : i32
    %619 = arith.index_cast %618 : i32 to index
    %620 = memref.load %arg1[%619] : memref<144xi32, #tpu.memory_space<smem>>
    %621 = arith.index_cast %620 : i32 to index
    %c0_432 = arith.constant 0 : index
    %c0_433 = arith.constant 0 : index
    %622 = vector.load %arg2[%621, %c0_432, %c0_433] : memref<33x2x8xf32, #tpu.memory_space<vmem>>, vector<1x2x8xf32>
    %623 = vector.shape_cast %622 : vector<1x2x8xf32> to vector<2x8xf32>
    %c16_434 = arith.constant 16 : index
    %c40_435 = arith.constant 40 : index
    %624 = vector.load %arg6[%c16_434, %c40_435] : memref<32x72xf32, #tpu.memory_space<vmem>>, vector<2x8xf32>
    tpu.vector_store %arg6[%c16_434, %c40_435], %623 {strides = array<i32>} : memref<32x72xf32, #tpu.memory_space<vmem>>, vector<2x8xf32>,
    %c72_i32_436 = arith.constant 72 : i32
    %625 = arith.addi %0, %c72_i32_436 : i32
    %c6_i32_437 = arith.constant 6 : i32
    %626 = arith.addi %625, %c6_i32_437 : i32
    %627 = arith.index_cast %626 : i32 to index
    %628 = memref.load %arg1[%627] : memref<144xi32, #tpu.memory_space<smem>>
    %629 = arith.index_cast %628 : i32 to index
    %c0_438 = arith.constant 0 : index
    %c0_439 = arith.constant 0 : index
    %630 = vector.load %arg2[%629, %c0_438, %c0_439] : memref<33x2x8xf32, #tpu.memory_space<vmem>>, vector<1x2x8xf32>
    %631 = vector.shape_cast %630 : vector<1x2x8xf32> to vector<2x8xf32>
    %c16_440 = arith.constant 16 : index
    %c48_441 = arith.constant 48 : index
    %632 = vector.load %arg6[%c16_440, %c48_441] : memref<32x72xf32, #tpu.memory_space<vmem>>, vector<2x8xf32>
    tpu.vector_store %arg6[%c16_440, %c48_441], %631 {strides = array<i32>} : memref<32x72xf32, #tpu.memory_space<vmem>>, vector<2x8xf32>,
    %c72_i32_442 = arith.constant 72 : i32
    %633 = arith.addi %0, %c72_i32_442 : i32
    %c7_i32_443 = arith.constant 7 : i32
    %634 = arith.addi %633, %c7_i32_443 : i32
    %635 = arith.index_cast %634 : i32 to index
    %636 = memref.load %arg1[%635] : memref<144xi32, #tpu.memory_space<smem>>
    %637 = arith.index_cast %636 : i32 to index
    %c0_444 = arith.constant 0 : index
    %c0_445 = arith.constant 0 : index
    %638 = vector.load %arg2[%637, %c0_444, %c0_445] : memref<33x2x8xf32, #tpu.memory_space<vmem>>, vector<1x2x8xf32>
    %639 = vector.shape_cast %638 : vector<1x2x8xf32> to vector<2x8xf32>
    %c16_446 = arith.constant 16 : index
    %c56_447 = arith.constant 56 : index
    %640 = vector.load %arg6[%c16_446, %c56_447] : memref<32x72xf32, #tpu.memory_space<vmem>>, vector<2x8xf32>
    tpu.vector_store %arg6[%c16_446, %c56_447], %639 {strides = array<i32>} : memref<32x72xf32, #tpu.memory_space<vmem>>, vector<2x8xf32>,
    %c72_i32_448 = arith.constant 72 : i32
    %641 = arith.addi %0, %c72_i32_448 : i32
    %c8_i32_449 = arith.constant 8 : i32
    %642 = arith.addi %641, %c8_i32_449 : i32
    %643 = arith.index_cast %642 : i32 to index
    %644 = memref.load %arg1[%643] : memref<144xi32, #tpu.memory_space<smem>>
    %645 = arith.index_cast %644 : i32 to index
    %c0_450 = arith.constant 0 : index
    %c0_451 = arith.constant 0 : index
    %646 = vector.load %arg2[%645, %c0_450, %c0_451] : memref<33x2x8xf32, #tpu.memory_space<vmem>>, vector<1x2x8xf32>
    %647 = vector.shape_cast %646 : vector<1x2x8xf32> to vector<2x8xf32>
    %c16_452 = arith.constant 16 : index
    %c64_453 = arith.constant 64 : index
    %648 = vector.load %arg6[%c16_452, %c64_453] : memref<32x72xf32, #tpu.memory_space<vmem>>, vector<2x8xf32>
    tpu.vector_store %arg6[%c16_452, %c64_453], %647 {strides = array<i32>} : memref<32x72xf32, #tpu.memory_space<vmem>>, vector<2x8xf32>,
    %c81_i32 = arith.constant 81 : i32
    %649 = arith.addi %0, %c81_i32 : i32
    %c0_i32_454 = arith.constant 0 : i32
    %650 = arith.addi %649, %c0_i32_454 : i32
    %651 = arith.index_cast %650 : i32 to index
    %652 = memref.load %arg1[%651] : memref<144xi32, #tpu.memory_space<smem>>
    %653 = arith.index_cast %652 : i32 to index
    %c0_455 = arith.constant 0 : index
    %c0_456 = arith.constant 0 : index
    %654 = vector.load %arg2[%653, %c0_455, %c0_456] : memref<33x2x8xf32, #tpu.memory_space<vmem>>, vector<1x2x8xf32>
    %655 = vector.shape_cast %654 : vector<1x2x8xf32> to vector<2x8xf32>
    %c18 = arith.constant 18 : index
    %c0_457 = arith.constant 0 : index
    %656 = vector.load %arg6[%c18, %c0_457] : memref<32x72xf32, #tpu.memory_space<vmem>>, vector<2x8xf32>
    tpu.vector_store %arg6[%c18, %c0_457], %655 {strides = array<i32>} : memref<32x72xf32, #tpu.memory_space<vmem>>, vector<2x8xf32>,
    %c81_i32_458 = arith.constant 81 : i32
    %657 = arith.addi %0, %c81_i32_458 : i32
    %c1_i32_459 = arith.constant 1 : i32
    %658 = arith.addi %657, %c1_i32_459 : i32
    %659 = arith.index_cast %658 : i32 to index
    %660 = memref.load %arg1[%659] : memref<144xi32, #tpu.memory_space<smem>>
    %661 = arith.index_cast %660 : i32 to index
    %c0_460 = arith.constant 0 : index
    %c0_461 = arith.constant 0 : index
    %662 = vector.load %arg2[%661, %c0_460, %c0_461] : memref<33x2x8xf32, #tpu.memory_space<vmem>>, vector<1x2x8xf32>
    %663 = vector.shape_cast %662 : vector<1x2x8xf32> to vector<2x8xf32>
    %c18_462 = arith.constant 18 : index
    %c8_463 = arith.constant 8 : index
    %664 = vector.load %arg6[%c18_462, %c8_463] : memref<32x72xf32, #tpu.memory_space<vmem>>, vector<2x8xf32>
    tpu.vector_store %arg6[%c18_462, %c8_463], %663 {strides = array<i32>} : memref<32x72xf32, #tpu.memory_space<vmem>>, vector<2x8xf32>,
    %c81_i32_464 = arith.constant 81 : i32
    %665 = arith.addi %0, %c81_i32_464 : i32
    %c2_i32_465 = arith.constant 2 : i32
    %666 = arith.addi %665, %c2_i32_465 : i32
    %667 = arith.index_cast %666 : i32 to index
    %668 = memref.load %arg1[%667] : memref<144xi32, #tpu.memory_space<smem>>
    %669 = arith.index_cast %668 : i32 to index
    %c0_466 = arith.constant 0 : index
    %c0_467 = arith.constant 0 : index
    %670 = vector.load %arg2[%669, %c0_466, %c0_467] : memref<33x2x8xf32, #tpu.memory_space<vmem>>, vector<1x2x8xf32>
    %671 = vector.shape_cast %670 : vector<1x2x8xf32> to vector<2x8xf32>
    %c18_468 = arith.constant 18 : index
    %c16_469 = arith.constant 16 : index
    %672 = vector.load %arg6[%c18_468, %c16_469] : memref<32x72xf32, #tpu.memory_space<vmem>>, vector<2x8xf32>
    tpu.vector_store %arg6[%c18_468, %c16_469], %671 {strides = array<i32>} : memref<32x72xf32, #tpu.memory_space<vmem>>, vector<2x8xf32>,
    %c81_i32_470 = arith.constant 81 : i32
    %673 = arith.addi %0, %c81_i32_470 : i32
    %c3_i32_471 = arith.constant 3 : i32
    %674 = arith.addi %673, %c3_i32_471 : i32
    %675 = arith.index_cast %674 : i32 to index
    %676 = memref.load %arg1[%675] : memref<144xi32, #tpu.memory_space<smem>>
    %677 = arith.index_cast %676 : i32 to index
    %c0_472 = arith.constant 0 : index
    %c0_473 = arith.constant 0 : index
    %678 = vector.load %arg2[%677, %c0_472, %c0_473] : memref<33x2x8xf32, #tpu.memory_space<vmem>>, vector<1x2x8xf32>
    %679 = vector.shape_cast %678 : vector<1x2x8xf32> to vector<2x8xf32>
    %c18_474 = arith.constant 18 : index
    %c24_475 = arith.constant 24 : index
    %680 = vector.load %arg6[%c18_474, %c24_475] : memref<32x72xf32, #tpu.memory_space<vmem>>, vector<2x8xf32>
    tpu.vector_store %arg6[%c18_474, %c24_475], %679 {strides = array<i32>} : memref<32x72xf32, #tpu.memory_space<vmem>>, vector<2x8xf32>,
    %c81_i32_476 = arith.constant 81 : i32
    %681 = arith.addi %0, %c81_i32_476 : i32
    %c4_i32_477 = arith.constant 4 : i32
    %682 = arith.addi %681, %c4_i32_477 : i32
    %683 = arith.index_cast %682 : i32 to index
    %684 = memref.load %arg1[%683] : memref<144xi32, #tpu.memory_space<smem>>
    %685 = arith.index_cast %684 : i32 to index
    %c0_478 = arith.constant 0 : index
    %c0_479 = arith.constant 0 : index
    %686 = vector.load %arg2[%685, %c0_478, %c0_479] : memref<33x2x8xf32, #tpu.memory_space<vmem>>, vector<1x2x8xf32>
    %687 = vector.shape_cast %686 : vector<1x2x8xf32> to vector<2x8xf32>
    %c18_480 = arith.constant 18 : index
    %c32_481 = arith.constant 32 : index
    %688 = vector.load %arg6[%c18_480, %c32_481] : memref<32x72xf32, #tpu.memory_space<vmem>>, vector<2x8xf32>
    tpu.vector_store %arg6[%c18_480, %c32_481], %687 {strides = array<i32>} : memref<32x72xf32, #tpu.memory_space<vmem>>, vector<2x8xf32>,
    %c81_i32_482 = arith.constant 81 : i32
    %689 = arith.addi %0, %c81_i32_482 : i32
    %c5_i32_483 = arith.constant 5 : i32
    %690 = arith.addi %689, %c5_i32_483 : i32
    %691 = arith.index_cast %690 : i32 to index
    %692 = memref.load %arg1[%691] : memref<144xi32, #tpu.memory_space<smem>>
    %693 = arith.index_cast %692 : i32 to index
    %c0_484 = arith.constant 0 : index
    %c0_485 = arith.constant 0 : index
    %694 = vector.load %arg2[%693, %c0_484, %c0_485] : memref<33x2x8xf32, #tpu.memory_space<vmem>>, vector<1x2x8xf32>
    %695 = vector.shape_cast %694 : vector<1x2x8xf32> to vector<2x8xf32>
    %c18_486 = arith.constant 18 : index
    %c40_487 = arith.constant 40 : index
    %696 = vector.load %arg6[%c18_486, %c40_487] : memref<32x72xf32, #tpu.memory_space<vmem>>, vector<2x8xf32>
    tpu.vector_store %arg6[%c18_486, %c40_487], %695 {strides = array<i32>} : memref<32x72xf32, #tpu.memory_space<vmem>>, vector<2x8xf32>,
    %c81_i32_488 = arith.constant 81 : i32
    %697 = arith.addi %0, %c81_i32_488 : i32
    %c6_i32_489 = arith.constant 6 : i32
    %698 = arith.addi %697, %c6_i32_489 : i32
    %699 = arith.index_cast %698 : i32 to index
    %700 = memref.load %arg1[%699] : memref<144xi32, #tpu.memory_space<smem>>
    %701 = arith.index_cast %700 : i32 to index
    %c0_490 = arith.constant 0 : index
    %c0_491 = arith.constant 0 : index
    %702 = vector.load %arg2[%701, %c0_490, %c0_491] : memref<33x2x8xf32, #tpu.memory_space<vmem>>, vector<1x2x8xf32>
    %703 = vector.shape_cast %702 : vector<1x2x8xf32> to vector<2x8xf32>
    %c18_492 = arith.constant 18 : index
    %c48_493 = arith.constant 48 : index
    %704 = vector.load %arg6[%c18_492, %c48_493] : memref<32x72xf32, #tpu.memory_space<vmem>>, vector<2x8xf32>
    tpu.vector_store %arg6[%c18_492, %c48_493], %703 {strides = array<i32>} : memref<32x72xf32, #tpu.memory_space<vmem>>, vector<2x8xf32>,
    %c81_i32_494 = arith.constant 81 : i32
    %705 = arith.addi %0, %c81_i32_494 : i32
    %c7_i32_495 = arith.constant 7 : i32
    %706 = arith.addi %705, %c7_i32_495 : i32
    %707 = arith.index_cast %706 : i32 to index
    %708 = memref.load %arg1[%707] : memref<144xi32, #tpu.memory_space<smem>>
    %709 = arith.index_cast %708 : i32 to index
    %c0_496 = arith.constant 0 : index
    %c0_497 = arith.constant 0 : index
    %710 = vector.load %arg2[%709, %c0_496, %c0_497] : memref<33x2x8xf32, #tpu.memory_space<vmem>>, vector<1x2x8xf32>
    %711 = vector.shape_cast %710 : vector<1x2x8xf32> to vector<2x8xf32>
    %c18_498 = arith.constant 18 : index
    %c56_499 = arith.constant 56 : index
    %712 = vector.load %arg6[%c18_498, %c56_499] : memref<32x72xf32, #tpu.memory_space<vmem>>, vector<2x8xf32>
    tpu.vector_store %arg6[%c18_498, %c56_499], %711 {strides = array<i32>} : memref<32x72xf32, #tpu.memory_space<vmem>>, vector<2x8xf32>,
    %c81_i32_500 = arith.constant 81 : i32
    %713 = arith.addi %0, %c81_i32_500 : i32
    %c8_i32_501 = arith.constant 8 : i32
    %714 = arith.addi %713, %c8_i32_501 : i32
    %715 = arith.index_cast %714 : i32 to index
    %716 = memref.load %arg1[%715] : memref<144xi32, #tpu.memory_space<smem>>
    %717 = arith.index_cast %716 : i32 to index
    %c0_502 = arith.constant 0 : index
    %c0_503 = arith.constant 0 : index
    %718 = vector.load %arg2[%717, %c0_502, %c0_503] : memref<33x2x8xf32, #tpu.memory_space<vmem>>, vector<1x2x8xf32>
    %719 = vector.shape_cast %718 : vector<1x2x8xf32> to vector<2x8xf32>
    %c18_504 = arith.constant 18 : index
    %c64_505 = arith.constant 64 : index
    %720 = vector.load %arg6[%c18_504, %c64_505] : memref<32x72xf32, #tpu.memory_space<vmem>>, vector<2x8xf32>
    tpu.vector_store %arg6[%c18_504, %c64_505], %719 {strides = array<i32>} : memref<32x72xf32, #tpu.memory_space<vmem>>, vector<2x8xf32>,
    %c90_i32 = arith.constant 90 : i32
    %721 = arith.addi %0, %c90_i32 : i32
    %c0_i32_506 = arith.constant 0 : i32
    %722 = arith.addi %721, %c0_i32_506 : i32
    %723 = arith.index_cast %722 : i32 to index
    %724 = memref.load %arg1[%723] : memref<144xi32, #tpu.memory_space<smem>>
    %725 = arith.index_cast %724 : i32 to index
    %c0_507 = arith.constant 0 : index
    %c0_508 = arith.constant 0 : index
    %726 = vector.load %arg2[%725, %c0_507, %c0_508] : memref<33x2x8xf32, #tpu.memory_space<vmem>>, vector<1x2x8xf32>
    %727 = vector.shape_cast %726 : vector<1x2x8xf32> to vector<2x8xf32>
    %c20 = arith.constant 20 : index
    %c0_509 = arith.constant 0 : index
    %728 = vector.load %arg6[%c20, %c0_509] : memref<32x72xf32, #tpu.memory_space<vmem>>, vector<2x8xf32>
    tpu.vector_store %arg6[%c20, %c0_509], %727 {strides = array<i32>} : memref<32x72xf32, #tpu.memory_space<vmem>>, vector<2x8xf32>,
    %c90_i32_510 = arith.constant 90 : i32
    %729 = arith.addi %0, %c90_i32_510 : i32
    %c1_i32_511 = arith.constant 1 : i32
    %730 = arith.addi %729, %c1_i32_511 : i32
    %731 = arith.index_cast %730 : i32 to index
    %732 = memref.load %arg1[%731] : memref<144xi32, #tpu.memory_space<smem>>
    %733 = arith.index_cast %732 : i32 to index
    %c0_512 = arith.constant 0 : index
    %c0_513 = arith.constant 0 : index
    %734 = vector.load %arg2[%733, %c0_512, %c0_513] : memref<33x2x8xf32, #tpu.memory_space<vmem>>, vector<1x2x8xf32>
    %735 = vector.shape_cast %734 : vector<1x2x8xf32> to vector<2x8xf32>
    %c20_514 = arith.constant 20 : index
    %c8_515 = arith.constant 8 : index
    %736 = vector.load %arg6[%c20_514, %c8_515] : memref<32x72xf32, #tpu.memory_space<vmem>>, vector<2x8xf32>
    tpu.vector_store %arg6[%c20_514, %c8_515], %735 {strides = array<i32>} : memref<32x72xf32, #tpu.memory_space<vmem>>, vector<2x8xf32>,
    %c90_i32_516 = arith.constant 90 : i32
    %737 = arith.addi %0, %c90_i32_516 : i32
    %c2_i32_517 = arith.constant 2 : i32
    %738 = arith.addi %737, %c2_i32_517 : i32
    %739 = arith.index_cast %738 : i32 to index
    %740 = memref.load %arg1[%739] : memref<144xi32, #tpu.memory_space<smem>>
    %741 = arith.index_cast %740 : i32 to index
    %c0_518 = arith.constant 0 : index
    %c0_519 = arith.constant 0 : index
    %742 = vector.load %arg2[%741, %c0_518, %c0_519] : memref<33x2x8xf32, #tpu.memory_space<vmem>>, vector<1x2x8xf32>
    %743 = vector.shape_cast %742 : vector<1x2x8xf32> to vector<2x8xf32>
    %c20_520 = arith.constant 20 : index
    %c16_521 = arith.constant 16 : index
    %744 = vector.load %arg6[%c20_520, %c16_521] : memref<32x72xf32, #tpu.memory_space<vmem>>, vector<2x8xf32>
    tpu.vector_store %arg6[%c20_520, %c16_521], %743 {strides = array<i32>} : memref<32x72xf32, #tpu.memory_space<vmem>>, vector<2x8xf32>,
    %c90_i32_522 = arith.constant 90 : i32
    %745 = arith.addi %0, %c90_i32_522 : i32
    %c3_i32_523 = arith.constant 3 : i32
    %746 = arith.addi %745, %c3_i32_523 : i32
    %747 = arith.index_cast %746 : i32 to index
    %748 = memref.load %arg1[%747] : memref<144xi32, #tpu.memory_space<smem>>
    %749 = arith.index_cast %748 : i32 to index
    %c0_524 = arith.constant 0 : index
    %c0_525 = arith.constant 0 : index
    %750 = vector.load %arg2[%749, %c0_524, %c0_525] : memref<33x2x8xf32, #tpu.memory_space<vmem>>, vector<1x2x8xf32>
    %751 = vector.shape_cast %750 : vector<1x2x8xf32> to vector<2x8xf32>
    %c20_526 = arith.constant 20 : index
    %c24_527 = arith.constant 24 : index
    %752 = vector.load %arg6[%c20_526, %c24_527] : memref<32x72xf32, #tpu.memory_space<vmem>>, vector<2x8xf32>
    tpu.vector_store %arg6[%c20_526, %c24_527], %751 {strides = array<i32>} : memref<32x72xf32, #tpu.memory_space<vmem>>, vector<2x8xf32>,
    %c90_i32_528 = arith.constant 90 : i32
    %753 = arith.addi %0, %c90_i32_528 : i32
    %c4_i32_529 = arith.constant 4 : i32
    %754 = arith.addi %753, %c4_i32_529 : i32
    %755 = arith.index_cast %754 : i32 to index
    %756 = memref.load %arg1[%755] : memref<144xi32, #tpu.memory_space<smem>>
    %757 = arith.index_cast %756 : i32 to index
    %c0_530 = arith.constant 0 : index
    %c0_531 = arith.constant 0 : index
    %758 = vector.load %arg2[%757, %c0_530, %c0_531] : memref<33x2x8xf32, #tpu.memory_space<vmem>>, vector<1x2x8xf32>
    %759 = vector.shape_cast %758 : vector<1x2x8xf32> to vector<2x8xf32>
    %c20_532 = arith.constant 20 : index
    %c32_533 = arith.constant 32 : index
    %760 = vector.load %arg6[%c20_532, %c32_533] : memref<32x72xf32, #tpu.memory_space<vmem>>, vector<2x8xf32>
    tpu.vector_store %arg6[%c20_532, %c32_533], %759 {strides = array<i32>} : memref<32x72xf32, #tpu.memory_space<vmem>>, vector<2x8xf32>,
    %c90_i32_534 = arith.constant 90 : i32
    %761 = arith.addi %0, %c90_i32_534 : i32
    %c5_i32_535 = arith.constant 5 : i32
    %762 = arith.addi %761, %c5_i32_535 : i32
    %763 = arith.index_cast %762 : i32 to index
    %764 = memref.load %arg1[%763] : memref<144xi32, #tpu.memory_space<smem>>
    %765 = arith.index_cast %764 : i32 to index
    %c0_536 = arith.constant 0 : index
    %c0_537 = arith.constant 0 : index
    %766 = vector.load %arg2[%765, %c0_536, %c0_537] : memref<33x2x8xf32, #tpu.memory_space<vmem>>, vector<1x2x8xf32>
    %767 = vector.shape_cast %766 : vector<1x2x8xf32> to vector<2x8xf32>
    %c20_538 = arith.constant 20 : index
    %c40_539 = arith.constant 40 : index
    %768 = vector.load %arg6[%c20_538, %c40_539] : memref<32x72xf32, #tpu.memory_space<vmem>>, vector<2x8xf32>
    tpu.vector_store %arg6[%c20_538, %c40_539], %767 {strides = array<i32>} : memref<32x72xf32, #tpu.memory_space<vmem>>, vector<2x8xf32>,
    %c90_i32_540 = arith.constant 90 : i32
    %769 = arith.addi %0, %c90_i32_540 : i32
    %c6_i32_541 = arith.constant 6 : i32
    %770 = arith.addi %769, %c6_i32_541 : i32
    %771 = arith.index_cast %770 : i32 to index
    %772 = memref.load %arg1[%771] : memref<144xi32, #tpu.memory_space<smem>>
    %773 = arith.index_cast %772 : i32 to index
    %c0_542 = arith.constant 0 : index
    %c0_543 = arith.constant 0 : index
    %774 = vector.load %arg2[%773, %c0_542, %c0_543] : memref<33x2x8xf32, #tpu.memory_space<vmem>>, vector<1x2x8xf32>
    %775 = vector.shape_cast %774 : vector<1x2x8xf32> to vector<2x8xf32>
    %c20_544 = arith.constant 20 : index
    %c48_545 = arith.constant 48 : index
    %776 = vector.load %arg6[%c20_544, %c48_545] : memref<32x72xf32, #tpu.memory_space<vmem>>, vector<2x8xf32>
    tpu.vector_store %arg6[%c20_544, %c48_545], %775 {strides = array<i32>} : memref<32x72xf32, #tpu.memory_space<vmem>>, vector<2x8xf32>,
    %c90_i32_546 = arith.constant 90 : i32
    %777 = arith.addi %0, %c90_i32_546 : i32
    %c7_i32_547 = arith.constant 7 : i32
    %778 = arith.addi %777, %c7_i32_547 : i32
    %779 = arith.index_cast %778 : i32 to index
    %780 = memref.load %arg1[%779] : memref<144xi32, #tpu.memory_space<smem>>
    %781 = arith.index_cast %780 : i32 to index
    %c0_548 = arith.constant 0 : index
    %c0_549 = arith.constant 0 : index
    %782 = vector.load %arg2[%781, %c0_548, %c0_549] : memref<33x2x8xf32, #tpu.memory_space<vmem>>, vector<1x2x8xf32>
    %783 = vector.shape_cast %782 : vector<1x2x8xf32> to vector<2x8xf32>
    %c20_550 = arith.constant 20 : index
    %c56_551 = arith.constant 56 : index
    %784 = vector.load %arg6[%c20_550, %c56_551] : memref<32x72xf32, #tpu.memory_space<vmem>>, vector<2x8xf32>
    tpu.vector_store %arg6[%c20_550, %c56_551], %783 {strides = array<i32>} : memref<32x72xf32, #tpu.memory_space<vmem>>, vector<2x8xf32>,
    %c90_i32_552 = arith.constant 90 : i32
    %785 = arith.addi %0, %c90_i32_552 : i32
    %c8_i32_553 = arith.constant 8 : i32
    %786 = arith.addi %785, %c8_i32_553 : i32
    %787 = arith.index_cast %786 : i32 to index
    %788 = memref.load %arg1[%787] : memref<144xi32, #tpu.memory_space<smem>>
    %789 = arith.index_cast %788 : i32 to index
    %c0_554 = arith.constant 0 : index
    %c0_555 = arith.constant 0 : index
    %790 = vector.load %arg2[%789, %c0_554, %c0_555] : memref<33x2x8xf32, #tpu.memory_space<vmem>>, vector<1x2x8xf32>
    %791 = vector.shape_cast %790 : vector<1x2x8xf32> to vector<2x8xf32>
    %c20_556 = arith.constant 20 : index
    %c64_557 = arith.constant 64 : index
    %792 = vector.load %arg6[%c20_556, %c64_557] : memref<32x72xf32, #tpu.memory_space<vmem>>, vector<2x8xf32>
    tpu.vector_store %arg6[%c20_556, %c64_557], %791 {strides = array<i32>} : memref<32x72xf32, #tpu.memory_space<vmem>>, vector<2x8xf32>,
    %c99_i32 = arith.constant 99 : i32
    %793 = arith.addi %0, %c99_i32 : i32
    %c0_i32_558 = arith.constant 0 : i32
    %794 = arith.addi %793, %c0_i32_558 : i32
    %795 = arith.index_cast %794 : i32 to index
    %796 = memref.load %arg1[%795] : memref<144xi32, #tpu.memory_space<smem>>
    %797 = arith.index_cast %796 : i32 to index
    %c0_559 = arith.constant 0 : index
    %c0_560 = arith.constant 0 : index
    %798 = vector.load %arg2[%797, %c0_559, %c0_560] : memref<33x2x8xf32, #tpu.memory_space<vmem>>, vector<1x2x8xf32>
    %799 = vector.shape_cast %798 : vector<1x2x8xf32> to vector<2x8xf32>
    %c22 = arith.constant 22 : index
    %c0_561 = arith.constant 0 : index
    %800 = vector.load %arg6[%c22, %c0_561] : memref<32x72xf32, #tpu.memory_space<vmem>>, vector<2x8xf32>
    tpu.vector_store %arg6[%c22, %c0_561], %799 {strides = array<i32>} : memref<32x72xf32, #tpu.memory_space<vmem>>, vector<2x8xf32>,
    %c99_i32_562 = arith.constant 99 : i32
    %801 = arith.addi %0, %c99_i32_562 : i32
    %c1_i32_563 = arith.constant 1 : i32
    %802 = arith.addi %801, %c1_i32_563 : i32
    %803 = arith.index_cast %802 : i32 to index
    %804 = memref.load %arg1[%803] : memref<144xi32, #tpu.memory_space<smem>>
    %805 = arith.index_cast %804 : i32 to index
    %c0_564 = arith.constant 0 : index
    %c0_565 = arith.constant 0 : index
    %806 = vector.load %arg2[%805, %c0_564, %c0_565] : memref<33x2x8xf32, #tpu.memory_space<vmem>>, vector<1x2x8xf32>
    %807 = vector.shape_cast %806 : vector<1x2x8xf32> to vector<2x8xf32>
    %c22_566 = arith.constant 22 : index
    %c8_567 = arith.constant 8 : index
    %808 = vector.load %arg6[%c22_566, %c8_567] : memref<32x72xf32, #tpu.memory_space<vmem>>, vector<2x8xf32>
    tpu.vector_store %arg6[%c22_566, %c8_567], %807 {strides = array<i32>} : memref<32x72xf32, #tpu.memory_space<vmem>>, vector<2x8xf32>,
    %c99_i32_568 = arith.constant 99 : i32
    %809 = arith.addi %0, %c99_i32_568 : i32
    %c2_i32_569 = arith.constant 2 : i32
    %810 = arith.addi %809, %c2_i32_569 : i32
    %811 = arith.index_cast %810 : i32 to index
    %812 = memref.load %arg1[%811] : memref<144xi32, #tpu.memory_space<smem>>
    %813 = arith.index_cast %812 : i32 to index
    %c0_570 = arith.constant 0 : index
    %c0_571 = arith.constant 0 : index
    %814 = vector.load %arg2[%813, %c0_570, %c0_571] : memref<33x2x8xf32, #tpu.memory_space<vmem>>, vector<1x2x8xf32>
    %815 = vector.shape_cast %814 : vector<1x2x8xf32> to vector<2x8xf32>
    %c22_572 = arith.constant 22 : index
    %c16_573 = arith.constant 16 : index
    %816 = vector.load %arg6[%c22_572, %c16_573] : memref<32x72xf32, #tpu.memory_space<vmem>>, vector<2x8xf32>
    tpu.vector_store %arg6[%c22_572, %c16_573], %815 {strides = array<i32>} : memref<32x72xf32, #tpu.memory_space<vmem>>, vector<2x8xf32>,
    %c99_i32_574 = arith.constant 99 : i32
    %817 = arith.addi %0, %c99_i32_574 : i32
    %c3_i32_575 = arith.constant 3 : i32
    %818 = arith.addi %817, %c3_i32_575 : i32
    %819 = arith.index_cast %818 : i32 to index
    %820 = memref.load %arg1[%819] : memref<144xi32, #tpu.memory_space<smem>>
    %821 = arith.index_cast %820 : i32 to index
    %c0_576 = arith.constant 0 : index
    %c0_577 = arith.constant 0 : index
    %822 = vector.load %arg2[%821, %c0_576, %c0_577] : memref<33x2x8xf32, #tpu.memory_space<vmem>>, vector<1x2x8xf32>
    %823 = vector.shape_cast %822 : vector<1x2x8xf32> to vector<2x8xf32>
    %c22_578 = arith.constant 22 : index
    %c24_579 = arith.constant 24 : index
    %824 = vector.load %arg6[%c22_578, %c24_579] : memref<32x72xf32, #tpu.memory_space<vmem>>, vector<2x8xf32>
    tpu.vector_store %arg6[%c22_578, %c24_579], %823 {strides = array<i32>} : memref<32x72xf32, #tpu.memory_space<vmem>>, vector<2x8xf32>,
    %c99_i32_580 = arith.constant 99 : i32
    %825 = arith.addi %0, %c99_i32_580 : i32
    %c4_i32_581 = arith.constant 4 : i32
    %826 = arith.addi %825, %c4_i32_581 : i32
    %827 = arith.index_cast %826 : i32 to index
    %828 = memref.load %arg1[%827] : memref<144xi32, #tpu.memory_space<smem>>
    %829 = arith.index_cast %828 : i32 to index
    %c0_582 = arith.constant 0 : index
    %c0_583 = arith.constant 0 : index
    %830 = vector.load %arg2[%829, %c0_582, %c0_583] : memref<33x2x8xf32, #tpu.memory_space<vmem>>, vector<1x2x8xf32>
    %831 = vector.shape_cast %830 : vector<1x2x8xf32> to vector<2x8xf32>
    %c22_584 = arith.constant 22 : index
    %c32_585 = arith.constant 32 : index
    %832 = vector.load %arg6[%c22_584, %c32_585] : memref<32x72xf32, #tpu.memory_space<vmem>>, vector<2x8xf32>
    tpu.vector_store %arg6[%c22_584, %c32_585], %831 {strides = array<i32>} : memref<32x72xf32, #tpu.memory_space<vmem>>, vector<2x8xf32>,
    %c99_i32_586 = arith.constant 99 : i32
    %833 = arith.addi %0, %c99_i32_586 : i32
    %c5_i32_587 = arith.constant 5 : i32
    %834 = arith.addi %833, %c5_i32_587 : i32
    %835 = arith.index_cast %834 : i32 to index
    %836 = memref.load %arg1[%835] : memref<144xi32, #tpu.memory_space<smem>>
    %837 = arith.index_cast %836 : i32 to index
    %c0_588 = arith.constant 0 : index
    %c0_589 = arith.constant 0 : index
    %838 = vector.load %arg2[%837, %c0_588, %c0_589] : memref<33x2x8xf32, #tpu.memory_space<vmem>>, vector<1x2x8xf32>
    %839 = vector.shape_cast %838 : vector<1x2x8xf32> to vector<2x8xf32>
    %c22_590 = arith.constant 22 : index
    %c40_591 = arith.constant 40 : index
    %840 = vector.load %arg6[%c22_590, %c40_591] : memref<32x72xf32, #tpu.memory_space<vmem>>, vector<2x8xf32>
    tpu.vector_store %arg6[%c22_590, %c40_591], %839 {strides = array<i32>} : memref<32x72xf32, #tpu.memory_space<vmem>>, vector<2x8xf32>,
    %c99_i32_592 = arith.constant 99 : i32
    %841 = arith.addi %0, %c99_i32_592 : i32
    %c6_i32_593 = arith.constant 6 : i32
    %842 = arith.addi %841, %c6_i32_593 : i32
    %843 = arith.index_cast %842 : i32 to index
    %844 = memref.load %arg1[%843] : memref<144xi32, #tpu.memory_space<smem>>
    %845 = arith.index_cast %844 : i32 to index
    %c0_594 = arith.constant 0 : index
    %c0_595 = arith.constant 0 : index
    %846 = vector.load %arg2[%845, %c0_594, %c0_595] : memref<33x2x8xf32, #tpu.memory_space<vmem>>, vector<1x2x8xf32>
    %847 = vector.shape_cast %846 : vector<1x2x8xf32> to vector<2x8xf32>
    %c22_596 = arith.constant 22 : index
    %c48_597 = arith.constant 48 : index
    %848 = vector.load %arg6[%c22_596, %c48_597] : memref<32x72xf32, #tpu.memory_space<vmem>>, vector<2x8xf32>
    tpu.vector_store %arg6[%c22_596, %c48_597], %847 {strides = array<i32>} : memref<32x72xf32, #tpu.memory_space<vmem>>, vector<2x8xf32>,
    %c99_i32_598 = arith.constant 99 : i32
    %849 = arith.addi %0, %c99_i32_598 : i32
    %c7_i32_599 = arith.constant 7 : i32
    %850 = arith.addi %849, %c7_i32_599 : i32
    %851 = arith.index_cast %850 : i32 to index
    %852 = memref.load %arg1[%851] : memref<144xi32, #tpu.memory_space<smem>>
    %853 = arith.index_cast %852 : i32 to index
    %c0_600 = arith.constant 0 : index
    %c0_601 = arith.constant 0 : index
    %854 = vector.load %arg2[%853, %c0_600, %c0_601] : memref<33x2x8xf32, #tpu.memory_space<vmem>>, vector<1x2x8xf32>
    %855 = vector.shape_cast %854 : vector<1x2x8xf32> to vector<2x8xf32>
    %c22_602 = arith.constant 22 : index
    %c56_603 = arith.constant 56 : index
    %856 = vector.load %arg6[%c22_602, %c56_603] : memref<32x72xf32, #tpu.memory_space<vmem>>, vector<2x8xf32>
    tpu.vector_store %arg6[%c22_602, %c56_603], %855 {strides = array<i32>} : memref<32x72xf32, #tpu.memory_space<vmem>>, vector<2x8xf32>,
    %c99_i32_604 = arith.constant 99 : i32
    %857 = arith.addi %0, %c99_i32_604 : i32
    %c8_i32_605 = arith.constant 8 : i32
    %858 = arith.addi %857, %c8_i32_605 : i32
    %859 = arith.index_cast %858 : i32 to index
    %860 = memref.load %arg1[%859] : memref<144xi32, #tpu.memory_space<smem>>
    %861 = arith.index_cast %860 : i32 to index
    %c0_606 = arith.constant 0 : index
    %c0_607 = arith.constant 0 : index
    %862 = vector.load %arg2[%861, %c0_606, %c0_607] : memref<33x2x8xf32, #tpu.memory_space<vmem>>, vector<1x2x8xf32>
    %863 = vector.shape_cast %862 : vector<1x2x8xf32> to vector<2x8xf32>
    %c22_608 = arith.constant 22 : index
    %c64_609 = arith.constant 64 : index
    %864 = vector.load %arg6[%c22_608, %c64_609] : memref<32x72xf32, #tpu.memory_space<vmem>>, vector<2x8xf32>
    tpu.vector_store %arg6[%c22_608, %c64_609], %863 {strides = array<i32>} : memref<32x72xf32, #tpu.memory_space<vmem>>, vector<2x8xf32>,
    %c108_i32 = arith.constant 108 : i32
    %865 = arith.addi %0, %c108_i32 : i32
    %c0_i32_610 = arith.constant 0 : i32
    %866 = arith.addi %865, %c0_i32_610 : i32
    %867 = arith.index_cast %866 : i32 to index
    %868 = memref.load %arg1[%867] : memref<144xi32, #tpu.memory_space<smem>>
    %869 = arith.index_cast %868 : i32 to index
    %c0_611 = arith.constant 0 : index
    %c0_612 = arith.constant 0 : index
    %870 = vector.load %arg2[%869, %c0_611, %c0_612] : memref<33x2x8xf32, #tpu.memory_space<vmem>>, vector<1x2x8xf32>
    %871 = vector.shape_cast %870 : vector<1x2x8xf32> to vector<2x8xf32>
    %c24_613 = arith.constant 24 : index
    %c0_614 = arith.constant 0 : index
    %872 = vector.load %arg6[%c24_613, %c0_614] : memref<32x72xf32, #tpu.memory_space<vmem>>, vector<2x8xf32>
    tpu.vector_store %arg6[%c24_613, %c0_614], %871 {strides = array<i32>} : memref<32x72xf32, #tpu.memory_space<vmem>>, vector<2x8xf32>,
    %c108_i32_615 = arith.constant 108 : i32
    %873 = arith.addi %0, %c108_i32_615 : i32
    %c1_i32_616 = arith.constant 1 : i32
    %874 = arith.addi %873, %c1_i32_616 : i32
    %875 = arith.index_cast %874 : i32 to index
    %876 = memref.load %arg1[%875] : memref<144xi32, #tpu.memory_space<smem>>
    %877 = arith.index_cast %876 : i32 to index
    %c0_617 = arith.constant 0 : index
    %c0_618 = arith.constant 0 : index
    %878 = vector.load %arg2[%877, %c0_617, %c0_618] : memref<33x2x8xf32, #tpu.memory_space<vmem>>, vector<1x2x8xf32>
    %879 = vector.shape_cast %878 : vector<1x2x8xf32> to vector<2x8xf32>
    %c24_619 = arith.constant 24 : index
    %c8_620 = arith.constant 8 : index
    %880 = vector.load %arg6[%c24_619, %c8_620] : memref<32x72xf32, #tpu.memory_space<vmem>>, vector<2x8xf32>
    tpu.vector_store %arg6[%c24_619, %c8_620], %879 {strides = array<i32>} : memref<32x72xf32, #tpu.memory_space<vmem>>, vector<2x8xf32>,
    %c108_i32_621 = arith.constant 108 : i32
    %881 = arith.addi %0, %c108_i32_621 : i32
    %c2_i32_622 = arith.constant 2 : i32
    %882 = arith.addi %881, %c2_i32_622 : i32
    %883 = arith.index_cast %882 : i32 to index
    %884 = memref.load %arg1[%883] : memref<144xi32, #tpu.memory_space<smem>>
    %885 = arith.index_cast %884 : i32 to index
    %c0_623 = arith.constant 0 : index
    %c0_624 = arith.constant 0 : index
    %886 = vector.load %arg2[%885, %c0_623, %c0_624] : memref<33x2x8xf32, #tpu.memory_space<vmem>>, vector<1x2x8xf32>
    %887 = vector.shape_cast %886 : vector<1x2x8xf32> to vector<2x8xf32>
    %c24_625 = arith.constant 24 : index
    %c16_626 = arith.constant 16 : index
    %888 = vector.load %arg6[%c24_625, %c16_626] : memref<32x72xf32, #tpu.memory_space<vmem>>, vector<2x8xf32>
    tpu.vector_store %arg6[%c24_625, %c16_626], %887 {strides = array<i32>} : memref<32x72xf32, #tpu.memory_space<vmem>>, vector<2x8xf32>,
    %c108_i32_627 = arith.constant 108 : i32
    %889 = arith.addi %0, %c108_i32_627 : i32
    %c3_i32_628 = arith.constant 3 : i32
    %890 = arith.addi %889, %c3_i32_628 : i32
    %891 = arith.index_cast %890 : i32 to index
    %892 = memref.load %arg1[%891] : memref<144xi32, #tpu.memory_space<smem>>
    %893 = arith.index_cast %892 : i32 to index
    %c0_629 = arith.constant 0 : index
    %c0_630 = arith.constant 0 : index
    %894 = vector.load %arg2[%893, %c0_629, %c0_630] : memref<33x2x8xf32, #tpu.memory_space<vmem>>, vector<1x2x8xf32>
    %895 = vector.shape_cast %894 : vector<1x2x8xf32> to vector<2x8xf32>
    %c24_631 = arith.constant 24 : index
    %c24_632 = arith.constant 24 : index
    %896 = vector.load %arg6[%c24_631, %c24_632] : memref<32x72xf32, #tpu.memory_space<vmem>>, vector<2x8xf32>
    tpu.vector_store %arg6[%c24_631, %c24_632], %895 {strides = array<i32>} : memref<32x72xf32, #tpu.memory_space<vmem>>, vector<2x8xf32>,
    %c108_i32_633 = arith.constant 108 : i32
    %897 = arith.addi %0, %c108_i32_633 : i32
    %c4_i32_634 = arith.constant 4 : i32
    %898 = arith.addi %897, %c4_i32_634 : i32
    %899 = arith.index_cast %898 : i32 to index
    %900 = memref.load %arg1[%899] : memref<144xi32, #tpu.memory_space<smem>>
    %901 = arith.index_cast %900 : i32 to index
    %c0_635 = arith.constant 0 : index
    %c0_636 = arith.constant 0 : index
    %902 = vector.load %arg2[%901, %c0_635, %c0_636] : memref<33x2x8xf32, #tpu.memory_space<vmem>>, vector<1x2x8xf32>
    %903 = vector.shape_cast %902 : vector<1x2x8xf32> to vector<2x8xf32>
    %c24_637 = arith.constant 24 : index
    %c32_638 = arith.constant 32 : index
    %904 = vector.load %arg6[%c24_637, %c32_638] : memref<32x72xf32, #tpu.memory_space<vmem>>, vector<2x8xf32>
    tpu.vector_store %arg6[%c24_637, %c32_638], %903 {strides = array<i32>} : memref<32x72xf32, #tpu.memory_space<vmem>>, vector<2x8xf32>,
    %c108_i32_639 = arith.constant 108 : i32
    %905 = arith.addi %0, %c108_i32_639 : i32
    %c5_i32_640 = arith.constant 5 : i32
    %906 = arith.addi %905, %c5_i32_640 : i32
    %907 = arith.index_cast %906 : i32 to index
    %908 = memref.load %arg1[%907] : memref<144xi32, #tpu.memory_space<smem>>
    %909 = arith.index_cast %908 : i32 to index
    %c0_641 = arith.constant 0 : index
    %c0_642 = arith.constant 0 : index
    %910 = vector.load %arg2[%909, %c0_641, %c0_642] : memref<33x2x8xf32, #tpu.memory_space<vmem>>, vector<1x2x8xf32>
    %911 = vector.shape_cast %910 : vector<1x2x8xf32> to vector<2x8xf32>
    %c24_643 = arith.constant 24 : index
    %c40_644 = arith.constant 40 : index
    %912 = vector.load %arg6[%c24_643, %c40_644] : memref<32x72xf32, #tpu.memory_space<vmem>>, vector<2x8xf32>
    tpu.vector_store %arg6[%c24_643, %c40_644], %911 {strides = array<i32>} : memref<32x72xf32, #tpu.memory_space<vmem>>, vector<2x8xf32>,
    %c108_i32_645 = arith.constant 108 : i32
    %913 = arith.addi %0, %c108_i32_645 : i32
    %c6_i32_646 = arith.constant 6 : i32
    %914 = arith.addi %913, %c6_i32_646 : i32
    %915 = arith.index_cast %914 : i32 to index
    %916 = memref.load %arg1[%915] : memref<144xi32, #tpu.memory_space<smem>>
    %917 = arith.index_cast %916 : i32 to index
    %c0_647 = arith.constant 0 : index
    %c0_648 = arith.constant 0 : index
    %918 = vector.load %arg2[%917, %c0_647, %c0_648] : memref<33x2x8xf32, #tpu.memory_space<vmem>>, vector<1x2x8xf32>
    %919 = vector.shape_cast %918 : vector<1x2x8xf32> to vector<2x8xf32>
    %c24_649 = arith.constant 24 : index
    %c48_650 = arith.constant 48 : index
    %920 = vector.load %arg6[%c24_649, %c48_650] : memref<32x72xf32, #tpu.memory_space<vmem>>, vector<2x8xf32>
    tpu.vector_store %arg6[%c24_649, %c48_650], %919 {strides = array<i32>} : memref<32x72xf32, #tpu.memory_space<vmem>>, vector<2x8xf32>,
    %c108_i32_651 = arith.constant 108 : i32
    %921 = arith.addi %0, %c108_i32_651 : i32
    %c7_i32_652 = arith.constant 7 : i32
    %922 = arith.addi %921, %c7_i32_652 : i32
    %923 = arith.index_cast %922 : i32 to index
    %924 = memref.load %arg1[%923] : memref<144xi32, #tpu.memory_space<smem>>
    %925 = arith.index_cast %924 : i32 to index
    %c0_653 = arith.constant 0 : index
    %c0_654 = arith.constant 0 : index
    %926 = vector.load %arg2[%925, %c0_653, %c0_654] : memref<33x2x8xf32, #tpu.memory_space<vmem>>, vector<1x2x8xf32>
    %927 = vector.shape_cast %926 : vector<1x2x8xf32> to vector<2x8xf32>
    %c24_655 = arith.constant 24 : index
    %c56_656 = arith.constant 56 : index
    %928 = vector.load %arg6[%c24_655, %c56_656] : memref<32x72xf32, #tpu.memory_space<vmem>>, vector<2x8xf32>
    tpu.vector_store %arg6[%c24_655, %c56_656], %927 {strides = array<i32>} : memref<32x72xf32, #tpu.memory_space<vmem>>, vector<2x8xf32>,
    %c108_i32_657 = arith.constant 108 : i32
    %929 = arith.addi %0, %c108_i32_657 : i32
    %c8_i32_658 = arith.constant 8 : i32
    %930 = arith.addi %929, %c8_i32_658 : i32
    %931 = arith.index_cast %930 : i32 to index
    %932 = memref.load %arg1[%931] : memref<144xi32, #tpu.memory_space<smem>>
    %933 = arith.index_cast %932 : i32 to index
    %c0_659 = arith.constant 0 : index
    %c0_660 = arith.constant 0 : index
    %934 = vector.load %arg2[%933, %c0_659, %c0_660] : memref<33x2x8xf32, #tpu.memory_space<vmem>>, vector<1x2x8xf32>
    %935 = vector.shape_cast %934 : vector<1x2x8xf32> to vector<2x8xf32>
    %c24_661 = arith.constant 24 : index
    %c64_662 = arith.constant 64 : index
    %936 = vector.load %arg6[%c24_661, %c64_662] : memref<32x72xf32, #tpu.memory_space<vmem>>, vector<2x8xf32>
    tpu.vector_store %arg6[%c24_661, %c64_662], %935 {strides = array<i32>} : memref<32x72xf32, #tpu.memory_space<vmem>>, vector<2x8xf32>,
    %c117_i32 = arith.constant 117 : i32
    %937 = arith.addi %0, %c117_i32 : i32
    %c0_i32_663 = arith.constant 0 : i32
    %938 = arith.addi %937, %c0_i32_663 : i32
    %939 = arith.index_cast %938 : i32 to index
    %940 = memref.load %arg1[%939] : memref<144xi32, #tpu.memory_space<smem>>
    %941 = arith.index_cast %940 : i32 to index
    %c0_664 = arith.constant 0 : index
    %c0_665 = arith.constant 0 : index
    %942 = vector.load %arg2[%941, %c0_664, %c0_665] : memref<33x2x8xf32, #tpu.memory_space<vmem>>, vector<1x2x8xf32>
    %943 = vector.shape_cast %942 : vector<1x2x8xf32> to vector<2x8xf32>
    %c26 = arith.constant 26 : index
    %c0_666 = arith.constant 0 : index
    %944 = vector.load %arg6[%c26, %c0_666] : memref<32x72xf32, #tpu.memory_space<vmem>>, vector<2x8xf32>
    tpu.vector_store %arg6[%c26, %c0_666], %943 {strides = array<i32>} : memref<32x72xf32, #tpu.memory_space<vmem>>, vector<2x8xf32>,
    %c117_i32_667 = arith.constant 117 : i32
    %945 = arith.addi %0, %c117_i32_667 : i32
    %c1_i32_668 = arith.constant 1 : i32
    %946 = arith.addi %945, %c1_i32_668 : i32
    %947 = arith.index_cast %946 : i32 to index
    %948 = memref.load %arg1[%947] : memref<144xi32, #tpu.memory_space<smem>>
    %949 = arith.index_cast %948 : i32 to index
    %c0_669 = arith.constant 0 : index
    %c0_670 = arith.constant 0 : index
    %950 = vector.load %arg2[%949, %c0_669, %c0_670] : memref<33x2x8xf32, #tpu.memory_space<vmem>>, vector<1x2x8xf32>
    %951 = vector.shape_cast %950 : vector<1x2x8xf32> to vector<2x8xf32>
    %c26_671 = arith.constant 26 : index
    %c8_672 = arith.constant 8 : index
    %952 = vector.load %arg6[%c26_671, %c8_672] : memref<32x72xf32, #tpu.memory_space<vmem>>, vector<2x8xf32>
    tpu.vector_store %arg6[%c26_671, %c8_672], %951 {strides = array<i32>} : memref<32x72xf32, #tpu.memory_space<vmem>>, vector<2x8xf32>,
    %c117_i32_673 = arith.constant 117 : i32
    %953 = arith.addi %0, %c117_i32_673 : i32
    %c2_i32_674 = arith.constant 2 : i32
    %954 = arith.addi %953, %c2_i32_674 : i32
    %955 = arith.index_cast %954 : i32 to index
    %956 = memref.load %arg1[%955] : memref<144xi32, #tpu.memory_space<smem>>
    %957 = arith.index_cast %956 : i32 to index
    %c0_675 = arith.constant 0 : index
    %c0_676 = arith.constant 0 : index
    %958 = vector.load %arg2[%957, %c0_675, %c0_676] : memref<33x2x8xf32, #tpu.memory_space<vmem>>, vector<1x2x8xf32>
    %959 = vector.shape_cast %958 : vector<1x2x8xf32> to vector<2x8xf32>
    %c26_677 = arith.constant 26 : index
    %c16_678 = arith.constant 16 : index
    %960 = vector.load %arg6[%c26_677, %c16_678] : memref<32x72xf32, #tpu.memory_space<vmem>>, vector<2x8xf32>
    tpu.vector_store %arg6[%c26_677, %c16_678], %959 {strides = array<i32>} : memref<32x72xf32, #tpu.memory_space<vmem>>, vector<2x8xf32>,
    %c117_i32_679 = arith.constant 117 : i32
    %961 = arith.addi %0, %c117_i32_679 : i32
    %c3_i32_680 = arith.constant 3 : i32
    %962 = arith.addi %961, %c3_i32_680 : i32
    %963 = arith.index_cast %962 : i32 to index
    %964 = memref.load %arg1[%963] : memref<144xi32, #tpu.memory_space<smem>>
    %965 = arith.index_cast %964 : i32 to index
    %c0_681 = arith.constant 0 : index
    %c0_682 = arith.constant 0 : index
    %966 = vector.load %arg2[%965, %c0_681, %c0_682] : memref<33x2x8xf32, #tpu.memory_space<vmem>>, vector<1x2x8xf32>
    %967 = vector.shape_cast %966 : vector<1x2x8xf32> to vector<2x8xf32>
    %c26_683 = arith.constant 26 : index
    %c24_684 = arith.constant 24 : index
    %968 = vector.load %arg6[%c26_683, %c24_684] : memref<32x72xf32, #tpu.memory_space<vmem>>, vector<2x8xf32>
    tpu.vector_store %arg6[%c26_683, %c24_684], %967 {strides = array<i32>} : memref<32x72xf32, #tpu.memory_space<vmem>>, vector<2x8xf32>,
    %c117_i32_685 = arith.constant 117 : i32
    %969 = arith.addi %0, %c117_i32_685 : i32
    %c4_i32_686 = arith.constant 4 : i32
    %970 = arith.addi %969, %c4_i32_686 : i32
    %971 = arith.index_cast %970 : i32 to index
    %972 = memref.load %arg1[%971] : memref<144xi32, #tpu.memory_space<smem>>
    %973 = arith.index_cast %972 : i32 to index
    %c0_687 = arith.constant 0 : index
    %c0_688 = arith.constant 0 : index
    %974 = vector.load %arg2[%973, %c0_687, %c0_688] : memref<33x2x8xf32, #tpu.memory_space<vmem>>, vector<1x2x8xf32>
    %975 = vector.shape_cast %974 : vector<1x2x8xf32> to vector<2x8xf32>
    %c26_689 = arith.constant 26 : index
    %c32_690 = arith.constant 32 : index
    %976 = vector.load %arg6[%c26_689, %c32_690] : memref<32x72xf32, #tpu.memory_space<vmem>>, vector<2x8xf32>
    tpu.vector_store %arg6[%c26_689, %c32_690], %975 {strides = array<i32>} : memref<32x72xf32, #tpu.memory_space<vmem>>, vector<2x8xf32>,
    %c117_i32_691 = arith.constant 117 : i32
    %977 = arith.addi %0, %c117_i32_691 : i32
    %c5_i32_692 = arith.constant 5 : i32
    %978 = arith.addi %977, %c5_i32_692 : i32
    %979 = arith.index_cast %978 : i32 to index
    %980 = memref.load %arg1[%979] : memref<144xi32, #tpu.memory_space<smem>>
    %981 = arith.index_cast %980 : i32 to index
    %c0_693 = arith.constant 0 : index
    %c0_694 = arith.constant 0 : index
    %982 = vector.load %arg2[%981, %c0_693, %c0_694] : memref<33x2x8xf32, #tpu.memory_space<vmem>>, vector<1x2x8xf32>
    %983 = vector.shape_cast %982 : vector<1x2x8xf32> to vector<2x8xf32>
    %c26_695 = arith.constant 26 : index
    %c40_696 = arith.constant 40 : index
    %984 = vector.load %arg6[%c26_695, %c40_696] : memref<32x72xf32, #tpu.memory_space<vmem>>, vector<2x8xf32>
    tpu.vector_store %arg6[%c26_695, %c40_696], %983 {strides = array<i32>} : memref<32x72xf32, #tpu.memory_space<vmem>>, vector<2x8xf32>,
    %c117_i32_697 = arith.constant 117 : i32
    %985 = arith.addi %0, %c117_i32_697 : i32
    %c6_i32_698 = arith.constant 6 : i32
    %986 = arith.addi %985, %c6_i32_698 : i32
    %987 = arith.index_cast %986 : i32 to index
    %988 = memref.load %arg1[%987] : memref<144xi32, #tpu.memory_space<smem>>
    %989 = arith.index_cast %988 : i32 to index
    %c0_699 = arith.constant 0 : index
    %c0_700 = arith.constant 0 : index
    %990 = vector.load %arg2[%989, %c0_699, %c0_700] : memref<33x2x8xf32, #tpu.memory_space<vmem>>, vector<1x2x8xf32>
    %991 = vector.shape_cast %990 : vector<1x2x8xf32> to vector<2x8xf32>
    %c26_701 = arith.constant 26 : index
    %c48_702 = arith.constant 48 : index
    %992 = vector.load %arg6[%c26_701, %c48_702] : memref<32x72xf32, #tpu.memory_space<vmem>>, vector<2x8xf32>
    tpu.vector_store %arg6[%c26_701, %c48_702], %991 {strides = array<i32>} : memref<32x72xf32, #tpu.memory_space<vmem>>, vector<2x8xf32>,
    %c117_i32_703 = arith.constant 117 : i32
    %993 = arith.addi %0, %c117_i32_703 : i32
    %c7_i32_704 = arith.constant 7 : i32
    %994 = arith.addi %993, %c7_i32_704 : i32
    %995 = arith.index_cast %994 : i32 to index
    %996 = memref.load %arg1[%995] : memref<144xi32, #tpu.memory_space<smem>>
    %997 = arith.index_cast %996 : i32 to index
    %c0_705 = arith.constant 0 : index
    %c0_706 = arith.constant 0 : index
    %998 = vector.load %arg2[%997, %c0_705, %c0_706] : memref<33x2x8xf32, #tpu.memory_space<vmem>>, vector<1x2x8xf32>
    %999 = vector.shape_cast %998 : vector<1x2x8xf32> to vector<2x8xf32>
    %c26_707 = arith.constant 26 : index
    %c56_708 = arith.constant 56 : index
    %1000 = vector.load %arg6[%c26_707, %c56_708] : memref<32x72xf32, #tpu.memory_space<vmem>>, vector<2x8xf32>
    tpu.vector_store %arg6[%c26_707, %c56_708], %999 {strides = array<i32>} : memref<32x72xf32, #tpu.memory_space<vmem>>, vector<2x8xf32>,
    %c117_i32_709 = arith.constant 117 : i32
    %1001 = arith.addi %0, %c117_i32_709 : i32
    %c8_i32_710 = arith.constant 8 : i32
    %1002 = arith.addi %1001, %c8_i32_710 : i32
    %1003 = arith.index_cast %1002 : i32 to index
    %1004 = memref.load %arg1[%1003] : memref<144xi32, #tpu.memory_space<smem>>
    %1005 = arith.index_cast %1004 : i32 to index
    %c0_711 = arith.constant 0 : index
    %c0_712 = arith.constant 0 : index
    %1006 = vector.load %arg2[%1005, %c0_711, %c0_712] : memref<33x2x8xf32, #tpu.memory_space<vmem>>, vector<1x2x8xf32>
    %1007 = vector.shape_cast %1006 : vector<1x2x8xf32> to vector<2x8xf32>
    %c26_713 = arith.constant 26 : index
    %c64_714 = arith.constant 64 : index
    %1008 = vector.load %arg6[%c26_713, %c64_714] : memref<32x72xf32, #tpu.memory_space<vmem>>, vector<2x8xf32>
    tpu.vector_store %arg6[%c26_713, %c64_714], %1007 {strides = array<i32>} : memref<32x72xf32, #tpu.memory_space<vmem>>, vector<2x8xf32>,
    %c126_i32 = arith.constant 126 : i32
    %1009 = arith.addi %0, %c126_i32 : i32
    %c0_i32_715 = arith.constant 0 : i32
    %1010 = arith.addi %1009, %c0_i32_715 : i32
    %1011 = arith.index_cast %1010 : i32 to index
    %1012 = memref.load %arg1[%1011] : memref<144xi32, #tpu.memory_space<smem>>
    %1013 = arith.index_cast %1012 : i32 to index
    %c0_716 = arith.constant 0 : index
    %c0_717 = arith.constant 0 : index
    %1014 = vector.load %arg2[%1013, %c0_716, %c0_717] : memref<33x2x8xf32, #tpu.memory_space<vmem>>, vector<1x2x8xf32>
    %1015 = vector.shape_cast %1014 : vector<1x2x8xf32> to vector<2x8xf32>
    %c28 = arith.constant 28 : index
    %c0_718 = arith.constant 0 : index
    %1016 = vector.load %arg6[%c28, %c0_718] : memref<32x72xf32, #tpu.memory_space<vmem>>, vector<2x8xf32>
    tpu.vector_store %arg6[%c28, %c0_718], %1015 {strides = array<i32>} : memref<32x72xf32, #tpu.memory_space<vmem>>, vector<2x8xf32>,
    %c126_i32_719 = arith.constant 126 : i32
    %1017 = arith.addi %0, %c126_i32_719 : i32
    %c1_i32_720 = arith.constant 1 : i32
    %1018 = arith.addi %1017, %c1_i32_720 : i32
    %1019 = arith.index_cast %1018 : i32 to index
    %1020 = memref.load %arg1[%1019] : memref<144xi32, #tpu.memory_space<smem>>
    %1021 = arith.index_cast %1020 : i32 to index
    %c0_721 = arith.constant 0 : index
    %c0_722 = arith.constant 0 : index
    %1022 = vector.load %arg2[%1021, %c0_721, %c0_722] : memref<33x2x8xf32, #tpu.memory_space<vmem>>, vector<1x2x8xf32>
    %1023 = vector.shape_cast %1022 : vector<1x2x8xf32> to vector<2x8xf32>
    %c28_723 = arith.constant 28 : index
    %c8_724 = arith.constant 8 : index
    %1024 = vector.load %arg6[%c28_723, %c8_724] : memref<32x72xf32, #tpu.memory_space<vmem>>, vector<2x8xf32>
    tpu.vector_store %arg6[%c28_723, %c8_724], %1023 {strides = array<i32>} : memref<32x72xf32, #tpu.memory_space<vmem>>, vector<2x8xf32>,
    %c126_i32_725 = arith.constant 126 : i32
    %1025 = arith.addi %0, %c126_i32_725 : i32
    %c2_i32_726 = arith.constant 2 : i32
    %1026 = arith.addi %1025, %c2_i32_726 : i32
    %1027 = arith.index_cast %1026 : i32 to index
    %1028 = memref.load %arg1[%1027] : memref<144xi32, #tpu.memory_space<smem>>
    %1029 = arith.index_cast %1028 : i32 to index
    %c0_727 = arith.constant 0 : index
    %c0_728 = arith.constant 0 : index
    %1030 = vector.load %arg2[%1029, %c0_727, %c0_728] : memref<33x2x8xf32, #tpu.memory_space<vmem>>, vector<1x2x8xf32>
    %1031 = vector.shape_cast %1030 : vector<1x2x8xf32> to vector<2x8xf32>
    %c28_729 = arith.constant 28 : index
    %c16_730 = arith.constant 16 : index
    %1032 = vector.load %arg6[%c28_729, %c16_730] : memref<32x72xf32, #tpu.memory_space<vmem>>, vector<2x8xf32>
    tpu.vector_store %arg6[%c28_729, %c16_730], %1031 {strides = array<i32>} : memref<32x72xf32, #tpu.memory_space<vmem>>, vector<2x8xf32>,
    %c126_i32_731 = arith.constant 126 : i32
    %1033 = arith.addi %0, %c126_i32_731 : i32
    %c3_i32_732 = arith.constant 3 : i32
    %1034 = arith.addi %1033, %c3_i32_732 : i32
    %1035 = arith.index_cast %1034 : i32 to index
    %1036 = memref.load %arg1[%1035] : memref<144xi32, #tpu.memory_space<smem>>
    %1037 = arith.index_cast %1036 : i32 to index
    %c0_733 = arith.constant 0 : index
    %c0_734 = arith.constant 0 : index
    %1038 = vector.load %arg2[%1037, %c0_733, %c0_734] : memref<33x2x8xf32, #tpu.memory_space<vmem>>, vector<1x2x8xf32>
    %1039 = vector.shape_cast %1038 : vector<1x2x8xf32> to vector<2x8xf32>
    %c28_735 = arith.constant 28 : index
    %c24_736 = arith.constant 24 : index
    %1040 = vector.load %arg6[%c28_735, %c24_736] : memref<32x72xf32, #tpu.memory_space<vmem>>, vector<2x8xf32>
    tpu.vector_store %arg6[%c28_735, %c24_736], %1039 {strides = array<i32>} : memref<32x72xf32, #tpu.memory_space<vmem>>, vector<2x8xf32>,
    %c126_i32_737 = arith.constant 126 : i32
    %1041 = arith.addi %0, %c126_i32_737 : i32
    %c4_i32_738 = arith.constant 4 : i32
    %1042 = arith.addi %1041, %c4_i32_738 : i32
    %1043 = arith.index_cast %1042 : i32 to index
    %1044 = memref.load %arg1[%1043] : memref<144xi32, #tpu.memory_space<smem>>
    %1045 = arith.index_cast %1044 : i32 to index
    %c0_739 = arith.constant 0 : index
    %c0_740 = arith.constant 0 : index
    %1046 = vector.load %arg2[%1045, %c0_739, %c0_740] : memref<33x2x8xf32, #tpu.memory_space<vmem>>, vector<1x2x8xf32>
    %1047 = vector.shape_cast %1046 : vector<1x2x8xf32> to vector<2x8xf32>
    %c28_741 = arith.constant 28 : index
    %c32_742 = arith.constant 32 : index
    %1048 = vector.load %arg6[%c28_741, %c32_742] : memref<32x72xf32, #tpu.memory_space<vmem>>, vector<2x8xf32>
    tpu.vector_store %arg6[%c28_741, %c32_742], %1047 {strides = array<i32>} : memref<32x72xf32, #tpu.memory_space<vmem>>, vector<2x8xf32>,
    %c126_i32_743 = arith.constant 126 : i32
    %1049 = arith.addi %0, %c126_i32_743 : i32
    %c5_i32_744 = arith.constant 5 : i32
    %1050 = arith.addi %1049, %c5_i32_744 : i32
    %1051 = arith.index_cast %1050 : i32 to index
    %1052 = memref.load %arg1[%1051] : memref<144xi32, #tpu.memory_space<smem>>
    %1053 = arith.index_cast %1052 : i32 to index
    %c0_745 = arith.constant 0 : index
    %c0_746 = arith.constant 0 : index
    %1054 = vector.load %arg2[%1053, %c0_745, %c0_746] : memref<33x2x8xf32, #tpu.memory_space<vmem>>, vector<1x2x8xf32>
    %1055 = vector.shape_cast %1054 : vector<1x2x8xf32> to vector<2x8xf32>
    %c28_747 = arith.constant 28 : index
    %c40_748 = arith.constant 40 : index
    %1056 = vector.load %arg6[%c28_747, %c40_748] : memref<32x72xf32, #tpu.memory_space<vmem>>, vector<2x8xf32>
    tpu.vector_store %arg6[%c28_747, %c40_748], %1055 {strides = array<i32>} : memref<32x72xf32, #tpu.memory_space<vmem>>, vector<2x8xf32>,
    %c126_i32_749 = arith.constant 126 : i32
    %1057 = arith.addi %0, %c126_i32_749 : i32
    %c6_i32_750 = arith.constant 6 : i32
    %1058 = arith.addi %1057, %c6_i32_750 : i32
    %1059 = arith.index_cast %1058 : i32 to index
    %1060 = memref.load %arg1[%1059] : memref<144xi32, #tpu.memory_space<smem>>
    %1061 = arith.index_cast %1060 : i32 to index
    %c0_751 = arith.constant 0 : index
    %c0_752 = arith.constant 0 : index
    %1062 = vector.load %arg2[%1061, %c0_751, %c0_752] : memref<33x2x8xf32, #tpu.memory_space<vmem>>, vector<1x2x8xf32>
    %1063 = vector.shape_cast %1062 : vector<1x2x8xf32> to vector<2x8xf32>
    %c28_753 = arith.constant 28 : index
    %c48_754 = arith.constant 48 : index
    %1064 = vector.load %arg6[%c28_753, %c48_754] : memref<32x72xf32, #tpu.memory_space<vmem>>, vector<2x8xf32>
    tpu.vector_store %arg6[%c28_753, %c48_754], %1063 {strides = array<i32>} : memref<32x72xf32, #tpu.memory_space<vmem>>, vector<2x8xf32>,
    %c126_i32_755 = arith.constant 126 : i32
    %1065 = arith.addi %0, %c126_i32_755 : i32
    %c7_i32_756 = arith.constant 7 : i32
    %1066 = arith.addi %1065, %c7_i32_756 : i32
    %1067 = arith.index_cast %1066 : i32 to index
    %1068 = memref.load %arg1[%1067] : memref<144xi32, #tpu.memory_space<smem>>
    %1069 = arith.index_cast %1068 : i32 to index
    %c0_757 = arith.constant 0 : index
    %c0_758 = arith.constant 0 : index
    %1070 = vector.load %arg2[%1069, %c0_757, %c0_758] : memref<33x2x8xf32, #tpu.memory_space<vmem>>, vector<1x2x8xf32>
    %1071 = vector.shape_cast %1070 : vector<1x2x8xf32> to vector<2x8xf32>
    %c28_759 = arith.constant 28 : index
    %c56_760 = arith.constant 56 : index
    %1072 = vector.load %arg6[%c28_759, %c56_760] : memref<32x72xf32, #tpu.memory_space<vmem>>, vector<2x8xf32>
    tpu.vector_store %arg6[%c28_759, %c56_760], %1071 {strides = array<i32>} : memref<32x72xf32, #tpu.memory_space<vmem>>, vector<2x8xf32>,
    %c126_i32_761 = arith.constant 126 : i32
    %1073 = arith.addi %0, %c126_i32_761 : i32
    %c8_i32_762 = arith.constant 8 : i32
    %1074 = arith.addi %1073, %c8_i32_762 : i32
    %1075 = arith.index_cast %1074 : i32 to index
    %1076 = memref.load %arg1[%1075] : memref<144xi32, #tpu.memory_space<smem>>
    %1077 = arith.index_cast %1076 : i32 to index
    %c0_763 = arith.constant 0 : index
    %c0_764 = arith.constant 0 : index
    %1078 = vector.load %arg2[%1077, %c0_763, %c0_764] : memref<33x2x8xf32, #tpu.memory_space<vmem>>, vector<1x2x8xf32>
    %1079 = vector.shape_cast %1078 : vector<1x2x8xf32> to vector<2x8xf32>
    %c28_765 = arith.constant 28 : index
    %c64_766 = arith.constant 64 : index
    %1080 = vector.load %arg6[%c28_765, %c64_766] : memref<32x72xf32, #tpu.memory_space<vmem>>, vector<2x8xf32>
    tpu.vector_store %arg6[%c28_765, %c64_766], %1079 {strides = array<i32>} : memref<32x72xf32, #tpu.memory_space<vmem>>, vector<2x8xf32>,
    %c135_i32 = arith.constant 135 : i32
    %1081 = arith.addi %0, %c135_i32 : i32
    %c0_i32_767 = arith.constant 0 : i32
    %1082 = arith.addi %1081, %c0_i32_767 : i32
    %1083 = arith.index_cast %1082 : i32 to index
    %1084 = memref.load %arg1[%1083] : memref<144xi32, #tpu.memory_space<smem>>
    %1085 = arith.index_cast %1084 : i32 to index
    %c0_768 = arith.constant 0 : index
    %c0_769 = arith.constant 0 : index
    %1086 = vector.load %arg2[%1085, %c0_768, %c0_769] : memref<33x2x8xf32, #tpu.memory_space<vmem>>, vector<1x2x8xf32>
    %1087 = vector.shape_cast %1086 : vector<1x2x8xf32> to vector<2x8xf32>
    %c30 = arith.constant 30 : index
    %c0_770 = arith.constant 0 : index
    %1088 = vector.load %arg6[%c30, %c0_770] : memref<32x72xf32, #tpu.memory_space<vmem>>, vector<2x8xf32>
    tpu.vector_store %arg6[%c30, %c0_770], %1087 {strides = array<i32>} : memref<32x72xf32, #tpu.memory_space<vmem>>, vector<2x8xf32>,
    %c135_i32_771 = arith.constant 135 : i32
    %1089 = arith.addi %0, %c135_i32_771 : i32
    %c1_i32_772 = arith.constant 1 : i32
    %1090 = arith.addi %1089, %c1_i32_772 : i32
    %1091 = arith.index_cast %1090 : i32 to index
    %1092 = memref.load %arg1[%1091] : memref<144xi32, #tpu.memory_space<smem>>
    %1093 = arith.index_cast %1092 : i32 to index
    %c0_773 = arith.constant 0 : index
    %c0_774 = arith.constant 0 : index
    %1094 = vector.load %arg2[%1093, %c0_773, %c0_774] : memref<33x2x8xf32, #tpu.memory_space<vmem>>, vector<1x2x8xf32>
    %1095 = vector.shape_cast %1094 : vector<1x2x8xf32> to vector<2x8xf32>
    %c30_775 = arith.constant 30 : index
    %c8_776 = arith.constant 8 : index
    %1096 = vector.load %arg6[%c30_775, %c8_776] : memref<32x72xf32, #tpu.memory_space<vmem>>, vector<2x8xf32>
    tpu.vector_store %arg6[%c30_775, %c8_776], %1095 {strides = array<i32>} : memref<32x72xf32, #tpu.memory_space<vmem>>, vector<2x8xf32>,
    %c135_i32_777 = arith.constant 135 : i32
    %1097 = arith.addi %0, %c135_i32_777 : i32
    %c2_i32_778 = arith.constant 2 : i32
    %1098 = arith.addi %1097, %c2_i32_778 : i32
    %1099 = arith.index_cast %1098 : i32 to index
    %1100 = memref.load %arg1[%1099] : memref<144xi32, #tpu.memory_space<smem>>
    %1101 = arith.index_cast %1100 : i32 to index
    %c0_779 = arith.constant 0 : index
    %c0_780 = arith.constant 0 : index
    %1102 = vector.load %arg2[%1101, %c0_779, %c0_780] : memref<33x2x8xf32, #tpu.memory_space<vmem>>, vector<1x2x8xf32>
    %1103 = vector.shape_cast %1102 : vector<1x2x8xf32> to vector<2x8xf32>
    %c30_781 = arith.constant 30 : index
    %c16_782 = arith.constant 16 : index
    %1104 = vector.load %arg6[%c30_781, %c16_782] : memref<32x72xf32, #tpu.memory_space<vmem>>, vector<2x8xf32>
    tpu.vector_store %arg6[%c30_781, %c16_782], %1103 {strides = array<i32>} : memref<32x72xf32, #tpu.memory_space<vmem>>, vector<2x8xf32>,
    %c135_i32_783 = arith.constant 135 : i32
    %1105 = arith.addi %0, %c135_i32_783 : i32
    %c3_i32_784 = arith.constant 3 : i32
    %1106 = arith.addi %1105, %c3_i32_784 : i32
    %1107 = arith.index_cast %1106 : i32 to index
    %1108 = memref.load %arg1[%1107] : memref<144xi32, #tpu.memory_space<smem>>
    %1109 = arith.index_cast %1108 : i32 to index
    %c0_785 = arith.constant 0 : index
    %c0_786 = arith.constant 0 : index
    %1110 = vector.load %arg2[%1109, %c0_785, %c0_786] : memref<33x2x8xf32, #tpu.memory_space<vmem>>, vector<1x2x8xf32>
    %1111 = vector.shape_cast %1110 : vector<1x2x8xf32> to vector<2x8xf32>
    %c30_787 = arith.constant 30 : index
    %c24_788 = arith.constant 24 : index
    %1112 = vector.load %arg6[%c30_787, %c24_788] : memref<32x72xf32, #tpu.memory_space<vmem>>, vector<2x8xf32>
    tpu.vector_store %arg6[%c30_787, %c24_788], %1111 {strides = array<i32>} : memref<32x72xf32, #tpu.memory_space<vmem>>, vector<2x8xf32>,
    %c135_i32_789 = arith.constant 135 : i32
    %1113 = arith.addi %0, %c135_i32_789 : i32
    %c4_i32_790 = arith.constant 4 : i32
    %1114 = arith.addi %1113, %c4_i32_790 : i32
    %1115 = arith.index_cast %1114 : i32 to index
    %1116 = memref.load %arg1[%1115] : memref<144xi32, #tpu.memory_space<smem>>
    %1117 = arith.index_cast %1116 : i32 to index
    %c0_791 = arith.constant 0 : index
    %c0_792 = arith.constant 0 : index
    %1118 = vector.load %arg2[%1117, %c0_791, %c0_792] : memref<33x2x8xf32, #tpu.memory_space<vmem>>, vector<1x2x8xf32>
    %1119 = vector.shape_cast %1118 : vector<1x2x8xf32> to vector<2x8xf32>
    %c30_793 = arith.constant 30 : index
    %c32_794 = arith.constant 32 : index
    %1120 = vector.load %arg6[%c30_793, %c32_794] : memref<32x72xf32, #tpu.memory_space<vmem>>, vector<2x8xf32>
    tpu.vector_store %arg6[%c30_793, %c32_794], %1119 {strides = array<i32>} : memref<32x72xf32, #tpu.memory_space<vmem>>, vector<2x8xf32>,
    %c135_i32_795 = arith.constant 135 : i32
    %1121 = arith.addi %0, %c135_i32_795 : i32
    %c5_i32_796 = arith.constant 5 : i32
    %1122 = arith.addi %1121, %c5_i32_796 : i32
    %1123 = arith.index_cast %1122 : i32 to index
    %1124 = memref.load %arg1[%1123] : memref<144xi32, #tpu.memory_space<smem>>
    %1125 = arith.index_cast %1124 : i32 to index
    %c0_797 = arith.constant 0 : index
    %c0_798 = arith.constant 0 : index
    %1126 = vector.load %arg2[%1125, %c0_797, %c0_798] : memref<33x2x8xf32, #tpu.memory_space<vmem>>, vector<1x2x8xf32>
    %1127 = vector.shape_cast %1126 : vector<1x2x8xf32> to vector<2x8xf32>
    %c30_799 = arith.constant 30 : index
    %c40_800 = arith.constant 40 : index
    %1128 = vector.load %arg6[%c30_799, %c40_800] : memref<32x72xf32, #tpu.memory_space<vmem>>, vector<2x8xf32>
    tpu.vector_store %arg6[%c30_799, %c40_800], %1127 {strides = array<i32>} : memref<32x72xf32, #tpu.memory_space<vmem>>, vector<2x8xf32>,
    %c135_i32_801 = arith.constant 135 : i32
    %1129 = arith.addi %0, %c135_i32_801 : i32
    %c6_i32_802 = arith.constant 6 : i32
    %1130 = arith.addi %1129, %c6_i32_802 : i32
    %1131 = arith.index_cast %1130 : i32 to index
    %1132 = memref.load %arg1[%1131] : memref<144xi32, #tpu.memory_space<smem>>
    %1133 = arith.index_cast %1132 : i32 to index
    %c0_803 = arith.constant 0 : index
    %c0_804 = arith.constant 0 : index
    %1134 = vector.load %arg2[%1133, %c0_803, %c0_804] : memref<33x2x8xf32, #tpu.memory_space<vmem>>, vector<1x2x8xf32>
    %1135 = vector.shape_cast %1134 : vector<1x2x8xf32> to vector<2x8xf32>
    %c30_805 = arith.constant 30 : index
    %c48_806 = arith.constant 48 : index
    %1136 = vector.load %arg6[%c30_805, %c48_806] : memref<32x72xf32, #tpu.memory_space<vmem>>, vector<2x8xf32>
    tpu.vector_store %arg6[%c30_805, %c48_806], %1135 {strides = array<i32>} : memref<32x72xf32, #tpu.memory_space<vmem>>, vector<2x8xf32>,
    %c135_i32_807 = arith.constant 135 : i32
    %1137 = arith.addi %0, %c135_i32_807 : i32
    %c7_i32_808 = arith.constant 7 : i32
    %1138 = arith.addi %1137, %c7_i32_808 : i32
    %1139 = arith.index_cast %1138 : i32 to index
    %1140 = memref.load %arg1[%1139] : memref<144xi32, #tpu.memory_space<smem>>
    %1141 = arith.index_cast %1140 : i32 to index
    %c0_809 = arith.constant 0 : index
    %c0_810 = arith.constant 0 : index
    %1142 = vector.load %arg2[%1141, %c0_809, %c0_810] : memref<33x2x8xf32, #tpu.memory_space<vmem>>, vector<1x2x8xf32>
    %1143 = vector.shape_cast %1142 : vector<1x2x8xf32> to vector<2x8xf32>
    %c30_811 = arith.constant 30 : index
    %c56_812 = arith.constant 56 : index
    %1144 = vector.load %arg6[%c30_811, %c56_812] : memref<32x72xf32, #tpu.memory_space<vmem>>, vector<2x8xf32>
    tpu.vector_store %arg6[%c30_811, %c56_812], %1143 {strides = array<i32>} : memref<32x72xf32, #tpu.memory_space<vmem>>, vector<2x8xf32>,
    %c135_i32_813 = arith.constant 135 : i32
    %1145 = arith.addi %0, %c135_i32_813 : i32
    %c8_i32_814 = arith.constant 8 : i32
    %1146 = arith.addi %1145, %c8_i32_814 : i32
    %1147 = arith.index_cast %1146 : i32 to index
    %1148 = memref.load %arg1[%1147] : memref<144xi32, #tpu.memory_space<smem>>
    %1149 = arith.index_cast %1148 : i32 to index
    %c0_815 = arith.constant 0 : index
    %c0_816 = arith.constant 0 : index
    %1150 = vector.load %arg2[%1149, %c0_815, %c0_816] : memref<33x2x8xf32, #tpu.memory_space<vmem>>, vector<1x2x8xf32>
    %1151 = vector.shape_cast %1150 : vector<1x2x8xf32> to vector<2x8xf32>
    %c30_817 = arith.constant 30 : index
    %c64_818 = arith.constant 64 : index
    %1152 = vector.load %arg6[%c30_817, %c64_818] : memref<32x72xf32, #tpu.memory_space<vmem>>, vector<2x8xf32>
    tpu.vector_store %arg6[%c30_817, %c64_818], %1151 {strides = array<i32>} : memref<32x72xf32, #tpu.memory_space<vmem>>, vector<2x8xf32>,
    %c0_819 = arith.constant 0 : index
    %c0_820 = arith.constant 0 : index
    %1153 = vector.load %arg6[%c0_819, %c0_820] : memref<32x72xf32, #tpu.memory_space<vmem>>, vector<32x72xf32>
    %c0_821 = arith.constant 0 : index
    %c0_822 = arith.constant 0 : index
    %1154 = vector.load %arg3[%c0_821, %c0_822] : memref<72x128xf32, #tpu.memory_space<vmem>>, vector<72x128xf32>
    %cst = arith.constant dense<0.000000e+00> : vector<32x128xf32>
    %1155 = tpu.matmul %1153, %1154, %cst {dimension_numbers = #tpu.dot_dimension_numbers<[1], [0], [0], [1], [0, 0, 1, 1], [], []>} : vector<32x72xf32>, vector<72x128xf32>, vector<32x128xf32> -> vector<32x128xf32>
    %c0_823 = arith.constant 0 : index
    %c0_824 = arith.constant 0 : index
    %1156 = vector.load %arg4[%c0_823, %c0_824] : memref<32x128xf32, #tpu.memory_space<vmem>>, vector<32x128xf32>
    %1157 = arith.addf %1155, %1156 : vector<32x128xf32>
    %c0_825 = arith.constant 0 : index
    %c0_826 = arith.constant 0 : index
    %1158 = vector.load %arg5[%c0_825, %c0_826] : memref<32x128xf32, #tpu.memory_space<vmem>>, vector<32x128xf32>
    tpu.vector_store %arg5[%c0_825, %c0_826], %1157 {strides = array<i32>} : memref<32x128xf32, #tpu.memory_space<vmem>>, vector<32x128xf32>,
    return
  }
  func.func @transform_0(%arg0: i32, %arg1: memref<144xi32, #tpu.memory_space<smem>>) -> (i32, i32, i32) {
    %c0_i32 = arith.constant 0 : i32
    %c0_i32_0 = arith.constant 0 : i32
    %c0_i32_1 = arith.constant 0 : i32
    %c0_i32_2 = arith.constant 0 : i32
    return %c0_i32, %c0_i32_0, %c0_i32_1 : i32, i32, i32
  }
  func.func @transform_1(%arg0: i32, %arg1: memref<144xi32, #tpu.memory_space<smem>>) -> (i32, i32) {
    %c0_i32 = arith.constant 0 : i32
    %c0_i32_0 = arith.constant 0 : i32
    %c0_i32_1 = arith.constant 0 : i32
    return %c0_i32, %c0_i32_0 : i32, i32
  }
  func.func @transform_2(%arg0: i32, %arg1: memref<144xi32, #tpu.memory_space<smem>>) -> (i32, i32) {
    %c0_i32 = arith.constant 0 : i32
    %c0_i32_0 = arith.constant 0 : i32
    return %arg0, %c0_i32 : i32, i32
  }
  func.func @transform_3(%arg0: i32, %arg1: memref<144xi32, #tpu.memory_space<smem>>) -> (i32, i32) {
    %c0_i32 = arith.constant 0 : i32
    %c0_i32_0 = arith.constant 0 : i32
    return %arg0, %c0_i32 : i32, i32
  }
}

</mosaic_0001>

<bundles_post_ra>
// kernel: tpu_custom_call.1
= control target key start
LH: loop header
LB: loop body
LE: loop exit
PB: predicated region body
PF: predicated region fallthrough
CT: control target
= control target key end

     0   :  { %s3525_s0 = inlined_call_operand.vmem [shape: s32[144], index: 0, kind: input, shape index: {}]   ;;  %s3526_s1 = inlined_call_operand.vmem [shape: f32[33,2,8], index: 1, kind: input, shape index: {}]   ;;  %s3527_s2 = inlined_call_operand.vmem [shape: f32[72,128], index: 2, kind: input, shape index: {}]   ;;  %s3528_s3 = inlined_call_operand.hbm [shape: f32[32,128], index: 3, kind: input, shape index: {}]   ;;  %s3529_s4 = inlined_call_operand.hbm [shape: f32[32,128], index: 4, kind: output, shape index: {}]  }
   0x1   :  { %3540 = sst [smem:[#allocation12_spill]] %s3527_s2  ;;  %s9_s17 = sshll.u32 %s3525_s0, 4  ;;  %s10_s17 = int_to_ptr.vmem [resolvable:$true] %s9_s17 }
   0x2   :  { %3541 = sst [smem:[#allocation13_spill]] %s3529_s4  ;;  %s2211_s18 = scalar_lea.vmem %s10_s17, 32 }
   0x3   :  { %p2212_p0 = scmp.ne.s32.totalorder %s10_s17, %s2211_s18  ;;  %p2216_p1 = scmp.lt.s32.totalorder %s10_s17, %s10_s17 }
   0x4   :  { %p2217_p2 = scmp.lt.s32.totalorder %s2211_s18, %s2211_s18 }
   0x6   :  { %p2218_p3 = por %p2217_p2, %p2216_p1 }
   0x8   :  { %p2219_p4 = pnand %p2218_p3, %p2212_p0 }
   0xa   :  { %2222 = shalt.err (!%p2219_p4)  }
   0xb   :  { %s2273_s19 = smov [#allocation4]  }
   0xc   :  { %12 = dma.vmem_to_smem %s10_s17, 32, %s2273_s19, [#allocation3] }
   0xd   :  { %2267 = dma.done.wait [#allocation3], 32 }
   0xe   :  { %2268 = vsyncadd [#allocation3], 4294967264 }
   0xf   :  { %14 = sfence }
  0x10   :  { %15 = vsyncpa [#allocation6], 0 }
  0x11   :  { %16 = vsyncpa [#allocation7], 0  ;;  %s2274_s20 = smov [#allocation5]   ;;  %s2223_s23 = scalar_lea.hbm %s3528_s3, 512 }
  0x12   :  { %s26_s21 = sshll.u32 %s2274_s20, 4  ;;  %p2224_p5 = scmp.ne.s32.totalorder %s3528_s3, %s2223_s23  ;;  %s27_s21 = int_to_ptr.vmem [resolvable:$true] %s26_s21 }
  0x13   :  { %p2227_p6 = scmp.lt.u32.totalorder %s2223_s23, %s3528_s3 }
  0x15   :  { %p2229_p7 = pnand %p2227_p6, %p2224_p5 }
  0x17   :  { %2232 = shalt.err (!%p2229_p7)
}
  0x18   :  { %s2233_s28 = scalar_lea.vmem %s27_s21, 512  ;;  %p2238_p9 = scmp.lt.s32.totalorder %s27_s21, %s27_s21 }
  0x19   :  { %p2234_p8 = scmp.ne.s32.totalorder %s27_s21, %s2233_s28  ;;  %p2239_p10 = scmp.lt.s32.totalorder %s2233_s28, %s2233_s28 }
  0x1b   :  { %p2240_p11 = por %p2239_p10, %p2238_p9 }
  0x1d   :  { %p2241_p12 = pnand %p2240_p11, %p2234_p8 }
  0x1f   :  { %2244 = shalt.err (!%p2241_p12)
}
  0x20   :  { %s3530_s29 = smov 128   ;;  %s3531_s30 = smov 8  }
  0x21   :  { %32 = dma.hbm_to_vmem [thread:$0]  %s3528_s3, 512, %s27_s21, [#allocation6], %s3530_s29, %s3530_s29, %s3531_s30  }
  0x22   :  { %2269 = dma.done.wait [#allocation6], 512  }
  0x23   :  { %2270 = vsyncadd [#allocation6], 4294966784  ;;  %s1882_s7 = sld [smem:[#allocation4 + $0x13]]  ;;  %s1846_s8 = sld [smem:[#allocation4 + $0x1]]  ;;  %vm41_vm0 = vcmask 58368   ;;  %vm52_vm1 = vcmask 123968  }
  0x24   :  { %s1900_s9 = sld [smem:[#allocation4 + $0x1c]]  ;;  %s1864_s10 = sld [smem:[#allocation4 + $0xa]]  ;;  %vm63_vm2 = vcmask 189568   ;;  %vm74_vm3 = vcmask 255168   ;;  %vm85_vm4 = vcmask 320768   ;;  %vm96_vm5 = vcmask 386368  }
  0x25   :  { %s2008_s11 = sld [smem:[#allocation4 + $0x52]]  ;;  %s1990_s12 = sld [smem:[#allocation4 + $0x49]]  ;;  %vm107_vm6 = vcmask 451968   ;;  %vm118_vm7 = vcmask 517568   ;;  %vm129_vm8 = vcmask 583168   ;;  %vm1438_vm9 = vcmask 588800  }
  0x26   :  { %s2328_s13 = sld [smem:[#allocation4 + $0x64]]  ;;  %s2330_s14 = sld [smem:[#allocation4 + $0x5b]] }
  0x27   :  { %s2332_s15 = sld [smem:[#allocation4 + $0xb]]  ;;  %s2334_s16 = sld [smem:[#allocation4 + $0x2]] }
  0x28   :  { %s2336_s17 = sld [smem:[#allocation4 + $0x1d]]  ;;  %s2338_s18 = sld [smem:[#allocation4 + $0x14]] }
  0x29   :  { %s1883_s3 = sshll.u32 %s1882_s7, 1  ;;  %s1847_s19 = sshll.u32 %s1846_s8, 1 }
  0x2a   :  { %s226_s22 = scalar_lea.vmem %s3526_s1, %s1883_s3  ;;  %s46_s24 = scalar_lea.vmem %s3526_s1, %s1847_s19 }
  0x2b   :  { %v227_v0 = vld [vmem:[%s226_s22] sm:$0x3]  ;;  %s1901_s25 = sshll.u32 %s1900_s9, 1  ;;  %s1865_s26 = sshll.u32 %s1864_s10, 1 }
  0x2c   :  { %v47_v1 = vld [vmem:[%s46_s24] sm:$0x3]  ;;  %229 = vrot.lane.b32.xlu1 %v227_v0, %s3531_s30  ;;  %s312_s5 = scalar_lea.vmem %s3526_s1, %s1901_s25  ;;  %s140_s8 = scalar_lea.vmem %s3526_s1, %s1865_s26 }
  0x2d   :  { %49 = vrot.lane.b32.xlu0 %v47_v1, %s3531_s30  ;;  %v313_v2 = vld [vmem:[%s312_s5] sm:$0x3]  ;;  %s2009_s3 = sshll.u32 %s2008_s11, 1  ;;  %s1991_s19 = sshll.u32 %s1990_s12, 1 }
  0x2e   :  { %v141_v3 = vld [vmem:[%s140_s8] sm:$0x3]  ;;  %s828_s20 = scalar_lea.vmem %s3526_s1, %s2009_s3  ;;  %s742_s0 = scalar_lea.vmem %s3526_s1, %s1991_s19 }
  0x2f   :  { %s2045_s23 = sshll.u32 %s2328_s13, 1  ;;  %s2027_s24 = sshll.u32 %s2330_s14, 1  ;;  %v829_v4 = vld [vmem:[%s828_s20] sm:$0x3] }
  0x30   :  { %315 = vrot.lane.b32.xlu1 %v313_v2, %s3531_s30  ;;  %s1000_s11 = scalar_lea.vmem %s3526_s1, %s2045_s23  ;;  %v743_v5 = vld [vmem:[%s742_s0] sm:$0x3]  ;;  %s1867_s12 = sshll.u32 %s2332_s15, 1 }
  0x31   :  { %143 = vrot.lane.b32.xlu0 %v141_v3, %s3531_s30  ;;  %s1849_s27 = sshll.u32 %s2334_s16, 1  ;;  %s914_s6 = scalar_lea.vmem %s3526_s1, %s2027_s24  ;;  %v1001_v6 = vld [vmem:[%s1000_s11] sm:$0x3] }
  0x32   :  { %s150_s7 = scalar_lea.vmem %s3526_s1, %s1867_s12  ;;  %s57_s19 = scalar_lea.vmem %s3526_s1, %s1849_s27  ;;  %v915_v7 = vld [vmem:[%s914_s6] sm:$0x3] }
  0x33   :  { %s1903_s15 = sshll.u32 %s2336_s17, 1  ;;  %s1936_s16 = sld [smem:[#allocation4 + $0x2e]]  ;;  %v151_v8 = vld [vmem:[%s150_s7] sm:$0x3] }
  0x34   :  { %831 = vrot.lane.b32.xlu1 %v829_v4, %s3531_s30  ;;  %s1918_s9 = sld [smem:[#allocation4 + $0x25]]  ;;  %s2381_s10 = sld [smem:[#allocation4 + $0x40]]  ;;  %v58_v9 = vld [vmem:[%s57_s19] sm:$0x3] }
  0x35   :  { %745 = vrot.lane.b32.xlu0 %v743_v5, %s3531_s30  ;;  %s1885_s20 = sshll.u32 %s2338_s18, 1  ;;  %s2384_s21 = sld [smem:[#allocation4 + $0x37]] }
  0x36   :  { %s322_s23 = scalar_lea.vmem %s3526_s1, %s1903_s15  ;;  %s236_s25 = scalar_lea.vmem %s3526_s1, %s1885_s20 }
  0x37   :  { %s2394_s26 = sld [smem:[#allocation4 + $0x53]]  ;;  %s2396_s11 = sld [smem:[#allocation4 + $0x4a]]  ;;  %v323_v10 = vld [vmem:[%s322_s23] sm:$0x3] }
  0x38   :  { %1003 = vrot.lane.b32.xlu1 %v1001_v6, %s3531_s30  ;;  %s3532_s12 = smov 16   ;;  %v237_v11 = vld [vmem:[%s236_s25] sm:$0x3]  ;;  %s2403_s13 = sld [smem:[#allocation4 + $0x65]] }
  0x39   :  { %917 = vrot.lane.b32.xlu0 %v915_v7, %s3531_s30  ;;  %s1937_s18 = sshll.u32 %s1936_s16, 1  ;;  %s2028_s15 = sld [smem:[#allocation4 + $0x5c]] }
  0x3a   :  { %s1919_s27 = sshll.u32 %s1918_s9, 1  ;;  %s484_s6 = scalar_lea.vmem %s3526_s1, %s1937_s18 }
  0x3b   :  { %s398_s8 = scalar_lea.vmem %s3526_s1, %s1919_s27  ;;  %s1973_s3 = sshll.u32 %s2381_s10, 1  ;;  %v485_v12 = vld [vmem:[%s484_s6] sm:$0x3] }
  0x3c   :  { %153 = vrot.lane.b32.xlu1 %v151_v8, %s3532_s12  ;;  %s1955_s19 = sshll.u32 %s2384_s21, 1  ;;  %v399_v13 = vld [vmem:[%s398_s8] sm:$0x3]  ;;  %s656_s20 = scalar_lea.vmem %s3526_s1, %s1973_s3 }
  0x3d   :  { %60 = vrot.lane.b32.xlu0 %v58_v9, %s3532_s12  ;;  %s2080_s22 = sld [smem:[#allocation4 + $0x76]]  ;;  %s570_s17 = scalar_lea.vmem %s3526_s1, %s1955_s19  ;;  %v657_v14 = vld [vmem:[%s656_s20] sm:$0x3] }
  0x3e   :  { %s2011_s24 = sshll.u32 %s2394_s26, 1  ;;  %s1993_s10 = sshll.u32 %s2396_s11, 1  ;;  %v571_v15 = vld [vmem:[%s570_s17] sm:$0x3] }
  0x3f   :  { %s2420_s21 = sld [smem:[#allocation4 + $0x6d]]  ;;  %s2424_s25 = sld [smem:[#allocation4 + $0x88]] }
  0x40   :  { %325 = vrot.lane.b32.xlu1 %v323_v10, %s3532_s12  ;;  %s838_s28 = scalar_lea.vmem %s3526_s1, %s2011_s24  ;;  %s2429_s5 = sld [smem:[#allocation4 + $0x7f]] }
  0x41   :  { %239 = vrot.lane.b32.xlu0 %v237_v11, %s3532_s12  ;;  %s752_s11 = scalar_lea.vmem %s3526_s1, %s1993_s10  ;;  %s2047_s14 = sshll.u32 %s2403_s13, 1  ;;  %v839_v16 = vld [vmem:[%s838_s28] sm:$0x3] }
  0x42   :  { %s2029_s7 = sshll.u32 %s2028_s15, 1  ;;  %v753_v17 = vld [vmem:[%s752_s11] sm:$0x3]  ;;  %s1010_s19 = scalar_lea.vmem %s3526_s1, %s2047_s14 }
  0x43   :  { %s2081_s16 = sshll.u32 %s2080_s22, 1  ;;  %s924_s0 = scalar_lea.vmem %s3526_s1, %s2029_s7  ;;  %v1011_v18 = vld [vmem:[%s1010_s19] sm:$0x3] }
  0x44   :  { %487 = vrot.lane.b32.xlu1 %v485_v12, %s3531_s30  ;;  %s2443_s23 = sld [smem:[#allocation4 + $0xc]]  ;;  %s2446_s15 = sld [smem:[#allocation4 + $0x3]]  ;;  %v925_v19 = vld [vmem:[%s924_s0] sm:$0x3] }
  0x45   :  { %401 = vrot.lane.b32.xlu0 %v399_v13, %s3531_s30  ;;  %s2063_s13 = sshll.u32 %s2420_s21, 1  ;;  %s1172_s10 = scalar_lea.vmem %s3526_s1, %s2081_s16 }
  0x46   :  { %s2117_s22 = sshll.u32 %s2424_s25, 1  ;;  %s2099_s18 = sshll.u32 %s2429_s5, 1  ;;  %v1173_v20 = vld [vmem:[%s1172_s10] sm:$0x3] }
  0x47   :  { %s1086_s21 = scalar_lea.vmem %s3526_s1, %s2063_s13  ;;  %s2458_s6 = sld [smem:[#allocation4 + $0x1e]] }
  0x48   :  { %659 = vrot.lane.b32.xlu1 %v657_v14, %s3531_s30  ;;  %s2460_s26 = sld [smem:[#allocation4 + $0x15]]  ;;  %s1344_s7 = scalar_lea.vmem %s3526_s1, %s2117_s22  ;;  %v1087_v21 = vld [vmem:[%s1086_s21] sm:$0x3] }
  0x49   :  { %573 = vrot.lane.b32.xlu0 %v571_v15, %s3531_s30  ;;  %s1258_s5 = scalar_lea.vmem %s3526_s1, %s2099_s18  ;;  %s2470_s3 = sld [smem:[#allocation4 + $0x2f]]  ;;  %v1345_v22 = vld [vmem:[%s1344_s7] sm:$0x3] }
  0x4a   :  { %s2472_s19 = sld [smem:[#allocation4 + $0x26]]  ;;  %s1869_s16 = sshll.u32 %s2443_s23, 1  ;;  %v1259_v23 = vld [vmem:[%s1258_s5] sm:$0x3] }
  0x4b   :  { %s2475_s9 = sld [smem:[#allocation4 + $0x41]]  ;;  %s1851_s20 = sshll.u32 %s2446_s15, 1 }
  0x4c   :  { %841 = vrot.lane.b32.xlu1 %v839_v16, %s3532_s12  ;;  %s2478_s0 = sld [smem:[#allocation4 + $0x38]]  ;;  %s2482_s13 = sld [smem:[#allocation4 + $0x54]] }
  0x4d   :  { %755 = vrot.lane.b32.xlu0 %v753_v17, %s3532_s12  ;;  %s160_s23 = scalar_lea.vmem %s3526_s1, %s1869_s16  ;;  %s68_s15 = scalar_lea.vmem %s3526_s1, %s1851_s20 }
  0x4e   :  { %s1905_s18 = sshll.u32 %s2458_s6, 1  ;;  %s1887_s27 = sshll.u32 %s2460_s26, 1  ;;  %v161_v24 = vld [vmem:[%s160_s23] sm:$0x3] }
  0x4f   :  { %s2492_s28 = sld [smem:[#allocation4 + $0x4b]]  ;;  %s2496_s21 = sld [smem:[#allocation4 + $0x66]]  ;;  %v69_v25 = vld [vmem:[%s68_s15] sm:$0x3] }
  0x50   :  { %1013 = vrot.lane.b32.xlu1 %v1011_v18, %s3532_s12  ;;  %s2498_s11 = sld [smem:[#allocation4 + $0x5d]]  ;;  %s332_s8 = scalar_lea.vmem %s3526_s1, %s1905_s18 }
  0x51   :  { %927 = vrot.lane.b32.xlu0 %v925_v19, %s3532_s12  ;;  %s1939_s25 = sshll.u32 %s2470_s3, 1  ;;  %s246_s5 = scalar_lea.vmem %s3526_s1, %s1887_s27  ;;  %v333_v26 = vld [vmem:[%s332_s8] sm:$0x3] }
  0x52   :  { %s1921_s16 = sshll.u32 %s2472_s19, 1  ;;  %s1975_s20 = sshll.u32 %s2475_s9, 1  ;;  %v247_v27 = vld [vmem:[%s246_s5] sm:$0x3] }
  0x53   :  { %s1957_s17 = sshll.u32 %s2478_s0, 1  ;;  %s3534_s24 = smov 24  }
  0x54   :  { %1175 = vrot.lane.b32.xlu1 %v1173_v20, %s3531_s30  ;;  %s494_s22 = scalar_lea.vmem %s3526_s1, %s1939_s25  ;;  %s2013_s3 = sshll.u32 %s2482_s13, 1 }
  0x55   :  { %1089 = vrot.lane.b32.xlu0 %v1087_v21, %s3531_s30  ;;  %s408_s19 = scalar_lea.vmem %s3526_s1, %s1921_s16  ;;  %s2519_s9 = sld [smem:[#allocation4 + $0x77]]  ;;  %v495_v28 = vld [vmem:[%s494_s22] sm:$0x3] }
  0x56   :  { %s666_s14 = scalar_lea.vmem %s3526_s1, %s1975_s20  ;;  %s580_s26 = scalar_lea.vmem %s3526_s1, %s1957_s17  ;;  %v409_v29 = vld [vmem:[%s408_s19] sm:$0x3] }
  0x57   :  { %s848_s13 = scalar_lea.vmem %s3526_s1, %s2013_s3  ;;  %s1995_s8 = sshll.u32 %s2492_s28, 1  ;;  %v667_v30 = vld [vmem:[%s666_s14] sm:$0x3] }
  0x58   :  { %1347 = vrot.lane.b32.xlu1 %v1345_v22, %s3531_s30  ;;  %s2049_s25 = sshll.u32 %s2496_s21, 1  ;;  %s2031_s5 = sshll.u32 %s2498_s11, 1  ;;  %v581_v31 = vld [vmem:[%s580_s26] sm:$0x3] }
  0x59   :  { %1261 = vrot.lane.b32.xlu0 %v1259_v23, %s3531_s30  ;;  %s2535_s16 = sld [smem:[#allocation4 + $0x6e]]  ;;  %s2537_s20 = sld [smem:[#allocation4 + $0x89]]  ;;  %v849_v32 = vld [vmem:[%s848_s13] sm:$0x3] }
  0x5a   :  { %s2539_s10 = sld [smem:[#allocation4 + $0x80]]  ;;  %s2541_s17 = sld [smem:[#allocation4 + $0xd]] }
  0x5b   :  { %s2543_s29 = sld [smem:[#allocation4 + $0x4]]  ;;  %s2545_s28 = sld [smem:[#allocation4 + $0x1f]] }
  0x5c   :  { %163 = vrot.lane.b32.xlu1 %v161_v24, %s3534_s24  ;;  %s762_s11 = scalar_lea.vmem %s3526_s1, %s1995_s8  ;;  %s1020_s18 = scalar_lea.vmem %s3526_s1, %s2049_s25 }
  0x5d   :  { %71 = vrot.lane.b32.xlu0 %v69_v25, %s3534_s24  ;;  %s934_s27 = scalar_lea.vmem %s3526_s1, %s2031_s5  ;;  %s2083_s7 = sshll.u32 %s2519_s9, 1  ;;  %v763_v33 = vld [vmem:[%s762_s11] sm:$0x3] }
  0x5e   :  { %s2559_s6 = sld [smem:[#allocation4 + $0x16]]  ;;  %s2561_s23 = sld [smem:[#allocation4 + $0x30]]  ;;  %v1021_v34 = vld [vmem:[%s1020_s18] sm:$0x3] }
  0x5f   :  { %s2563_s8 = sld [smem:[#allocation4 + $0x27]]  ;;  %s1182_s26 = scalar_lea.vmem %s3526_s1, %s2083_s7  ;;  %v935_v35 = vld [vmem:[%s934_s27] sm:$0x3] }
  0x60   :  { %335 = vrot.lane.b32.xlu1 %v333_v26, %s3534_s24  ;;  %s2570_s21 = sld [smem:[#allocation4 + $0x42]]  ;;  %s2065_s5 = sshll.u32 %s2535_s16, 1  ;;  %v1183_v36 = vld [vmem:[%s1182_s26] sm:$0x3] }
  0x61   :  { %249 = vrot.lane.b32.xlu0 %v247_v27, %s3534_s24  ;;  %s2119_s9 = sshll.u32 %s2537_s20, 1  ;;  %s2101_s22 = sshll.u32 %s2539_s10, 1 }
  0x62   :  { %s1871_s3 = sshll.u32 %s2541_s17, 1  ;;  %s1853_s15 = sshll.u32 %s2543_s29, 1 }
  0x63   :  { %s1907_s19 = sshll.u32 %s2545_s28, 1  ;;  %s1096_s7 = scalar_lea.vmem %s3526_s1, %s2065_s5 }
  0x64   :  { %497 = vrot.lane.b32.xlu1 %v495_v28, %s3532_s12  ;;  %s1354_s16 = scalar_lea.vmem %s3526_s1, %s2119_s9  ;;  %s1268_s17 = scalar_lea.vmem %s3526_s1, %s2101_s22  ;;  %v1097_v37 = vld [vmem:[%s1096_s7] sm:$0x3] }
  0x65   :  { %411 = vrot.lane.b32.xlu0 %v409_v29, %s3532_s12  ;;  %s2592_s11 = scalar_lea.vmem %s3526_s1, %s1871_s3  ;;  %s2597_s5 = scalar_lea.vmem %s3526_s1, %s1853_s15  ;;  %v1355_v38 = vld [vmem:[%s1354_s16] sm:$0x3] }
  0x66   :  { %s2602_s9 = scalar_lea.vmem %s3526_s1, %s1907_s19  ;;  %s1889_s18 = sshll.u32 %s2559_s6, 1  ;;  %v1269_v39 = vld [vmem:[%s1268_s17] sm:$0x3] }
  0x67   :  { %s2605_s27 = sld [smem:[#allocation4 + $0x39]]  ;;  %s1941_s22 = sshll.u32 %s2561_s23, 1  ;;  %v171_v40 = vld [vmem:[%s2592_s11] sm:$0x3] }
  0x68   :  { %669 = vrot.lane.b32.xlu1 %v667_v30, %s3532_s12  ;;  %s1923_s3 = sshll.u32 %s2563_s8, 1  ;;  %s1977_s25 = sshll.u32 %s2570_s21, 1  ;;  %v80_v41 = vld [vmem:[%s2597_s5] sm:$0x3] }
  0x69   :  { %583 = vrot.lane.b32.xlu0 %v581_v31, %s3532_s12  ;;  %s2612_s30 = sld [smem:[#allocation4 + $0x55]]  ;;  %s2617_s19 = scalar_lea.vmem %s3526_s1, %s1889_s18  ;;  %v343_v42 = vld [vmem:[%s2602_s9] sm:$0x3] }
  0x6a   :  { %s2619_s6 = sld [smem:[#allocation4 + $0x4c]]  ;;  %s2624_s10 = scalar_lea.vmem %s3526_s1, %s1941_s22  ;;  %v257_v43 = vld [vmem:[%s2617_s19] sm:$0x3] }
  0x6b   :  { %s2626_s23 = sld [smem:[#allocation4 + $0x67]]  ;;  %s3542_s8 = smov 16   ;;  %v505_v44 = vld [vmem:[%s2624_s10] sm:$0x3] }
  0x6c   :  { %851 = vrot.lane.b32.xlu1 %v849_v32, %s3534_s24  ;;  %s2633_s7 = scalar_lea.vmem %s3526_s1, %s1923_s3  ;;  %s2638_s0 = scalar_lea.vmem %s3526_s1, %s1977_s25 }
  0x6d   :  { %765 = vrot.lane.b32.xlu0 %v763_v33, %s3534_s24  ;;  %s2640_s14 = sld [smem:[#allocation4 + $0x5e]]  ;;  %s2642_s18 = sld [smem:[#allocation4 + $0x78]]  ;;  %v419_v45 = vld [vmem:[%s2633_s7] sm:$0x3] }
  0x6e   :  { %s2644_s22 = sld [smem:[#allocation4 + $0x6f]]  ;;  %s2646_s16 = sld [smem:[#allocation4 + $0x8a]]  ;;  %v677_v48 = vld [vmem:[%s2638_s0] sm:$0x3] }
  0x6f   :  { %s1959_s12 = sshll.u32 %s2605_s27, 1  ;;  %s2649_s15 = sld [smem:[#allocation4 + $0x81]] }
  0x70   :  { %1023 = vrot.lane.b32.xlu1 %v1021_v34, %s3534_s24  ;;  %s2654_s17 = sld [smem:[#allocation4 + $0xe]]  ;;  %s2015_s3 = sshll.u32 %s2612_s30, 1 }
  0x71   :  { %937 = vrot.lane.b32.xlu0 %v935_v35, %s3534_s24  ;;  %s2658_s25 = sld [smem:[#allocation4 + $0x5]]  ;;  %s2663_s27 = scalar_lea.vmem %s3526_s1, %s1959_s12 }
  0x72   :  { %s1997_s26 = sshll.u32 %s2619_s6, 1  ;;  %s2051_s21 = sshll.u32 %s2626_s23, 1  ;;  %v591_v49 = vld [vmem:[%s2663_s27] sm:$0x3] }
  0x73   :  { %s1880_s29 = sld [smem:[#allocation4 + $0x12]]  ;;  %s2672_s30 = scalar_lea.vmem %s3526_s1, %s2015_s3 }
  0x74   :  { %1185 = vrot.lane.b32.xlu1 %v1183_v36, %s3542_s8  ;;  %s37_s28 = sld [smem:[#allocation4]]  ;;  %s2679_s23 = scalar_lea.vmem %s3526_s1, %s1997_s26  ;;  %v859_v50 = vld [vmem:[%s2672_s30] sm:$0x3] }
  0x75   :  { %1099 = vrot.lane.b32.xlu0 %v1097_v37, %s3542_s8  ;;  %s2681_s13 = sld [smem:[#allocation4 + $0x1b]]  ;;  %s2688_s4 = sld [smem:[#allocation4 + $0x9]]  ;;  %v773_v53 = vld [vmem:[%s2679_s23] sm:$0x3] }
  0x76   :  { %s2033_s11 = sshll.u32 %s2640_s14, 1  ;;  %s2085_s3 = sshll.u32 %s2642_s18, 1 }
  0x77   :  { %s3543_s5 = smov 32   ;;  %s2067_s9 = sshll.u32 %s2644_s22, 1 }
  0x78   :  { %1357 = vrot.lane.b32.xlu1 %v1355_v38, %s3542_s8  ;;  %s2696_s19 = sld [smem:[#allocation4 + $0x51]]  ;;  %s2699_s26 = sld [smem:[#allocation4 + $0x48]] }
  0x79   :  { %1271 = vrot.lane.b32.xlu0 %v1269_v39, %s3542_s8  ;;  %s3536_s8 = smov 32   ;;  %s1881_s24 = sshll.u32 %s1880_s29, 1 }
  0x7a   :  { %s220_s14 = scalar_lea.vmem %s3526_s1, %s1881_s24  ;;  %s1845_s18 = sshll.u32 %s37_s28, 1 }
  0x7b   :  { %s2707_s10 = scalar_lea.vmem %s3526_s1, %s2033_s11  ;;  %v221_v46 = vld [vmem:[%s220_s14] sm:$0x3]  ;;  %s39_s29 = scalar_lea.vmem %s3526_s1, %s1845_s18 }
  0x7c   :  { %173 = vrot.lane.b32.xlu1 %v171_v40, %s3536_s8  ;;  %s3544_s2 = smov 24   ;;  %s2717_s28 = scalar_lea.vmem %s3526_s1, %s2085_s3  ;;  %222 = vst.msk [vmem:[#allocation2 + $0x4] sm:$0x3] %vm41_vm0, %v221_v46  ;;  %v40_v47 = vld [vmem:[%s39_s29] sm:$0x3] }
  0x7d   :  { %82 = vrot.lane.b32.xlu0 %v80_v41, %s3536_s8  ;;  %s2686_s8 = scalar_lea.vmem %s3526_s1, %s2051_s21  ;;  %s2121_s24 = sshll.u32 %s2646_s16, 1  ;;  %42 = vst.msk [vmem:[#allocation2] sm:$0x3] %vm41_vm0, %v40_v47  ;;  %v945_v57 = vld [vmem:[%s2707_s10] sm:$0x3] }
  0x7e   :  { %s2726_s18 = scalar_lea.vmem %s3526_s1, %s2067_s9  ;;  %s1899_s6 = sshll.u32 %s2681_s13, 1  ;;  %v1031_v55 = vld [vmem:[%s2686_s8] sm:$0x3] }
  0x7f   :  { %s306_s3 = scalar_lea.vmem %s3526_s1, %s1899_s6  ;;  %s1863_s16 = sshll.u32 %s2688_s4, 1  ;;  %v1193_v58 = vld [vmem:[%s2717_s28] sm:$0x3] }
  0x80   :  { %345 = vrot.lane.b32.xlu1 %v343_v42, %s3543_s5  ;;  %s2738_s27 = scalar_lea.vmem %s3526_s1, %s2121_s24  ;;  %v307_v51 = vld [vmem:[%s306_s3] sm:$0x3]  ;;  %s134_s21 = scalar_lea.vmem %s3526_s1, %s1863_s16 }
  0x81   :  { %259 = vrot.lane.b32.xlu0 %v257_v43, %s3543_s5  ;;  %s2745_s13 = sld [smem:[#allocation4 + $0x20]]  ;;  %s2747_s4 = sld [smem:[#allocation4 + $0x17]]  ;;  %308 = vst.msk [vmem:[#allocation2 + $0x6] sm:$0x3] %vm41_vm0, %v307_v51  ;;  %v135_v52 = vld [vmem:[%s134_s21] sm:$0x3] }
  0x82   :  { %136 = vst.msk [vmem:[#allocation2 + $0x2] sm:$0x3] %vm41_vm0, %v135_v52  ;;  %s2752_s30 = sld [smem:[#allocation4 + $0x31]]  ;;  %s2007_s12 = sshll.u32 %s2696_s19, 1  ;;  %v1107_v59 = vld [vmem:[%s2726_s18] sm:$0x3] }
  0x83   :  { %s822_s14 = scalar_lea.vmem %s3526_s1, %s2007_s12  ;;  %s1989_s6 = sshll.u32 %s2699_s26, 1  ;;  %v1365_v60 = vld [vmem:[%s2738_s27] sm:$0x3] }
  0x84   :  { %507 = vrot.lane.b32.xlu1 %v505_v44, %s3544_s2  ;;  %s2103_s20 = sshll.u32 %s2649_s15, 1  ;;  %v823_v54 = vld [vmem:[%s822_s14] sm:$0x3]  ;;  %s736_s16 = scalar_lea.vmem %s3526_s1, %s1989_s6 }
  0x85   :  { %421 = vrot.lane.b32.xlu0 %v419_v45, %s3544_s2  ;;  %s1873_s23 = sshll.u32 %s2654_s17, 1  ;;  %s1855_s22 = sshll.u32 %s2658_s25, 1  ;;  %824 = vst.msk [vmem:[#allocation2 + $0x12] sm:$0x3] %vm41_vm0, %v823_v54  ;;  %v737_v56 = vld [vmem:[%s736_s16] sm:$0x3] }
  0x86   :  { %s2770_s15 = sld [smem:[#allocation4 + $0x28]]  ;;  %738 = vst.msk [vmem:[#allocation2 + $0x10] sm:$0x3] %vm41_vm0, %v737_v56  ;;  %s2042_s19 = sld [smem:[#allocation4 + $0x63]] }
  0x87   :  { %s1278_s8 = scalar_lea.vmem %s3526_s1, %s2103_s20  ;;  %s2024_s17 = sld [smem:[#allocation4 + $0x5a]] }
  0x88   :  { %679 = vrot.lane.b32.xlu1 %v677_v48, %s3544_s2  ;;  %s2779_s29 = scalar_lea.vmem %s3526_s1, %s1873_s23  ;;  %s2784_s10 = scalar_lea.vmem %s3526_s1, %s1855_s22  ;;  %v1279_v61 = vld [vmem:[%s1278_s8] sm:$0x3] }
  0x89   :  { %593 = vrot.lane.b32.xlu0 %v591_v49, %s3544_s2  ;;  %s2788_s24 = sld [smem:[#allocation4 + $0x43]]  ;;  %s2790_s11 = sld [smem:[#allocation4 + $0x3a]]  ;;  %v181_v0 = vld [vmem:[%s2779_s29] sm:$0x3] }
  0x8a   :  { %s1909_s14 = sshll.u32 %s2745_s13, 1  ;;  %s1891_s6 = sshll.u32 %s2747_s4, 1  ;;  %v91_v1 = vld [vmem:[%s2784_s10] sm:$0x3] }
  0x8b   :  { %s1943_s20 = sshll.u32 %s2752_s30, 1  ;;  %s2797_s7 = sld [smem:[#allocation4 + $0x2d]] }
  0x8c   :  { %861 = vrot.lane.b32.xlu1 %v859_v50, %s3543_s5  ;;  %s2043_s3 = sshll.u32 %s2042_s19, 1  ;;  %s2799_s16 = sld [smem:[#allocation4 + $0x24]] }
  0x8d   :  { %775 = vrot.lane.b32.xlu0 %v773_v53, %s3543_s5  ;;  %s994_s26 = scalar_lea.vmem %s3526_s1, %s2043_s3  ;;  %s2025_s0 = sshll.u32 %s2024_s17, 1 }
  0x8e   :  { %s1925_s28 = sshll.u32 %s2770_s15, 1  ;;  %v995_v62 = vld [vmem:[%s994_s26] sm:$0x3]  ;;  %s908_s4 = scalar_lea.vmem %s3526_s1, %s2025_s0 }
  0x8f   :  { %s352_s27 = scalar_lea.vmem %s3526_s1, %s1909_s14  ;;  %996 = vst.msk [vmem:[#allocation2 + $0x16] sm:$0x3] %vm41_vm0, %v995_v62  ;;  %v909_v63 = vld [vmem:[%s908_s4] sm:$0x3]  ;;  %s2815_s17 = sld [smem:[#allocation4 + $0x56]] }
  0x90   :  { %1033 = vrot.lane.b32.xlu1 %v1031_v55, %s3543_s5  ;;  %s266_s15 = scalar_lea.vmem %s3526_s1, %s1891_s6  ;;  %910 = vst.msk [vmem:[#allocation2 + $0x14] sm:$0x3] %vm41_vm0, %v909_v63  ;;  %s2821_s25 = sld [smem:[#allocation4 + $0x4d]]  ;;  %v353_v2 = vld [vmem:[%s352_s27] sm:$0x3] }
  0x91   :  { %947 = vrot.lane.b32.xlu0 %v945_v57, %s3543_s5  ;;  %s2828_s14 = scalar_lea.vmem %s3526_s1, %s1943_s20  ;;  %s2833_s22 = scalar_lea.vmem %s3526_s1, %s1925_s28  ;;  %v267_v3 = vld [vmem:[%s266_s15] sm:$0x3] }
  0x92   :  { %s1979_s6 = sshll.u32 %s2788_s24, 1  ;;  %s1961_s26 = sshll.u32 %s2790_s11, 1  ;;  %v515_v8 = vld [vmem:[%s2828_s14] sm:$0x3] }
  0x93   :  { %s2839_s0 = sld [smem:[#allocation4 + $0x68]]  ;;  %s2841_s18 = sld [smem:[#allocation4 + $0x5f]]  ;;  %v429_v9 = vld [vmem:[%s2833_s22] sm:$0x3] }
  0x94   :  { %1195 = vrot.lane.b32.xlu1 %v1193_v58, %s3544_s2  ;;  %s1935_s13 = sshll.u32 %s2797_s7, 1  ;;  %s2280_s4 = smov 40  }
  0x95   :  { %1109 = vrot.lane.b32.xlu0 %v1107_v59, %s3544_s2  ;;  %s478_s29 = scalar_lea.vmem %s3526_s1, %s1935_s13  ;;  %s1917_s10 = sshll.u32 %s2799_s16, 1 }
  0x96   :  { %s2855_s30 = scalar_lea.vmem %s3526_s1, %s1979_s6  ;;  %v479_v4 = vld [vmem:[%s478_s29] sm:$0x3]  ;;  %s392_s8 = scalar_lea.vmem %s3526_s1, %s1917_s10 }
  0x97   :  { %s600_s16 = scalar_lea.vmem %s3526_s1, %s1961_s26  ;;  %s2017_s27 = sshll.u32 %s2815_s17, 1  ;;  %480 = vst.msk [vmem:[#allocation2 + $0xa] sm:$0x3] %vm41_vm0, %v479_v4  ;;  %v393_v7 = vld [vmem:[%s392_s8] sm:$0x3] }
  0x98   :  { %1367 = vrot.lane.b32.xlu1 %v1365_v60, %s3544_s2  ;;  %s1999_s15 = sshll.u32 %s2821_s25, 1  ;;  %394 = vst.msk [vmem:[#allocation2 + $0x8] sm:$0x3] %vm41_vm0, %v393_v7  ;;  %s1970_s12 = sld [smem:[#allocation4 + $0x3f]]  ;;  %v687_v12 = vld [vmem:[%s2855_s30] sm:$0x3] }
  0x99   :  { %1281 = vrot.lane.b32.xlu0 %v1279_v61, %s3544_s2  ;;  %s2843_s2 = sld [smem:[#allocation4 + $0x79]]  ;;  %s2872_s17 = sld [smem:[#allocation4 + $0x70]]  ;;  %v601_v13 = vld [vmem:[%s600_s16] sm:$0x3] }
  0x9a   :  { %s2874_s3 = sld [smem:[#allocation4 + $0x36]]  ;;  %s2877_s23 = sld [smem:[#allocation4 + $0x8b]] }
  0x9b   :  { %s2879_s25 = sld [smem:[#allocation4 + $0x82]]  ;;  %s868_s13 = scalar_lea.vmem %s3526_s1, %s2017_s27 }
  0x9c   :  { %183 = vrot.lane.b32.xlu1 %v181_v0, %s2280_s4  ;;  %s782_s14 = scalar_lea.vmem %s3526_s1, %s1999_s15  ;;  %s2053_s22 = sshll.u32 %s2839_s0, 1  ;;  %v869_v18 = vld [vmem:[%s868_s13] sm:$0x3] }
  0x9d   :  { %93 = vrot.lane.b32.xlu0 %v91_v1, %s2280_s4  ;;  %s2035_s29 = sshll.u32 %s2841_s18, 1  ;;  %s2895_s24 = sld [smem:[#allocation4 + $0x75]]  ;;  %v783_v19 = vld [vmem:[%s782_s14] sm:$0x3] }
  0x9e   :  { %v230_v5 = vpop.permute.xlu1 %229  ;;  %s1971_s11 = sshll.u32 %s1970_s12, 1  ;;  %s2897_s7 = sld [smem:[#allocation4 + $0x6c]] }
  0x9f   :  { %v50_v6 = vpop.permute.xlu0 %49  ;;  %232 = vst.msk [vmem:[#allocation2 + $0x4] sm:$0x3] %vm52_vm1, %v230_v5  ;;  %s2087_s10 = sshll.u32 %s2843_s2, 1  ;;  %s650_s0 = scalar_lea.vmem %s3526_s1, %s1971_s11 }
  0xa0   :  { %53 = vst.msk [vmem:[#allocation2] sm:$0x3] %vm52_vm1, %v50_v6  ;;  %355 = vrot.lane.b32.xlu1 %v353_v2, %s2280_s4  ;;  %s1953_s18 = sshll.u32 %s2874_s3, 1  ;;  %s1040_s9 = scalar_lea.vmem %s3526_s1, %s2053_s22  ;;  %v651_v16 = vld [vmem:[%s650_s0] sm:$0x3] }
  0xa1   :  { %269 = vrot.lane.b32.xlu0 %v267_v3, %s2280_s4  ;;  %s564_s27 = scalar_lea.vmem %s3526_s1, %s1953_s18  ;;  %s954_s3 = scalar_lea.vmem %s3526_s1, %s2035_s29  ;;  %652 = vst.msk [vmem:[#allocation2 + $0xe] sm:$0x3] %vm41_vm0, %v651_v16  ;;  %v1041_v22 = vld [vmem:[%s1040_s9] sm:$0x3] }
  0xa2   :  { %v316_v10 = vpop.permute.xlu1 %315  ;;  %s2069_s6 = sshll.u32 %s2872_s17, 1  ;;  %v565_v17 = vld [vmem:[%s564_s27] sm:$0x3]  ;;  %s1202_s28 = scalar_lea.vmem %s3526_s1, %s2087_s10 }
  0xa3   :  { %v144_v11 = vpop.permute.xlu0 %143  ;;  %318 = vst.msk [vmem:[#allocation2 + $0x6] sm:$0x3] %vm52_vm1, %v316_v10  ;;  %s2123_s22 = sshll.u32 %s2877_s23, 1  ;;  %s2923_s11 = sld [smem:[#allocation4 + $0xf]]  ;;  %v955_v23 = vld [vmem:[%s954_s3] sm:$0x3] }
  0xa4   :  { %146 = vst.msk [vmem:[#allocation2 + $0x2] sm:$0x3] %vm52_vm1, %v144_v11  ;;  %517 = vrot.lane.b32.xlu1 %v515_v8, %s3543_s5  ;;  %s2925_s29 = sld [smem:[#allocation4 + $0x6]]  ;;  %s1116_s14 = scalar_lea.vmem %s3526_s1, %s2069_s6  ;;  %v1203_v26 = vld [vmem:[%s1202_s28] sm:$0x3] }
  0xa5   :  { %431 = vrot.lane.b32.xlu0 %v429_v9, %s3543_s5  ;;  %566 = vst.msk [vmem:[#allocation2 + $0xc] sm:$0x3] %vm41_vm0, %v565_v17  ;;  %s2932_s10 = sld [smem:[#allocation4 + $0x21]]  ;;  %s2939_s8 = scalar_lea.vmem %s3526_s1, %s2123_s22  ;;  %v1117_v29 = vld [vmem:[%s1116_s14] sm:$0x3] }
  0xa6   :  { %v832_v14 = vpop.permute.xlu1 %831  ;;  %s2105_s0 = sshll.u32 %s2879_s25, 1  ;;  %s2942_s18 = sld [smem:[#allocation4 + $0x18]]  ;;  %v1375_v32 = vld [vmem:[%s2939_s8] sm:$0x3] }
  0xa7   :  { %v746_v15 = vpop.permute.xlu0 %745  ;;  %834 = vst.msk [vmem:[#allocation2 + $0x12] sm:$0x3] %vm52_vm1, %v832_v14  ;;  %s2079_s2 = sshll.u32 %s2895_s24, 1  ;;  %s2061_s27 = sshll.u32 %s2897_s7, 1 }
  0xa8   :  { %748 = vst.msk [vmem:[#allocation2 + $0x10] sm:$0x3] %vm52_vm1, %v746_v15  ;;  %689 = vrot.lane.b32.xlu1 %v687_v12, %s3543_s5  ;;  %s1166_s16 = scalar_lea.vmem %s3526_s1, %s2079_s2  ;;  %s1288_s25 = scalar_lea.vmem %s3526_s1, %s2105_s0 }
  0xa9   :  { %603 = vrot.lane.b32.xlu0 %v601_v13, %s3543_s5  ;;  %v1167_v27 = vld [vmem:[%s1166_s16] sm:$0x3]  ;;  %s1080_s3 = scalar_lea.vmem %s3526_s1, %s2061_s27  ;;  %s2959_s7 = sld [smem:[#allocation4 + $0x32]] }
  0xaa   :  { %v1004_v20 = vpop.permute.xlu1 %1003  ;;  %s2961_s6 = sld [smem:[#allocation4 + $0x29]]  ;;  %1168 = vst.msk [vmem:[#allocation2 + $0x1a] sm:$0x3] %vm41_vm0, %v1167_v27  ;;  %v1081_v28 = vld [vmem:[%s1080_s3] sm:$0x3]  ;;  %s2114_s26 = sld [smem:[#allocation4 + $0x87]] }
  0xab   :  { %v918_v21 = vpop.permute.xlu0 %917  ;;  %1006 = vst.msk [vmem:[#allocation2 + $0x16] sm:$0x3] %vm52_vm1, %v1004_v20  ;;  %s2965_s20 = sld [smem:[#allocation4 + $0x7e]]  ;;  %s1875_s28 = sshll.u32 %s2923_s11, 1  ;;  %v1289_v33 = vld [vmem:[%s1288_s25] sm:$0x3] }
  0xac   :  { %920 = vst.msk [vmem:[#allocation2 + $0x14] sm:$0x3] %vm52_vm1, %v918_v21  ;;  %871 = vrot.lane.b32.xlu1 %v869_v18, %s2280_s4  ;;  %s1857_s22 = sshll.u32 %s2925_s29, 1  ;;  %s1911_s17 = sshll.u32 %s2932_s10, 1 }
  0xad   :  { %785 = vrot.lane.b32.xlu0 %v783_v19, %s2280_s4  ;;  %1082 = vst.msk [vmem:[#allocation2 + $0x18] sm:$0x3] %vm41_vm0, %v1081_v28  ;;  %s2974_s13 = sld [smem:[#allocation4 + $0x44]]  ;;  %s190_s19 = scalar_lea.vmem %s3526_s1, %s1875_s28 }
  0xae   :  { %v154_v24 = vpop.permute.xlu1 %153  ;;  %s101_s0 = scalar_lea.vmem %s3526_s1, %s1857_s22  ;;  %s362_s30 = scalar_lea.vmem %s3526_s1, %s1911_s17  ;;  %v191_v36 = vld [vmem:[%s190_s19] sm:$0x3] }
  0xaf   :  { %v61_v25 = vpop.permute.xlu0 %60  ;;  %156 = vst.msk [vmem:[#allocation2 + $0x2] sm:$0x3] %vm63_vm2, %v154_v24  ;;  %s1893_s21 = sshll.u32 %s2942_s18, 1  ;;  %s2989_s8 = sld [smem:[#allocation4 + $0x3b]]  ;;  %v102_v37 = vld [vmem:[%s101_s0] sm:$0x3] }
  0xb0   :  { %64 = vst.msk [vmem:[#allocation2] sm:$0x3] %vm63_vm2, %v61_v25  ;;  %1043 = vrot.lane.b32.xlu1 %v1041_v22, %s2280_s4  ;;  %s2115_s16 = sshll.u32 %s2114_s26, 1  ;;  %s1945_s18 = sshll.u32 %s2959_s7, 1  ;;  %v363_v42 = vld [vmem:[%s362_s30] sm:$0x3] }
  0xb1   :  { %957 = vrot.lane.b32.xlu0 %v955_v23, %s2280_s4  ;;  %s1338_s15 = scalar_lea.vmem %s3526_s1, %s2115_s16  ;;  %s2097_s25 = sshll.u32 %s2965_s20, 1 }
  0xb2   :  { %v326_v30 = vpop.permute.xlu1 %325  ;;  %v1339_v38 = vld [vmem:[%s1338_s15] sm:$0x3]  ;;  %s1252_s3 = scalar_lea.vmem %s3526_s1, %s2097_s25  ;;  %s276_s22 = scalar_lea.vmem %s3526_s1, %s1893_s21 }
  0xb3   :  { %v240_v31 = vpop.permute.xlu0 %239  ;;  %328 = vst.msk [vmem:[#allocation2 + $0x6] sm:$0x3] %vm63_vm2, %v326_v30  ;;  %v1253_v41 = vld [vmem:[%s1252_s3] sm:$0x3]  ;;  %s3009_s7 = sld [smem:[#allocation4 + $0x57]]  ;;  %s3011_s20 = sld [smem:[#allocation4 + $0x4e]] }
  0xb4   :  { %242 = vst.msk [vmem:[#allocation2 + $0x4] sm:$0x3] %vm63_vm2, %v240_v31  ;;  %1205 = vrot.lane.b32.xlu1 %v1203_v26, %s3543_s5  ;;  %s2281_s17 = smov 48   ;;  %s524_s23 = scalar_lea.vmem %s3526_s1, %s1945_s18  ;;  %v277_v43 = vld [vmem:[%s276_s22] sm:$0x3] }
  0xb5   :  { %1119 = vrot.lane.b32.xlu0 %v1117_v29, %s3543_s5  ;;  %1340 = vst.msk [vmem:[#allocation2 + $0x1e] sm:$0x3] %vm41_vm0, %v1339_v38  ;;  %1254 = vst.msk [vmem:[#allocation2 + $0x1c] sm:$0x3] %vm41_vm0, %v1253_v41  ;;  %s3018_s19 = sld [smem:[#allocation4 + $0x69]]  ;;  %s3020_s11 = sld [smem:[#allocation4 + $0x60]] }
  0xb6   :  { %v488_v34 = vpop.permute.xlu1 %487  ;;  %s1981_s2 = sshll.u32 %s2974_s13, 1  ;;  %s1963_s30 = sshll.u32 %s2989_s8, 1  ;;  %v525_v46 = vld [vmem:[%s524_s23] sm:$0x3] }
  0xb7   :  { %v402_v35 = vpop.permute.xlu0 %401  ;;  %490 = vst.msk [vmem:[#allocation2 + $0xa] sm:$0x3] %vm52_vm1, %v488_v34  ;;  %s3031_s21 = sld [smem:[#allocation4 + $0x7a]]  ;;  %s3033_s16 = sld [smem:[#allocation4 + $0x71]] }
  0xb8   :  { %404 = vst.msk [vmem:[#allocation2 + $0x8] sm:$0x3] %vm52_vm1, %v402_v35  ;;  %1377 = vrot.lane.b32.xlu1 %v1375_v32, %s3543_s5  ;;  %s696_s15 = scalar_lea.vmem %s3526_s1, %s1981_s2  ;;  %s610_s25 = scalar_lea.vmem %s3526_s1, %s1963_s30 }
  0xb9   :  { %1291 = vrot.lane.b32.xlu0 %v1289_v33, %s3543_s5  ;;  %s1927_s5 = sshll.u32 %s2961_s6, 1  ;;  %s2019_s18 = sshll.u32 %s3009_s7, 1  ;;  %v697_v50 = vld [vmem:[%s696_s15] sm:$0x3] }
  0xba   :  { %v660_v39 = vpop.permute.xlu1 %659  ;;  %s438_s10 = scalar_lea.vmem %s3526_s1, %s1927_s5  ;;  %s2001_s24 = sshll.u32 %s3011_s20, 1  ;;  %v611_v51 = vld [vmem:[%s610_s25] sm:$0x3] }
  0xbb   :  { %v574_v40 = vpop.permute.xlu0 %573  ;;  %662 = vst.msk [vmem:[#allocation2 + $0xe] sm:$0x3] %vm52_vm1, %v660_v39  ;;  %v439_v47 = vld [vmem:[%s438_s10] sm:$0x3]  ;;  %s3047_s12 = sld [smem:[#allocation4 + $0x8c]]  ;;  %s3049_s3 = sld [smem:[#allocation4 + $0x83]] }
  0xbc   :  { %576 = vst.msk [vmem:[#allocation2 + $0xc] sm:$0x3] %vm52_vm1, %v574_v40  ;;  %193 = vrot.lane.b32.xlu1 %v191_v36, %s2281_s17  ;;  %s2055_s26 = sshll.u32 %s3018_s19, 1  ;;  %s2037_s28 = sshll.u32 %s3020_s11, 1 }
  0xbd   :  { %104 = vrot.lane.b32.xlu0 %v102_v37, %s2281_s17  ;;  %s878_s7 = scalar_lea.vmem %s3526_s1, %s2019_s18  ;;  %s792_s14 = scalar_lea.vmem %s3526_s1, %s2001_s24 }
  0xbe   :  { %v842_v44 = vpop.permute.xlu1 %841  ;;  %s1050_s11 = scalar_lea.vmem %s3526_s1, %s2055_s26  ;;  %s964_s10 = scalar_lea.vmem %s3526_s1, %s2037_s28  ;;  %v879_v54 = vld [vmem:[%s878_s7] sm:$0x3] }
  0xbf   :  { %v756_v45 = vpop.permute.xlu0 %755  ;;  %844 = vst.msk [vmem:[#allocation2 + $0x12] sm:$0x3] %vm63_vm2, %v842_v44  ;;  %v793_v55 = vld [vmem:[%s792_s14] sm:$0x3]  ;;  %s2089_s2 = sshll.u32 %s3031_s21, 1  ;;  %s2071_s30 = sshll.u32 %s3033_s16, 1 }
  0xc0   :  { %758 = vst.msk [vmem:[#allocation2 + $0x10] sm:$0x3] %vm63_vm2, %v756_v45  ;;  %365 = vrot.lane.b32.xlu1 %v363_v42, %s2281_s17  ;;  %s3071_s27 = sld [smem:[#allocation4 + $0x10]]  ;;  %s3073_s9 = sld [smem:[#allocation4 + $0x7]]  ;;  %v1051_v58 = vld [vmem:[%s1050_s11] sm:$0x3] }
  0xc1   :  { %279 = vrot.lane.b32.xlu0 %v277_v43, %s2281_s17  ;;  %s1212_s21 = scalar_lea.vmem %s3526_s1, %s2089_s2  ;;  %s1126_s25 = scalar_lea.vmem %s3526_s1, %s2071_s30  ;;  %v965_v59 = vld [vmem:[%s964_s10] sm:$0x3] }
  0xc2   :  { %v1014_v48 = vpop.permute.xlu1 %1013  ;;  %s2125_s18 = sshll.u32 %s3047_s12, 1  ;;  %s2107_s24 = sshll.u32 %s3049_s3, 1  ;;  %v1213_v62 = vld [vmem:[%s1212_s21] sm:$0x3] }
  0xc3   :  { %v928_v49 = vpop.permute.xlu0 %927  ;;  %1016 = vst.msk [vmem:[#allocation2 + $0x16] sm:$0x3] %vm63_vm2, %v1014_v48  ;;  %s3087_s26 = sld [smem:[#allocation4 + $0x22]]  ;;  %s3089_s28 = sld [smem:[#allocation4 + $0x19]]  ;;  %v1127_v63 = vld [vmem:[%s1126_s25] sm:$0x3] }
  0xc4   :  { %930 = vst.msk [vmem:[#allocation2 + $0x14] sm:$0x3] %vm63_vm2, %v928_v49  ;;  %527 = vrot.lane.b32.xlu1 %v525_v46, %s2280_s4  ;;  %s1384_s3 = scalar_lea.vmem %s3526_s1, %s2125_s18  ;;  %s1298_s20 = scalar_lea.vmem %s3526_s1, %s2107_s24 }
  0xc5   :  { %441 = vrot.lane.b32.xlu0 %v439_v47, %s2280_s4  ;;  %s3101_s6 = sld [smem:[#allocation4 + $0x33]]  ;;  %s3103_s14 = sld [smem:[#allocation4 + $0x2a]]  ;;  %v1385_v2 = vld [vmem:[%s1384_s3] sm:$0x3] }
  0xc6   :  { %v1176_v52 = vpop.permute.xlu1 %1175  ;;  %s1877_s23 = sshll.u32 %s3071_s27, 1  ;;  %s1859_s19 = sshll.u32 %s3073_s9, 1  ;;  %v1299_v3 = vld [vmem:[%s1298_s20] sm:$0x3] }
  0xc7   :  { %v1090_v53 = vpop.permute.xlu0 %1089  ;;  %1178 = vst.msk [vmem:[#allocation2 + $0x1a] sm:$0x3] %vm52_vm1, %v1176_v52  ;;  %s3111_s11 = sld [smem:[#allocation4 + $0x45]]  ;;  %s3113_s29 = sld [smem:[#allocation4 + $0x3c]] }
  0xc8   :  { %1092 = vst.msk [vmem:[#allocation2 + $0x18] sm:$0x3] %vm52_vm1, %v1090_v53  ;;  %699 = vrot.lane.b32.xlu1 %v697_v50, %s2280_s4  ;;  %s200_s2 = scalar_lea.vmem %s3526_s1, %s1877_s23  ;;  %s112_s9 = scalar_lea.vmem %s3526_s1, %s1859_s19 }
  0xc9   :  { %613 = vrot.lane.b32.xlu0 %v611_v51, %s2280_s4  ;;  %s1913_s15 = sshll.u32 %s3087_s26, 1  ;;  %s1895_s13 = sshll.u32 %s3089_s28, 1  ;;  %v201_v6 = vld [vmem:[%s200_s2] sm:$0x3] }
  0xca   :  { %v1348_v56 = vpop.permute.xlu1 %1347  ;;  %s3127_s21 = sld [smem:[#allocation4 + $0x58]]  ;;  %s3129_s16 = sld [smem:[#allocation4 + $0x4f]]  ;;  %v113_v7 = vld [vmem:[%s112_s9] sm:$0x3] }
  0xcb   :  { %v1262_v57 = vpop.permute.xlu0 %1261  ;;  %1350 = vst.msk [vmem:[#allocation2 + $0x1e] sm:$0x3] %vm52_vm1, %v1348_v56  ;;  %s372_s18 = scalar_lea.vmem %s3526_s1, %s1913_s15  ;;  %s286_s28 = scalar_lea.vmem %s3526_s1, %s1895_s13 }
  0xcc   :  { %1264 = vst.msk [vmem:[#allocation2 + $0x1c] sm:$0x3] %vm52_vm1, %v1262_v57  ;;  %881 = vrot.lane.b32.xlu1 %v879_v54, %s2281_s17  ;;  %s1947_s22 = sshll.u32 %s3101_s6, 1  ;;  %s2282_s12 = smov 56   ;;  %v373_v10 = vld [vmem:[%s372_s18] sm:$0x3] }
  0xcd   :  { %795 = vrot.lane.b32.xlu0 %v793_v55, %s2281_s17  ;;  %s3143_s3 = sld [smem:[#allocation4 + $0x6a]]  ;;  %s3145_s5 = sld [smem:[#allocation4 + $0x61]]  ;;  %v287_v11 = vld [vmem:[%s286_s28] sm:$0x3] }
  0xce   :  { %v164_v60 = vpop.permute.xlu1 %163  ;;  %s534_s6 = scalar_lea.vmem %s3526_s1, %s1947_s22  ;;  %s1983_s0 = sshll.u32 %s3111_s11, 1 }
  0xcf   :  { %v72_v61 = vpop.permute.xlu0 %71  ;;  %166 = vst.msk [vmem:[#allocation2 + $0x2] sm:$0x3] %vm74_vm3, %v164_v60  ;;  %s1965_s10 = sshll.u32 %s3113_s29, 1  ;;  %v535_v14 = vld [vmem:[%s534_s6] sm:$0x3]  ;;  %s706_s27 = scalar_lea.vmem %s3526_s1, %s1983_s0 }
  0xd0   :  { %75 = vst.msk [vmem:[#allocation2] sm:$0x3] %vm74_vm3, %v72_v61  ;;  %1053 = vrot.lane.b32.xlu1 %v1051_v58, %s2281_s17  ;;  %s620_s13 = scalar_lea.vmem %s3526_s1, %s1965_s10  ;;  %s2021_s11 = sshll.u32 %s3127_s21, 1  ;;  %v707_v18 = vld [vmem:[%s706_s27] sm:$0x3] }
  0xd1   :  { %967 = vrot.lane.b32.xlu0 %v965_v59, %s2281_s17  ;;  %s2003_s29 = sshll.u32 %s3129_s16, 1  ;;  %s3169_s8 = sld [smem:[#allocation4 + $0x7b]]  ;;  %v621_v19 = vld [vmem:[%s620_s13] sm:$0x3] }
  0xd2   :  { %v336_v0 = vpop.permute.xlu1 %335  ;;  %s3171_s25 = sld [smem:[#allocation4 + $0x72]]  ;;  %s888_s26 = scalar_lea.vmem %s3526_s1, %s2021_s11 }
  0xd3   :  { %v250_v1 = vpop.permute.xlu0 %249  ;;  %338 = vst.msk [vmem:[#allocation2 + $0x6] sm:$0x3] %vm74_vm3, %v336_v0  ;;  %s802_s28 = scalar_lea.vmem %s3526_s1, %s2003_s29  ;;  %s2057_s22 = sshll.u32 %s3143_s3, 1  ;;  %v889_v22 = vld [vmem:[%s888_s26] sm:$0x3] }
  0xd4   :  { %252 = vst.msk [vmem:[#allocation2 + $0x4] sm:$0x3] %vm74_vm3, %v250_v1  ;;  %1215 = vrot.lane.b32.xlu1 %v1213_v62, %s2280_s4  ;;  %s3185_s7 = sld [smem:[#allocation4 + $0x8d]]  ;;  %s3187_s20 = sld [smem:[#allocation4 + $0x84]]  ;;  %v803_v23 = vld [vmem:[%s802_s28] sm:$0x3] }
  0xd5   :  { %1129 = vrot.lane.b32.xlu0 %v1127_v63, %s2280_s4  ;;  %s1060_s3 = scalar_lea.vmem %s3526_s1, %s2057_s22  ;;  %s3199_s10 = sld [smem:[#allocation4 + $0x8]] }
  0xd6   :  { %v498_v4 = vpop.permute.xlu1 %497  ;;  %v1061_v26 = vld [vmem:[%s1060_s3] sm:$0x3]  ;;  %s3207_s27 = sld [smem:[#allocation4 + $0x23]]  ;;  %s3209_s9 = sld [smem:[#allocation4 + $0x1a]] }
  0xd7   :  { %v412_v5 = vpop.permute.xlu0 %411  ;;  %500 = vst.msk [vmem:[#allocation2 + $0xa] sm:$0x3] %vm63_vm2, %v498_v4  ;;  %s2091_s2 = sshll.u32 %s3169_s8, 1  ;;  %s3223_s26 = sld [smem:[#allocation4 + $0x34]] }
  0xd8   :  { %414 = vst.msk [vmem:[#allocation2 + $0x8] sm:$0x3] %vm63_vm2, %v412_v5  ;;  %1387 = vrot.lane.b32.xlu1 %v1385_v2, %s2280_s4  ;;  %s2073_s30 = sshll.u32 %s3171_s25, 1  ;;  %s1222_s11 = scalar_lea.vmem %s3526_s1, %s2091_s2 }
  0xd9   :  { %1301 = vrot.lane.b32.xlu0 %v1299_v3, %s2280_s4  ;;  %s1929_s4 = sshll.u32 %s3103_s14, 1  ;;  %s1136_s25 = scalar_lea.vmem %s3526_s1, %s2073_s30  ;;  %v1223_v30 = vld [vmem:[%s1222_s11] sm:$0x3] }
  0xda   :  { %v670_v8 = vpop.permute.xlu1 %669  ;;  %s448_s19 = scalar_lea.vmem %s3526_s1, %s1929_s4  ;;  %s2039_s4 = sshll.u32 %s3145_s5, 1  ;;  %v1137_v31 = vld [vmem:[%s1136_s25] sm:$0x3] }
  0xdb   :  { %v584_v9 = vpop.permute.xlu0 %583  ;;  %672 = vst.msk [vmem:[#allocation2 + $0xe] sm:$0x3] %vm63_vm2, %v670_v8  ;;  %v449_v15 = vld [vmem:[%s448_s19] sm:$0x3]  ;;  %s3194_s5 = sld [smem:[#allocation4 + $0x11]]  ;;  %s974_s0 = scalar_lea.vmem %s3526_s1, %s2039_s4 }
  0xdc   :  { %586 = vst.msk [vmem:[#allocation2 + $0xc] sm:$0x3] %vm63_vm2, %v584_v9  ;;  %203 = vrot.lane.b32.xlu1 %v201_v6, %s2282_s12  ;;  %v975_v27 = vld [vmem:[%s974_s0] sm:$0x3]  ;;  %s2127_s18 = sshll.u32 %s3185_s7, 1  ;;  %s2109_s24 = sshll.u32 %s3187_s20, 1 }
  0xdd   :  { %115 = vrot.lane.b32.xlu0 %v113_v7, %s2282_s12  ;;  %s3225_s21 = sld [smem:[#allocation4 + $0x2b]]  ;;  %s1394_s4 = scalar_lea.vmem %s3526_s1, %s2127_s18 }
  0xde   :  { %v852_v12 = vpop.permute.xlu1 %851  ;;  %s1308_s6 = scalar_lea.vmem %s3526_s1, %s2109_s24  ;;  %s1861_s14 = sshll.u32 %s3199_s10, 1  ;;  %v1395_v34 = vld [vmem:[%s1394_s4] sm:$0x3] }
  0xdf   :  { %v766_v13 = vpop.permute.xlu0 %765  ;;  %854 = vst.msk [vmem:[#allocation2 + $0x12] sm:$0x3] %vm74_vm3, %v852_v12  ;;  %s3242_s19 = sld [smem:[#allocation4 + $0x46]]  ;;  %v1309_v35 = vld [vmem:[%s1308_s6] sm:$0x3]  ;;  %s1915_s0 = sshll.u32 %s3207_s27, 1 }
  0xe0   :  { %768 = vst.msk [vmem:[#allocation2 + $0x10] sm:$0x3] %vm74_vm3, %v766_v13  ;;  %375 = vrot.lane.b32.xlu1 %v373_v10, %s2282_s12  ;;  %s1897_s2 = sshll.u32 %s3209_s9, 1  ;;  %s123_s15 = scalar_lea.vmem %s3526_s1, %s1861_s14 }
  0xe1   :  { %289 = vrot.lane.b32.xlu0 %v287_v11, %s2282_s12  ;;  %s1879_s16 = sshll.u32 %s3194_s5, 1  ;;  %s3249_s13 = sld [smem:[#allocation4 + $0x3d]]  ;;  %v124_v39 = vld [vmem:[%s123_s15] sm:$0x3] }
  0xe2   :  { %v1024_v16 = vpop.permute.xlu1 %1023  ;;  %s210_s23 = scalar_lea.vmem %s3526_s1, %s1879_s16  ;;  %s382_s27 = scalar_lea.vmem %s3526_s1, %s1915_s0 }
  0xe3   :  { %v938_v17 = vpop.permute.xlu0 %937  ;;  %1026 = vst.msk [vmem:[#allocation2 + $0x16] sm:$0x3] %vm74_vm3, %v1024_v16  ;;  %s296_s25 = scalar_lea.vmem %s3526_s1, %s1897_s2  ;;  %v211_v38 = vld [vmem:[%s210_s23] sm:$0x3]  ;;  %s1949_s18 = sshll.u32 %s3223_s26, 1 }
  0xe4   :  { %940 = vst.msk [vmem:[#allocation2 + $0x14] sm:$0x3] %vm74_vm3, %v938_v17  ;;  %537 = vrot.lane.b32.xlu1 %v535_v14, %s2281_s17  ;;  %s1931_s24 = sshll.u32 %s3225_s21, 1  ;;  %s3263_s16 = sld [smem:[#allocation4 + $0x59]]  ;;  %v383_v42 = vld [vmem:[%s382_s27] sm:$0x3] }
  0xe5   :  { %451 = vrot.lane.b32.xlu0 %v449_v15, %s2281_s17  ;;  %s3265_s28 = sld [smem:[#allocation4 + $0x50]]  ;;  %s544_s21 = scalar_lea.vmem %s3526_s1, %s1949_s18  ;;  %v297_v43 = vld [vmem:[%s296_s25] sm:$0x3] }
  0xe6   :  { %v1186_v20 = vpop.permute.xlu1 %1185  ;;  %s458_s20 = scalar_lea.vmem %s3526_s1, %s1931_s24  ;;  %s1985_s6 = sshll.u32 %s3242_s19, 1  ;;  %v545_v46 = vld [vmem:[%s544_s21] sm:$0x3] }
  0xe7   :  { %v1100_v21 = vpop.permute.xlu0 %1099  ;;  %1188 = vst.msk [vmem:[#allocation2 + $0x1a] sm:$0x3] %vm63_vm2, %v1186_v20  ;;  %s3278_s14 = sld [smem:[#allocation4 + $0x6b]]  ;;  %s1967_s3 = sshll.u32 %s3249_s13, 1  ;;  %v459_v47 = vld [vmem:[%s458_s20] sm:$0x3] }
  0xe8   :  { %1102 = vst.msk [vmem:[#allocation2 + $0x18] sm:$0x3] %vm63_vm2, %v1100_v21  ;;  %709 = vrot.lane.b32.xlu1 %v707_v18, %s2281_s17  ;;  %s3281_s5 = sld [smem:[#allocation4 + $0x62]]  ;;  %s716_s19 = scalar_lea.vmem %s3526_s1, %s1985_s6 }
  0xe9   :  { %623 = vrot.lane.b32.xlu0 %v621_v19, %s2281_s17  ;;  %s3290_s2 = sld [smem:[#allocation4 + $0x7c]]  ;;  %s630_s15 = scalar_lea.vmem %s3526_s1, %s1967_s3  ;;  %v717_v50 = vld [vmem:[%s716_s19] sm:$0x3] }
  0xea   :  { %v1358_v24 = vpop.permute.xlu1 %1357  ;;  %s3295_s13 = sld [smem:[#allocation4 + $0x73]]  ;;  %s2023_s11 = sshll.u32 %s3263_s16, 1  ;;  %v631_v51 = vld [vmem:[%s630_s15] sm:$0x3] }
  0xeb   :  { %v1272_v25 = vpop.permute.xlu0 %1271  ;;  %1360 = vst.msk [vmem:[#allocation2 + $0x1e] sm:$0x3] %vm63_vm2, %v1358_v24  ;;  %s2005_s29 = sshll.u32 %s3265_s28, 1  ;;  %s3303_s27 = sld [smem:[#allocation4 + $0x8e]] }
  0xec   :  { %1274 = vst.msk [vmem:[#allocation2 + $0x1c] sm:$0x3] %vm63_vm2, %v1272_v25  ;;  %891 = vrot.lane.b32.xlu1 %v889_v22, %s2282_s12  ;;  %s3305_s9 = sld [smem:[#allocation4 + $0x85]]  ;;  %s898_s18 = scalar_lea.vmem %s3526_s1, %s2023_s11 }
  0xed   :  { %805 = vrot.lane.b32.xlu0 %v803_v23, %s2282_s12  ;;  %s812_s28 = scalar_lea.vmem %s3526_s1, %s2005_s29  ;;  %s2059_s22 = sshll.u32 %s3278_s14, 1  ;;  %v899_v57 = vld [vmem:[%s898_s18] sm:$0x3] }
  0xee   :  { %v174_v28 = vpop.permute.xlu1 %173  ;;  %s2041_s26 = sshll.u32 %s3281_s5, 1  ;;  %s3545_s7 = sld [smem:[#allocation12_spill]]  ;;  %v813_v58 = vld [vmem:[%s812_s28] sm:$0x3] }
  0xef   :  { %v83_v29 = vpop.permute.xlu0 %82  ;;  %176 = vst.msk [vmem:[#allocation2 + $0x2] sm:$0x3] %vm85_vm4, %v174_v28  ;;  %s3325_s14 = sld [smem:[#allocation4 + $0x35]]  ;;  %s3327_s3 = sld [smem:[#allocation4 + $0x2c]] }
  0xf0   :  { %86 = vst.msk [vmem:[#allocation2] sm:$0x3] %vm85_vm4, %v83_v29  ;;  %1063 = vrot.lane.b32.xlu1 %v1061_v26, %s2282_s12  ;;  %s1070_s0 = scalar_lea.vmem %s3526_s1, %s2059_s22  ;;  %s984_s10 = scalar_lea.vmem %s3526_s1, %s2041_s26 }
  0xf1   :  { %977 = vrot.lane.b32.xlu0 %v975_v27, %s2282_s12  ;;  %s2093_s15 = sshll.u32 %s3290_s2, 1  ;;  %s2075_s11 = sshll.u32 %s3295_s13, 1  ;;  %v1071_v0 = vld [vmem:[%s1070_s0] sm:$0x3] }
  0xf2   :  { %v346_v32 = vpop.permute.xlu1 %345  ;;  %s3347_s2 = sld [smem:[#allocation4 + $0x47]]  ;;  %v985_v1 = vld [vmem:[%s984_s10] sm:$0x3]  ;;  %s1232_s16 = scalar_lea.vmem %s3526_s1, %s2093_s15 }
  0xf3   :  { %v260_v33 = vpop.permute.xlu0 %259  ;;  %348 = vst.msk [vmem:[#allocation2 + $0x6] sm:$0x3] %vm85_vm4, %v346_v32  ;;  %s1146_s26 = scalar_lea.vmem %s3526_s1, %s2075_s11  ;;  %s2129_s21 = sshll.u32 %s3303_s27, 1  ;;  %v1233_v7 = vld [vmem:[%s1232_s16] sm:$0x3] }
  0xf4   :  { %262 = vst.msk [vmem:[#allocation2 + $0x4] sm:$0x3] %vm85_vm4, %v260_v33  ;;  %1225 = vrot.lane.b32.xlu1 %v1223_v30, %s2281_s17  ;;  %v1425_v54 = vld [vmem:[%s3545_s7] sm:$0xff]  ;;  %v1426_v55 = vld [vmem:[%s3545_s7 + $0x8] sm:$0xff]  ;;  %v1427_v61 = vld [vmem:[%s3545_s7 + $0x10] sm:$0xff]  ;;  %s2111_s4 = sshll.u32 %s3305_s9, 1  ;;  %s1404_s19 = scalar_lea.vmem %s3526_s1, %s2129_s21 }
  0xf5   :  { %1139 = vrot.lane.b32.xlu0 %v1137_v31, %s2281_s17  ;;  %v2173_v56 = vpack.c.bf16 %v1426_v55, %v1425_v54  ;;  %v1428_v62 = vld [vmem:[%s3545_s7 + $0x18] sm:$0xff]  ;;  %v1429_v4 = vld [vmem:[%s3545_s7 + $0x20] sm:$0xff]  ;;  %v1430_v5 = vld [vmem:[%s3545_s7 + $0x28] sm:$0xff]  ;;  %s3365_s0 = sld [smem:[#allocation4 + $0x3e]]  ;;  %s1318_s15 = scalar_lea.vmem %s3526_s1, %s2111_s4 }
  0xf6   :  { %v508_v36 = vpop.permute.xlu1 %507  ;;  %v2177_v63 = vpack.c.bf16 %v1428_v62, %v1427_v61  ;;  %v2181_v6 = vpack.c.bf16 %v1430_v5, %v1429_v4  ;;  %v1147_v8 = vld [vmem:[%s1146_s26] sm:$0x3]  ;;  %s1951_s11 = sshll.u32 %s3325_s14, 1  ;;  %s1933_s29 = sshll.u32 %s3327_s3, 1  ;;  %v1431_v11 = vld [vmem:[%s3545_s7 + $0x30] sm:$0xff]  ;;  %v1432_v12 = vld [vmem:[%s3545_s7 + $0x38] sm:$0xff] }
  0xf7   :  { %v422_v37 = vpop.permute.xlu0 %421  ;;  %510 = vst.msk [vmem:[#allocation2 + $0xa] sm:$0x3] %vm74_vm3, %v508_v36  ;;  %2174 = vmatprep.subr.bf16.mxu0 %v2173_v56  ;;  %2189 = vmatprep.subr.bf16.mxu1 %v2173_v56  ;;  %s3385_s24 = sld [smem:[#allocation4 + $0x7d]]  ;;  %s3387_s16 = sld [smem:[#allocation4 + $0x74]]  ;;  %v2185_v13 = vpack.c.bf16 %v1432_v12, %v1431_v11  ;;  %v1405_v14 = vld [vmem:[%s1404_s19] sm:$0x3] }
  0xf8   :  { %424 = vst.msk [vmem:[#allocation2 + $0x8] sm:$0x3] %vm74_vm3, %v422_v37  ;;  %1397 = vrot.lane.b32.xlu1 %v1395_v34, %s2281_s17  ;;  %2176 = vmatpush3.bf16.msra.mxu0 %v2173_v56  ;;  %v1319_v15 = vld [vmem:[%s1318_s15] sm:$0x3]  ;;  %s554_s28 = scalar_lea.vmem %s3526_s1, %s1951_s11  ;;  %s468_s21 = scalar_lea.vmem %s3526_s1, %s1933_s29 }
  0xf9   :  { %1311 = vrot.lane.b32.xlu0 %v1309_v35, %s2281_s17  ;;  %s2283_s17 = smov 64   ;;  %2194 = vmatpush3.bf16.msra.mxu1 %v2173_v56  ;;  %s1987_s4 = sshll.u32 %s3347_s2, 1  ;;  %v1433_v18 = vld [vmem:[%s3545_s7 + $0x40] sm:$0xff] }
  0xfa   :  { %v680_v40 = vpop.permute.xlu1 %679  ;;  %2178 = vmatprep.subr.bf16.mxu0 %v2177_v63  ;;  %2190 = vmatprep.subr.bf16.mxu1 %v2177_v63  ;;  %s3398_s20 = sld [smem:[#allocation4 + $0x8f]]  ;;  %s3403_s5 = sld [smem:[#allocation4 + $0x86]]  ;;  %v555_v19 = vld [vmem:[%s554_s28] sm:$0x3] }
  0xfb   :  { %v594_v41 = vpop.permute.xlu0 %593  ;;  %682 = vst.msk [vmem:[#allocation2 + $0xe] sm:$0x3] %vm74_vm3, %v680_v40  ;;  %s1969_s6 = sshll.u32 %s3365_s0, 1  ;;  %v469_v20 = vld [vmem:[%s468_s21] sm:$0x3]  ;;  %s726_s9 = scalar_lea.vmem %s3526_s1, %s1987_s4 }
  0xfc   :  { %596 = vst.msk [vmem:[#allocation2 + $0xc] sm:$0x3] %vm74_vm3, %v594_v41  ;;  %213 = vrot.lane.b32.xlu1 %v211_v38, %s2283_s17  ;;  %2180 = vmatpush3.bf16.msra.mxu0 %v2177_v63  ;;  %s640_s10 = scalar_lea.vmem %s3526_s1, %s1969_s6  ;;  %v727_v23 = vld [vmem:[%s726_s9] sm:$0x3] }
  0xfd   :  { %126 = vrot.lane.b32.xlu0 %v124_v39, %s2283_s17  ;;  %2195 = vmatpush3.bf16.msra.mxu1 %v2177_v63  ;;  %s2077_s7 = sshll.u32 %s3387_s16, 1  ;;  %v641_v24 = vld [vmem:[%s640_s10] sm:$0x3] }
  0xfe   :  { %v862_v44 = vpop.permute.xlu1 %861  ;;  %2182 = vmatprep.subr.bf16.mxu0 %v2181_v6  ;;  %2191 = vmatprep.subr.bf16.mxu1 %v2181_v6  ;;  %s1156_s18 = scalar_lea.vmem %s3526_s1, %s2077_s7 }
  0xff   :  { %v776_v45 = vpop.permute.xlu0 %775  ;;  %864 = vst.msk [vmem:[#allocation2 + $0x12] sm:$0x3] %vm85_vm4, %v862_v44  ;;  %v1157_v28 = vld [vmem:[%s1156_s18] sm:$0x3] }
 0x100   :  { %778 = vst.msk [vmem:[#allocation2 + $0x10] sm:$0x3] %vm85_vm4, %v776_v45  ;;  %385 = vrot.lane.b32.xlu1 %v383_v42, %s2283_s17  ;;  %2184 = vmatpush3.bf16.msra.mxu0 %v2181_v6  ;;  %s2131_s13 = sshll.u32 %s3398_s20, 1 }
 0x101   :  { %299 = vrot.lane.b32.xlu0 %v297_v43, %s2283_s17  ;;  %2196 = vmatpush3.bf16.msra.mxu1 %v2181_v6  ;;  %s1414_s3 = scalar_lea.vmem %s3526_s1, %s2131_s13 }
 0x102   :  { %v1034_v48 = vpop.permute.xlu1 %1033  ;;  %2186 = vmatprep.subr.bf16.mxu0 %v2185_v13  ;;  %2192 = vmatprep.subr.bf16.mxu1 %v2185_v13  ;;  %v1415_v31 = vld [vmem:[%s1414_s3] sm:$0x3] }
 0x103   :  { %v948_v49 = vpop.permute.xlu0 %947  ;;  %1036 = vst.msk [vmem:[#allocation2 + $0x16] sm:$0x3] %vm85_vm4, %v1034_v48 }
 0x104   :  { %950 = vst.msk [vmem:[#allocation2 + $0x14] sm:$0x3] %vm85_vm4, %v948_v49  ;;  %547 = vrot.lane.b32.xlu1 %v545_v46, %s2282_s12  ;;  %2188 = vmatpush3.bf16.msra.mxu0 %v2185_v13 }
 0x105   :  { %461 = vrot.lane.b32.xlu0 %v459_v47, %s2282_s12  ;;  %2197 = vmatpush3.bf16.msra.mxu1 %v2185_v13 }
 0x106   :  { %v1196_v52 = vpop.permute.xlu1 %1195  ;;  %2165 = vmatprep.subr.mxu0 %v1433_v18  ;;  %2193 = vmatprep.subr.mxu1 %v1433_v18 }
 0x107   :  { %v1110_v53 = vpop.permute.xlu0 %1109  ;;  %1198 = vst.msk [vmem:[#allocation2 + $0x1a] sm:$0x3] %vm74_vm3, %v1196_v52 }
 0x108   :  { %1112 = vst.msk [vmem:[#allocation2 + $0x18] sm:$0x3] %vm74_vm3, %v1110_v53  ;;  %719 = vrot.lane.b32.xlu1 %v717_v50, %s2282_s12  ;;  %2166 = vmatpush3.msra.mxu0 %v1433_v18 }
 0x109   :  { %633 = vrot.lane.b32.xlu0 %v631_v51, %s2282_s12  ;;  %2198 = vmatpush3.msra.mxu1 %v1433_v18 }
 0x10a   :  { %v1368_v59 = vpop.permute.xlu1 %1367 }
 0x10b   :  { %v1282_v60 = vpop.permute.xlu0 %1281  ;;  %1370 = vst.msk [vmem:[#allocation2 + $0x1e] sm:$0x3] %vm74_vm3, %v1368_v59 }
 0x10c   :  { %1284 = vst.msk [vmem:[#allocation2 + $0x1c] sm:$0x3] %vm74_vm3, %v1282_v60  ;;  %901 = vrot.lane.b32.xlu1 %v899_v57, %s2283_s17 }
 0x10d   :  { %815 = vrot.lane.b32.xlu0 %v813_v58, %s2283_s17 }
 0x10e   :  { %v184_v2 = vpop.permute.xlu1 %183 }
 0x10f   :  { %v94_v3 = vpop.permute.xlu0 %93  ;;  %186 = vst.msk [vmem:[#allocation2 + $0x2] sm:$0x3] %vm96_vm5, %v184_v2 }
 0x110   :  { %97 = vst.msk [vmem:[#allocation2] sm:$0x3] %vm96_vm5, %v94_v3  ;;  %1073 = vrot.lane.b32.xlu1 %v1071_v0, %s2283_s17 }
 0x111   :  { %987 = vrot.lane.b32.xlu0 %v985_v1, %s2283_s17 }
 0x112   :  { %v356_v9 = vpop.permute.xlu1 %355 }
 0x113   :  { %v270_v10 = vpop.permute.xlu0 %269  ;;  %358 = vst.msk [vmem:[#allocation2 + $0x6] sm:$0x3] %vm96_vm5, %v356_v9 }
 0x114   :  { %272 = vst.msk [vmem:[#allocation2 + $0x4] sm:$0x3] %vm96_vm5, %v270_v10  ;;  %1235 = vrot.lane.b32.xlu1 %v1233_v7, %s2282_s12 }
 0x115   :  { %1149 = vrot.lane.b32.xlu0 %v1147_v8, %s2282_s12 }
 0x116   :  { %v518_v16 = vpop.permute.xlu1 %517 }
 0x117   :  { %v432_v17 = vpop.permute.xlu0 %431  ;;  %520 = vst.msk [vmem:[#allocation2 + $0xa] sm:$0x3] %vm85_vm4, %v518_v16 }
 0x118   :  { %434 = vst.msk [vmem:[#allocation2 + $0x8] sm:$0x3] %vm85_vm4, %v432_v17  ;;  %1407 = vrot.lane.b32.xlu1 %v1405_v14, %s2282_s12 }
 0x119   :  { %1321 = vrot.lane.b32.xlu0 %v1319_v15, %s2282_s12  ;;  %s2095_s12 = sshll.u32 %s3385_s24, 1  ;;  %s2113_s24 = sshll.u32 %s3403_s5, 1 }
 0x11a   :  { %v690_v21 = vpop.permute.xlu1 %689  ;;  %s1242_s29 = scalar_lea.vmem %s3526_s1, %s2095_s12  ;;  %s1328_s26 = scalar_lea.vmem %s3526_s1, %s2113_s24 }
 0x11b   :  { %v604_v22 = vpop.permute.xlu0 %603  ;;  %692 = vst.msk [vmem:[#allocation2 + $0xe] sm:$0x3] %vm85_vm4, %v690_v21  ;;  %v1243_v27 = vld [vmem:[%s1242_s29] sm:$0x3]  ;;  %s2284_s1 = smov [#allocation8]  }
 0x11c   :  { %606 = vst.msk [vmem:[#allocation2 + $0xc] sm:$0x3] %vm85_vm4, %v604_v22  ;;  %557 = vrot.lane.b32.xlu1 %v555_v19, %s2283_s17  ;;  %v1329_v32 = vld [vmem:[%s1328_s26] sm:$0x3] }
 0x11d   :  { %471 = vrot.lane.b32.xlu0 %v469_v20, %s2283_s17 }
 0x11e   :  { %v872_v25 = vpop.permute.xlu1 %871 }
 0x11f   :  { %v786_v26 = vpop.permute.xlu0 %785  ;;  %874 = vst.msk [vmem:[#allocation2 + $0x12] sm:$0x3] %vm96_vm5, %v872_v25 }
 0x120   :  { %788 = vst.msk [vmem:[#allocation2 + $0x10] sm:$0x3] %vm96_vm5, %v786_v26  ;;  %729 = vrot.lane.b32.xlu1 %v727_v23, %s2283_s17 }
 0x121   :  { %643 = vrot.lane.b32.xlu0 %v641_v24, %s2283_s17 }
 0x122   :  { %v1044_v29 = vpop.permute.xlu1 %1043 }
 0x123   :  { %v958_v30 = vpop.permute.xlu0 %957  ;;  %1046 = vst.msk [vmem:[#allocation2 + $0x16] sm:$0x3] %vm96_vm5, %v1044_v29 }
 0x124   :  { %960 = vst.msk [vmem:[#allocation2 + $0x14] sm:$0x3] %vm96_vm5, %v958_v30  ;;  %1245 = vrot.lane.b32.xlu1 %v1243_v27, %s2283_s17 }
 0x125   :  { %1159 = vrot.lane.b32.xlu0 %v1157_v28, %s2283_s17 }
 0x126   :  { %v1206_v33 = vpop.permute.xlu1 %1205 }
 0x127   :  { %v1120_v34 = vpop.permute.xlu0 %1119  ;;  %1208 = vst.msk [vmem:[#allocation2 + $0x1a] sm:$0x3] %vm85_vm4, %v1206_v33  ;;  %v1435_v33 = vld [vmem:[#allocation5 + $0x8] sm:$0xff] }
 0x128   :  { %1122 = vst.msk [vmem:[#allocation2 + $0x18] sm:$0x3] %vm85_vm4, %v1120_v34  ;;  %1417 = vrot.lane.b32.xlu1 %v1415_v31, %s2283_s17  ;;  %v1434_v34 = vld [vmem:[#allocation5] sm:$0xff] }
 0x129   :  { %1331 = vrot.lane.b32.xlu0 %v1329_v32, %s2283_s17  ;;  %s1545_s17 = sshll.u32 %s2284_s1, 4  ;;  %s1546_s17 = int_to_ptr.vmem [resolvable:$true] %s1545_s17 }
 0x12a   :  { %v1378_v35 = vpop.permute.xlu1 %1377  ;;  %s2245_s21 = scalar_lea.vmem %s1546_s17, 512  ;;  %p2250_p0 = scmp.lt.s32.totalorder %s1546_s17, %s1546_s17 }
 0x12b   :  { %v1292_v36 = vpop.permute.xlu0 %1291  ;;  %1380 = vst.msk [vmem:[#allocation2 + $0x1e] sm:$0x3] %vm85_vm4, %v1378_v35  ;;  %p2246_p13 = scmp.ne.s32.totalorder %s1546_s17, %s2245_s21  ;;  %p2251_p1 = scmp.lt.s32.totalorder %s2245_s21, %s2245_s21 }
 0x12c   :  { %1294 = vst.msk [vmem:[#allocation2 + $0x1c] sm:$0x3] %vm85_vm4, %v1292_v36 }
 0x12d   :  { %p2252_p2 = por %p2251_p1, %p2250_p0 }
 0x12e   :  { %v194_v37 = vpop.permute.xlu1 %193 }
 0x12f   :  { %v105_v38 = vpop.permute.xlu0 %104  ;;  %196 = vst.msk [vmem:[#allocation2 + $0x2] sm:$0x3] %vm107_vm6, %v194_v37  ;;  %p2253_p3 = pnand %p2252_p2, %p2246_p13 }
 0x130   :  { %108 = vst.msk [vmem:[#allocation2] sm:$0x3] %vm107_vm6, %v105_v38 }
 0x132   :  { %v366_v39 = vpop.permute.xlu1 %365 }
 0x133   :  { %v280_v40 = vpop.permute.xlu0 %279  ;;  %368 = vst.msk [vmem:[#allocation2 + $0x6] sm:$0x3] %vm107_vm6, %v366_v39  ;;  %v1437_v39 = vld [vmem:[#allocation5 + $0x18] sm:$0xff] }
 0x134   :  { %282 = vst.msk [vmem:[#allocation2 + $0x4] sm:$0x3] %vm107_vm6, %v280_v40  ;;  %v1436_v40 = vld [vmem:[#allocation5 + $0x10] sm:$0xff] }
 0x136   :  { %v528_v41 = vpop.permute.xlu1 %527 }
 0x137   :  { %v442_v42 = vpop.permute.xlu0 %441  ;;  %530 = vst.msk [vmem:[#allocation2 + $0xa] sm:$0x3] %vm96_vm5, %v528_v41 }
 0x138   :  { %444 = vst.msk [vmem:[#allocation2 + $0x8] sm:$0x3] %vm96_vm5, %v442_v42 }
 0x13a   :  { %v700_v43 = vpop.permute.xlu1 %699 }
 0x13b   :  { %v614_v44 = vpop.permute.xlu0 %613  ;;  %702 = vst.msk [vmem:[#allocation2 + $0xe] sm:$0x3] %vm96_vm5, %v700_v43 }
 0x13c   :  { %616 = vst.msk [vmem:[#allocation2 + $0xc] sm:$0x3] %vm96_vm5, %v614_v44 }
 0x13e   :  { %v882_v45 = vpop.permute.xlu1 %881 }
 0x13f   :  { %v796_v46 = vpop.permute.xlu0 %795  ;;  %884 = vst.msk [vmem:[#allocation2 + $0x12] sm:$0x3] %vm107_vm6, %v882_v45 }
 0x140   :  { %798 = vst.msk [vmem:[#allocation2 + $0x10] sm:$0x3] %vm107_vm6, %v796_v46 }
 0x142   :  { %v1054_v47 = vpop.permute.xlu1 %1053 }
 0x143   :  { %v968_v48 = vpop.permute.xlu0 %967  ;;  %1056 = vst.msk [vmem:[#allocation2 + $0x16] sm:$0x3] %vm107_vm6, %v1054_v47 }
 0x144   :  { %970 = vst.msk [vmem:[#allocation2 + $0x14] sm:$0x3] %vm107_vm6, %v968_v48 }
 0x146   :  { %v1216_v49 = vpop.permute.xlu1 %1215 }
 0x147   :  { %v1130_v50 = vpop.permute.xlu0 %1129  ;;  %1218 = vst.msk [vmem:[#allocation2 + $0x1a] sm:$0x3] %vm96_vm5, %v1216_v49 }
 0x148   :  { %1132 = vst.msk [vmem:[#allocation2 + $0x18] sm:$0x3] %vm96_vm5, %v1130_v50 }
 0x14a   :  { %v1388_v51 = vpop.permute.xlu1 %1387 }
 0x14b   :  { %v1302_v52 = vpop.permute.xlu0 %1301  ;;  %1390 = vst.msk [vmem:[#allocation2 + $0x1e] sm:$0x3] %vm96_vm5, %v1388_v51 }
 0x14c   :  { %1304 = vst.msk [vmem:[#allocation2 + $0x1c] sm:$0x3] %vm96_vm5, %v1302_v52 }
 0x14e   :  { %v204_v53 = vpop.permute.xlu1 %203 }
 0x14f   :  { %v116_v54 = vpop.permute.xlu0 %115  ;;  %206 = vst.msk [vmem:[#allocation2 + $0x2] sm:$0x3] %vm118_vm7, %v204_v53 }
 0x150   :  { %119 = vst.msk [vmem:[#allocation2] sm:$0x3] %vm118_vm7, %v116_v54 }
 0x152   :  { %v376_v55 = vpop.permute.xlu1 %375 }
 0x153   :  { %v290_v56 = vpop.permute.xlu0 %289  ;;  %378 = vst.msk [vmem:[#allocation2 + $0x6] sm:$0x3] %vm118_vm7, %v376_v55 }
 0x154   :  { %292 = vst.msk [vmem:[#allocation2 + $0x4] sm:$0x3] %vm118_vm7, %v290_v56 }
 0x156   :  { %v538_v57 = vpop.permute.xlu1 %537 }
 0x157   :  { %v452_v58 = vpop.permute.xlu0 %451  ;;  %540 = vst.msk [vmem:[#allocation2 + $0xa] sm:$0x3] %vm107_vm6, %v538_v57 }
 0x158   :  { %454 = vst.msk [vmem:[#allocation2 + $0x8] sm:$0x3] %vm107_vm6, %v452_v58 }
 0x15a   :  { %v710_v59 = vpop.permute.xlu1 %709 }
 0x15b   :  { %v624_v60 = vpop.permute.xlu0 %623  ;;  %712 = vst.msk [vmem:[#allocation2 + $0xe] sm:$0x3] %vm107_vm6, %v710_v59 }
 0x15c   :  { %626 = vst.msk [vmem:[#allocation2 + $0xc] sm:$0x3] %vm107_vm6, %v624_v60 }
 0x15e   :  { %v892_v61 = vpop.permute.xlu1 %891 }
 0x15f   :  { %v806_v62 = vpop.permute.xlu0 %805  ;;  %894 = vst.msk [vmem:[#allocation2 + $0x12] sm:$0x3] %vm118_vm7, %v892_v61 }
 0x160   :  { %808 = vst.msk [vmem:[#allocation2 + $0x10] sm:$0x3] %vm118_vm7, %v806_v62 }
 0x162   :  { %v1064_v63 = vpop.permute.xlu1 %1063 }
 0x163   :  { %v978_v0 = vpop.permute.xlu0 %977  ;;  %1066 = vst.msk [vmem:[#allocation2 + $0x16] sm:$0x3] %vm118_vm7, %v1064_v63 }
 0x164   :  { %980 = vst.msk [vmem:[#allocation2 + $0x14] sm:$0x3] %vm118_vm7, %v978_v0 }
 0x166   :  { %v1226_v1 = vpop.permute.xlu1 %1225 }
 0x167   :  { %v1140_v2 = vpop.permute.xlu0 %1139  ;;  %1228 = vst.msk [vmem:[#allocation2 + $0x1a] sm:$0x3] %vm107_vm6, %v1226_v1 }
 0x168   :  { %1142 = vst.msk [vmem:[#allocation2 + $0x18] sm:$0x3] %vm107_vm6, %v1140_v2 }
 0x16a   :  { %v1398_v3 = vpop.permute.xlu1 %1397 }
 0x16b   :  { %v1312_v4 = vpop.permute.xlu0 %1311  ;;  %1400 = vst.msk [vmem:[#allocation2 + $0x1e] sm:$0x3] %vm107_vm6, %v1398_v3 }
 0x16c   :  { %1314 = vst.msk [vmem:[#allocation2 + $0x1c] sm:$0x3] %vm107_vm6, %v1312_v4 }
 0x16e   :  { %v214_v5 = vpop.permute.xlu1 %213 }
 0x16f   :  { %v127_v6 = vpop.permute.xlu0 %126  ;;  %216 = vst.msk [vmem:[#allocation2 + $0x2] sm:$0x3] %vm129_vm8, %v214_v5 }
 0x170   :  { %130 = vst.msk [vmem:[#allocation2] sm:$0x3] %vm129_vm8, %v127_v6 }
 0x172   :  { %v386_v7 = vpop.permute.xlu1 %385 }
 0x173   :  { %v300_v8 = vpop.permute.xlu0 %299  ;;  %388 = vst.msk [vmem:[#allocation2 + $0x6] sm:$0x3] %vm129_vm8, %v386_v7 }
 0x174   :  { %302 = vst.msk [vmem:[#allocation2 + $0x4] sm:$0x3] %vm129_vm8, %v300_v8 }
 0x176   :  { %v548_v9 = vpop.permute.xlu1 %547 }
 0x177   :  { %v462_v10 = vpop.permute.xlu0 %461  ;;  %550 = vst.msk [vmem:[#allocation2 + $0xa] sm:$0x3] %vm118_vm7, %v548_v9 }
 0x178   :  { %464 = vst.msk [vmem:[#allocation2 + $0x8] sm:$0x3] %vm118_vm7, %v462_v10 }
 0x17a   :  { %v720_v11 = vpop.permute.xlu1 %719 }
 0x17b   :  { %v634_v12 = vpop.permute.xlu0 %633  ;;  %v1421_v13 = vld [vmem:[#allocation2] sm:$0xff]  ;;  %722 = vst.msk [vmem:[#allocation2 + $0xe] sm:$0x3] %vm118_vm7, %v720_v11 }
 0x17c   :  { %636 = vst.msk [vmem:[#allocation2 + $0xc] sm:$0x3] %vm118_vm7, %v634_v12  ;;  %2167 = vmatprep.mubr.msk.f32.mxu0 %vm1438_vm9, %v1421_v13 }
 0x17e   :  { %v902_v14 = vpop.permute.xlu1 %901 }
 0x17f   :  { %v816_v15 = vpop.permute.xlu0 %815  ;;  %904 = vst.msk [vmem:[#allocation2 + $0x12] sm:$0x3] %vm129_vm8, %v902_v14 }
 0x180   :  { %818 = vst.msk [vmem:[#allocation2 + $0x10] sm:$0x3] %vm129_vm8, %v816_v15 }
 0x182   :  { %v1074_v16 = vpop.permute.xlu1 %1073 }
 0x183   :  { %v988_v17 = vpop.permute.xlu0 %987  ;;  %1076 = vst.msk [vmem:[#allocation2 + $0x16] sm:$0x3] %vm129_vm8, %v1074_v16 }
 0x184   :  { %990 = vst.msk [vmem:[#allocation2 + $0x14] sm:$0x3] %vm129_vm8, %v988_v17 }
 0x186   :  { %v1236_v18 = vpop.permute.xlu1 %1235 }
 0x187   :  { %v1150_v19 = vpop.permute.xlu0 %1149  ;;  %1238 = vst.msk [vmem:[#allocation2 + $0x1a] sm:$0x3] %vm118_vm7, %v1236_v18 }
 0x188   :  { %1152 = vst.msk [vmem:[#allocation2 + $0x18] sm:$0x3] %vm118_vm7, %v1150_v19 }
 0x18a   :  { %v1408_v20 = vpop.permute.xlu1 %1407 }
 0x18b   :  { %v1322_v21 = vpop.permute.xlu0 %1321  ;;  %v1423_v22 = vld [vmem:[#allocation2 + $0x10] sm:$0xff]  ;;  %1410 = vst.msk [vmem:[#allocation2 + $0x1e] sm:$0x3] %vm118_vm7, %v1408_v20 }
 0x18c   :  { %1324 = vst.msk [vmem:[#allocation2 + $0x1c] sm:$0x3] %vm118_vm7, %v1322_v21  ;;  %2170 = vmatprep.mubr.msk.f32.mxu1 %vm1438_vm9, %v1423_v22 }
 0x18e   :  { %v558_v23 = vpop.permute.xlu1 %557 }
 0x18f   :  { %v472_v24 = vpop.permute.xlu0 %471  ;;  %560 = vst.msk [vmem:[#allocation2 + $0xa] sm:$0x3] %vm129_vm8, %v558_v23 }
 0x190   :  { %474 = vst.msk [vmem:[#allocation2 + $0x8] sm:$0x3] %vm129_vm8, %v472_v24 }
 0x192   :  { %v730_v25 = vpop.permute.xlu1 %729 }
 0x193   :  { %v644_v26 = vpop.permute.xlu0 %643  ;;  %732 = vst.msk [vmem:[#allocation2 + $0xe] sm:$0x3] %vm129_vm8, %v730_v25 }
 0x194   :  { %646 = vst.msk [vmem:[#allocation2 + $0xc] sm:$0x3] %vm129_vm8, %v644_v26 }
 0x196   :  { %v1246_v27 = vpop.permute.xlu1 %1245 }
 0x197   :  { %v1160_v28 = vpop.permute.xlu0 %1159  ;;  %1248 = vst.msk [vmem:[#allocation2 + $0x1a] sm:$0x3] %vm129_vm8, %v1246_v27 }
 0x198   :  { %1162 = vst.msk [vmem:[#allocation2 + $0x18] sm:$0x3] %vm129_vm8, %v1160_v28 }
 0x19a   :  { %v1418_v29 = vpop.permute.xlu1 %1417 }
 0x19b   :  { %v1332_v30 = vpop.permute.xlu0 %1331  ;;  %v1422_v31 = vld [vmem:[#allocation2 + $0x8] sm:$0xff]  ;;  %1420 = vst.msk [vmem:[#allocation2 + $0x1e] sm:$0x3] %vm129_vm8, %v1418_v29 }
 0x19c   :  { %1334 = vst.msk [vmem:[#allocation2 + $0x1c] sm:$0x3] %vm129_vm8, %v1332_v30  ;;  %2168 = vmatmul.mubr.msk.f32.vlgmr.msra.gmra.mrb[0].mxu0 %vm1438_vm9, %v1422_v31 }
 0x1a3   :  { %v1424_v32 = vld [vmem:[#allocation2 + $0x18] sm:$0xff] }
 0x1a4   :  { %2171 = vmatmul.mubr.msk.f32.vlgmr.msra.gmra.mrb[0].mxu1 %vm1438_vm9, %v1424_v32 }
 0x26f   :  { %v2169_v35 = vpop.f32.mrb[0].mxu0 }
 0x270   :  { %v1523_v36 = vadd.f32 %v2169_v35, %v1435_v33  ;;  %v1517_v37 = vpop.f32.mrb[1].mxu0 }
 0x271   :  { %v1518_v38 = vadd.f32 %v1517_v37, %v1434_v34 }
 0x272   :  { %1537 = vst [vmem:[#allocation8 + $0x8] sm:$0xff] %v1523_v36 }
 0x273   :  { %1536 = vst [vmem:[#allocation8] sm:$0xff] %v1518_v38 }
 0x277   :  { %v2172_v41 = vpop.f32.mrb[0].mxu1 }
 0x278   :  { %v1533_v42 = vadd.f32 %v2172_v41, %v1437_v39  ;;  %v1527_v43 = vpop.f32.mrb[1].mxu1 }
 0x279   :  { %v1528_v44 = vadd.f32 %v1527_v43, %v1436_v40 }
 0x27a   :  { %1539 = vst [vmem:[#allocation8 + $0x18] sm:$0xff] %v1533_v42 }
 0x27b   :  { %1538 = vst [vmem:[#allocation8 + $0x10] sm:$0xff] %v1528_v44 }
 0x27c   :  { %2256 = shalt.err (!%p2253_p3)
}
 0x27d   :  { %s3546_s6 = sld [smem:[#allocation13_spill]] }
 0x283   :  { %s2257_s5 = scalar_lea.hbm %s3546_s6, 512 }
 0x284   :  { %p2258_p4 = scmp.ne.s32.totalorder %s3546_s6, %s2257_s5  ;;  %p2261_p5 = scmp.lt.u32.totalorder %s2257_s5, %s3546_s6 }
 0x286   :  { %p2263_p6 = pnand %p2261_p5, %p2258_p4 }
 0x288   :  { %2266 = shalt.err (!%p2263_p6)
}
 0x289   :  { %s3547_s9 = smov 8   ;;  %s3548_s19 = smov 128  }
 0x28a   :  { %1551 = dma.vmem_to_hbm [thread:$0]  %s1546_s17, 512, %s3546_s6, [#allocation7], %s3548_s19, %s3548_s19, %s3547_s9  }
 0x28b   :  { %2271 = dma.done.wait [#allocation7], 512  }
 0x28c   :  { %2272 = vsyncadd [#allocation7], 4294966784 }
 0x28d   :  { %1555 = vsyncpa [#allocation6], 1 }
 0x28e   :  { %1556 = vsyncpa [#allocation7], 1 }

</bundles_post_ra>
